<compile_context>
chip_gen: v7x
topology: tpu7x:2x2x1
jax: 0.10.0
libtpu: 0.0.40
codegen_flags: <defaults>
</compile_context>

<pallas_src>
import jax
import jax.numpy as jnp
from jax.experimental import pallas as pl
from jax.experimental.pallas import tpu as pltpu

# ---- model hyper-parameters (mirrors _GNNModels defaults, scaled down) ----
N = 8                               # number of graph nodes
IN_CH = 4                           # in_channel
EDGE_CH = 4                         # edge_channel
OUT_CH = 2                          # out_channel
HIDDEN = 32                         # hidden_size (module default 64; scaled down)
EMB_MID = (IN_CH + HIDDEN) // 2     # cal_size_list(in_channel, hidden, 2) midpoint
LAYER_NUM = 10                      # IterGNN max iterations (layer_num=10)

NEG_INF = -1e30


def _relu(x):
    return jnp.maximum(x, 0.0)


def _bf(x):
    return x.astype(jnp.bfloat16)


def _gnn_kernel(x_ref, adj_ref, e_ref,
                w_e0_ref, b_e0_ref, w_e1_ref, b_e1_ref,
                w_src_ref, w_dst_ref, w_edge_ref, b_msg_ref,
                w_ro_h_ref, w_ro_x_ref, b_ro_ref,
                w_conf_ref, b_conf_ref,
                w_head_ref, b_head_ref,
                out_ref):
    f32 = jnp.float32
    x_in = x_ref[...]                                  # [N, IN_CH]  (data.input_x)
    adj = adj_ref[...]                                 # [N, N]  adj[dst, src]

    # ---- loop-invariant precompute (hoisted out of the 10 GNN iterations) ----
    adj_bias = jnp.where(adj > 0.0, 0.0, NEG_INF)              # additive neighbour mask
    isolated = jnp.sum(adj, axis=1, keepdims=True) == 0.0      # [N, 1] no-neighbour flag

    x_bf = _bf(x_in)

    # ---- embedding MLP: in_channel -> mid -> hidden, ReLU ----
    h = _relu(jnp.dot(x_bf, _bf(w_e0_ref[...]), preferred_element_type=f32)
              + b_e0_ref[...])
    h = _relu(jnp.dot(_bf(h), _bf(w_e1_ref[...]), preferred_element_type=f32)
              + b_e1_ref[...])                                  # [N, HIDDEN]

    # edge-attr contribution to messages: one [N*N, E] x [E, H] matmul (loop-invariant)
    ewh = jnp.dot(_bf(e_ref[...]), _bf(w_edge_ref[...]), preferred_element_type=f32)
    ewh3 = ewh.reshape(N, N, HIDDEN)                            # [dst, src, HIDDEN]

    # ReadoutLayers(Max, input_feat_flag=True): linear on cat([x, input_x]) then max
    # over nodes (cat @ W == x @ W_h + input_x @ W_x); the input_x term is invariant.
    ro_x = jnp.dot(x_bf, _bf(w_ro_x_ref[...]), preferred_element_type=f32) + b_ro_ref[...]
    w_ro_h_bf = _bf(w_ro_h_ref[...])

    def readout(nodes):
        g = jnp.dot(_bf(nodes), w_ro_h_bf, preferred_element_type=f32) + ro_x
        return jnp.max(g, axis=0, keepdims=True)                # [1, HIDDEN]

    w_src_bf = _bf(w_src_ref[...])
    w_dst_bf = _bf(w_dst_ref[...])
    w_conf_bf = _bf(w_conf_ref[...])
    b_msg = b_msg_ref[...]
    b_conf = b_conf_ref[...]

    # ---- IterGNN iterations: PathGNN layer + confidence-gated accumulation ----
    # TODO(synk): MLP / GNNLayers / GNNArchitectures / ReadoutLayers / cal_size_list
    # sources were not provided; this follows the IterGNN paper semantics
    # (max-aggregation PathGNN messages, geometric confidence-weighted mixture).
    left = jnp.ones((1, 1), f32)
    acc = jnp.zeros((N, HIDDEN), f32)
    for _ in range(LAYER_NUM):
        h_bf = _bf(h)
        h_src = jnp.dot(h_bf, w_src_bf, preferred_element_type=f32) + b_msg  # [src, H]
        h_dst = jnp.dot(h_bf, w_dst_bf, preferred_element_type=f32)          # [dst, H]

        # msg[dst, src, :] = relu(h_dst[dst] + h_src[src] + edge_proj[dst, src])
        msg = _relu(h_dst[:, None, :] + h_src[None, :, :] + ewh3)            # [N, N, H]
        agg = jnp.max(msg + adj_bias[:, :, None], axis=1)                    # [N, H]
        h_new = jnp.where(isolated, 0.0, agg)                                # isolated -> 0

        conf = jax.nn.sigmoid(
            jnp.dot(_bf(readout(h_new)), w_conf_bf, preferred_element_type=f32)
            + b_conf)                                                        # [1, 1]
        acc = acc + left * conf * h_new
        left = left * (1.0 - conf)
        h = h_new

    # ---- final readout + head MLP (Identity activation) ----
    # TODO(synk): _GNNModels.readout() raises NotImplementedError in the reference;
    # we use the Max readout_module the module constructs.
    global_feat = readout(acc)                                               # [1, HIDDEN]
    out = (jnp.dot(_bf(global_feat), _bf(w_head_ref[...]),
                   preferred_element_type=f32) + b_head_ref[...])            # [1, OUT_CH]
    out_ref[...] = out


PARAM_ORDER = ("w_e0", "b_e0", "w_e1", "b_e1",
               "w_src", "w_dst", "w_edge", "b_msg",
               "w_ro_h", "w_ro_x", "b_ro",
               "w_conf", "b_conf",
               "w_head", "b_head")


def gnn_forward(x, adj, edge_attr, params):
    """x: [B, N, IN_CH], adj: [B, N, N], edge_attr: [B, N, N, EDGE_CH]."""
    B = x.shape[0]
    flat = [params[k] for k in PARAM_ORDER]
    e_flat = edge_attr.reshape(B, N * N, EDGE_CH)

    data_specs = [
        pl.BlockSpec((None, N, IN_CH), lambda b: (b, 0, 0)),
        pl.BlockSpec((None, N, N), lambda b: (b, 0, 0)),
        pl.BlockSpec((None, N * N, EDGE_CH), lambda b: (b, 0, 0)),
    ]
    # Weights: full-array blocks with a constant index_map -> DMA'd once, stay resident.
    param_specs = [pl.BlockSpec(p.shape, lambda b: (0, 0)) for p in flat]

    out = pl.pallas_call(
        _gnn_kernel,
        out_shape=jax.ShapeDtypeStruct((B, 1, OUT_CH), jnp.float32),
        grid=(B,),
        in_specs=data_specs + param_specs,
        out_specs=pl.BlockSpec((None, 1, OUT_CH), lambda b: (b, 0, 0)),
        compiler_params=pltpu.CompilerParams(
            dimension_semantics=("parallel",),       # v7x: split batch across both TCs
            vmem_limit_bytes=32 * 1024 * 1024,       # safe on v5e/v6e/v7x scoped limits
        ),
    )(x, adj, e_flat, *flat)
    return (out.reshape(B, OUT_CH),)                 # forward returns a 1-tuple


def init_params(key):
    def dense(k, shape):
        return jax.random.normal(k, shape, jnp.float32) * 0.1

    ks = jax.random.split(key, 10)
    return {
        # embedding MLP: cal_size_list(in_channel, hidden, 2) -> [IN_CH, EMB_MID, HIDDEN]
        "w_e0": dense(ks[0], (IN_CH, EMB_MID)),
        "b_e0": jnp.zeros((1, EMB_MID), jnp.float32),
        "w_e1": dense(ks[1], (EMB_MID, HIDDEN)),
        "b_e1": jnp.zeros((1, HIDDEN), jnp.float32),
        # PathGNN message MLP (split across source / destination / edge features)
        "w_src": dense(ks[2], (HIDDEN, HIDDEN)),
        "w_dst": dense(ks[3], (HIDDEN, HIDDEN)),
        "w_edge": dense(ks[4], (EDGE_CH, HIDDEN)),
        "b_msg": jnp.zeros((1, HIDDEN), jnp.float32),
        # Max readout with input_feat_flag=True (cat([x, input_x]) @ W_ro)
        "w_ro_h": dense(ks[5], (HIDDEN, HIDDEN)),
        "w_ro_x": dense(ks[6], (IN_CH, HIDDEN)),
        "b_ro": jnp.zeros((1, HIDDEN), jnp.float32),
        # confidence MLP: hidden -> 1, Sigmoid
        "w_conf": dense(ks[7], (HIDDEN, 1)),
        "b_conf": jnp.zeros((1, 1), jnp.float32),
        # head MLP: hidden -> out_channel, Identity
        "w_head": dense(ks[8], (HIDDEN, OUT_CH)),
        "b_head": jnp.zeros((1, OUT_CH), jnp.float32),
    }


if __name__ == "__main__":
    key = jax.random.PRNGKey(0)
    k_x, k_e, k_p = jax.random.split(key, 3)

    B = 4
    # deterministic small graphs: ring with self-loops (same topology per graph)
    x = jax.random.normal(k_x, (B, N, IN_CH), jnp.float32)
    idx = jnp.arange(N)
    diff = (idx[:, None] - idx[None, :]) % N
    adj1 = ((diff == 0) | (diff == 1) | (diff == N - 1)).astype(jnp.float32)
    adj = jnp.broadcast_to(adj1, (B, N, N))
    edge_attr = jax.random.normal(k_e, (B, N, N, EDGE_CH), jnp.float32)

    params = init_params(k_p)

    (out,) = gnn_forward(x, adj, edge_attr, params)
    jax.block_until_ready(out)
    assert out.shape == (B, OUT_CH)
    print("KERNEL_OK")
</pallas_src>

<mosaic_0001>
module attributes {stable_mosaic.version = 11 : i64} {
  func.func @_gnn_kernel(%arg0: i32, %arg1: memref<1x8x4xf32, #tpu.memory_space<vmem>>, %arg2: memref<1x8x8xf32, #tpu.memory_space<vmem>>, %arg3: memref<1x64x4xf32, #tpu.memory_space<vmem>>, %arg4: memref<4x18xf32, #tpu.memory_space<vmem>>, %arg5: memref<1x18xf32, #tpu.memory_space<vmem>>, %arg6: memref<18x32xf32, #tpu.memory_space<vmem>>, %arg7: memref<1x32xf32, #tpu.memory_space<vmem>>, %arg8: memref<32x32xf32, #tpu.memory_space<vmem>>, %arg9: memref<32x32xf32, #tpu.memory_space<vmem>>, %arg10: memref<4x32xf32, #tpu.memory_space<vmem>>, %arg11: memref<1x32xf32, #tpu.memory_space<vmem>>, %arg12: memref<32x32xf32, #tpu.memory_space<vmem>>, %arg13: memref<4x32xf32, #tpu.memory_space<vmem>>, %arg14: memref<1x32xf32, #tpu.memory_space<vmem>>, %arg15: memref<32x1xf32, #tpu.memory_space<vmem>>, %arg16: memref<1x1xf32, #tpu.memory_space<vmem>>, %arg17: memref<32x2xf32, #tpu.memory_space<vmem>>, %arg18: memref<1x2xf32, #tpu.memory_space<vmem>>, %arg19: memref<1x1x2xf32, #tpu.memory_space<vmem>>) attributes {dimension_semantics = [#tpu.dimension_semantics<parallel>], iteration_bounds = array<i64: 4>, scalar_prefetch = 0 : i64, scratch_operands = 0 : i64, tpu.core_type = #tpu.core_type<tc>, window_params = [{transform_indices = @transform_0, window_bounds = array<i64: 1, 8, 4>}, {transform_indices = @transform_1, window_bounds = array<i64: 1, 8, 8>}, {transform_indices = @transform_2, window_bounds = array<i64: 1, 64, 4>}, {pipeline_mode = #tpu.pipeline_mode<synchronous>, transform_indices = @transform_3, window_bounds = array<i64: 4, 18>}, {pipeline_mode = #tpu.pipeline_mode<synchronous>, transform_indices = @transform_4, window_bounds = array<i64: 1, 18>}, {pipeline_mode = #tpu.pipeline_mode<synchronous>, transform_indices = @transform_5, window_bounds = array<i64: 18, 32>}, {pipeline_mode = #tpu.pipeline_mode<synchronous>, transform_indices = @transform_6, window_bounds = array<i64: 1, 32>}, {pipeline_mode = #tpu.pipeline_mode<synchronous>, transform_indices = @transform_7, window_bounds = array<i64: 32, 32>}, {pipeline_mode = #tpu.pipeline_mode<synchronous>, transform_indices = @transform_8, window_bounds = array<i64: 32, 32>}, {pipeline_mode = #tpu.pipeline_mode<synchronous>, transform_indices = @transform_9, window_bounds = array<i64: 4, 32>}, {pipeline_mode = #tpu.pipeline_mode<synchronous>, transform_indices = @transform_10, window_bounds = array<i64: 1, 32>}, {pipeline_mode = #tpu.pipeline_mode<synchronous>, transform_indices = @transform_11, window_bounds = array<i64: 32, 32>}, {pipeline_mode = #tpu.pipeline_mode<synchronous>, transform_indices = @transform_12, window_bounds = array<i64: 4, 32>}, {pipeline_mode = #tpu.pipeline_mode<synchronous>, transform_indices = @transform_13, window_bounds = array<i64: 1, 32>}, {pipeline_mode = #tpu.pipeline_mode<synchronous>, transform_indices = @transform_14, window_bounds = array<i64: 32, 1>}, {pipeline_mode = #tpu.pipeline_mode<synchronous>, transform_indices = @transform_15, window_bounds = array<i64: 1, 1>}, {pipeline_mode = #tpu.pipeline_mode<synchronous>, transform_indices = @transform_16, window_bounds = array<i64: 32, 2>}, {pipeline_mode = #tpu.pipeline_mode<synchronous>, transform_indices = @transform_17, window_bounds = array<i64: 1, 2>}, {transform_indices = @transform_18, window_bounds = array<i64: 1, 1, 2>}]} {
    %c0 = arith.constant 0 : index
    %c0_0 = arith.constant 0 : index
    %c0_1 = arith.constant 0 : index
    %0 = vector.load %arg1[%c0, %c0_0, %c0_1] : memref<1x8x4xf32, #tpu.memory_space<vmem>>, vector<1x8x4xf32>
    %1 = vector.shape_cast %0 : vector<1x8x4xf32> to vector<8x4xf32>
    %c0_2 = arith.constant 0 : index
    %c0_3 = arith.constant 0 : index
    %c0_4 = arith.constant 0 : index
    %2 = vector.load %arg2[%c0_2, %c0_3, %c0_4] : memref<1x8x8xf32, #tpu.memory_space<vmem>>, vector<1x8x8xf32>
    %3 = vector.shape_cast %2 : vector<1x8x8xf32> to vector<8x8xf32>
    %cst = arith.constant 0.000000e+00 : f32
    %4 = vector.broadcast %cst : f32 to vector<8x8xf32>
    %5 = arith.cmpf ogt, %3, %4 : vector<8x8xf32>
    %cst_5 = arith.constant 0.000000e+00 : f32
    %cst_6 = arith.constant -1.000000e+30 : f32
    %6 = vector.broadcast %cst_5 : f32 to vector<8x8xf32>
    %7 = vector.broadcast %cst_6 : f32 to vector<8x8xf32>
    %8 = arith.select %5, %6, %7 : vector<8x8xi1>, vector<8x8xf32>
    %cst_7 = arith.constant dense<0.000000e+00> : vector<8xf32>
    %9 = vector.multi_reduction <add>, %3, %cst_7 [1] : vector<8x8xf32> to vector<8xf32>
    %10 = vector.shape_cast %9 : vector<8xf32> to vector<8x1xf32>
    %cst_8 = arith.constant 0.000000e+00 : f32
    %11 = vector.broadcast %cst_8 : f32 to vector<8x1xf32>
    %12 = arith.cmpf oeq, %10, %11 : vector<8x1xf32>
    %13 = arith.truncf %1 : vector<8x4xf32> to vector<8x4xbf16>
    %c0_9 = arith.constant 0 : index
    %c0_10 = arith.constant 0 : index
    %14 = vector.load %arg4[%c0_9, %c0_10] : memref<4x18xf32, #tpu.memory_space<vmem>>, vector<4x18xf32>
    %15 = arith.truncf %14 : vector<4x18xf32> to vector<4x18xbf16>
    %cst_11 = arith.constant dense<0.000000e+00> : vector<8x18xf32>
    %16 = tpu.matmul %13, %15, %cst_11 {dimension_numbers = #tpu.dot_dimension_numbers<[1], [0], [0], [1], [0, 0, 1, 1], [], []>} : vector<8x4xbf16>, vector<4x18xbf16>, vector<8x18xf32> -> vector<8x18xf32>
    %c0_12 = arith.constant 0 : index
    %c0_13 = arith.constant 0 : index
    %17 = vector.load %arg5[%c0_12, %c0_13] : memref<1x18xf32, #tpu.memory_space<vmem>>, vector<1x18xf32>
    %18 = vector.broadcast %17 : vector<1x18xf32> to vector<8x18xf32>
    %19 = arith.addf %16, %18 : vector<8x18xf32>
    %cst_14 = arith.constant 0.000000e+00 : f32
    %20 = vector.broadcast %cst_14 : f32 to vector<8x18xf32>
    %21 = arith.maximumf %19, %20 : vector<8x18xf32>
    %22 = arith.truncf %21 : vector<8x18xf32> to vector<8x18xbf16>
    %c0_15 = arith.constant 0 : index
    %c0_16 = arith.constant 0 : index
    %23 = vector.load %arg6[%c0_15, %c0_16] : memref<18x32xf32, #tpu.memory_space<vmem>>, vector<18x32xf32>
    %24 = arith.truncf %23 : vector<18x32xf32> to vector<18x32xbf16>
    %cst_17 = arith.constant dense<0.000000e+00> : vector<8x32xf32>
    %25 = tpu.matmul %22, %24, %cst_17 {dimension_numbers = #tpu.dot_dimension_numbers<[1], [0], [0], [1], [0, 0, 1, 1], [], []>} : vector<8x18xbf16>, vector<18x32xbf16>, vector<8x32xf32> -> vector<8x32xf32>
    %c0_18 = arith.constant 0 : index
    %c0_19 = arith.constant 0 : index
    %26 = vector.load %arg7[%c0_18, %c0_19] : memref<1x32xf32, #tpu.memory_space<vmem>>, vector<1x32xf32>
    %27 = vector.broadcast %26 : vector<1x32xf32> to vector<8x32xf32>
    %28 = arith.addf %25, %27 : vector<8x32xf32>
    %cst_20 = arith.constant 0.000000e+00 : f32
    %29 = vector.broadcast %cst_20 : f32 to vector<8x32xf32>
    %30 = arith.maximumf %28, %29 : vector<8x32xf32>
    %c0_21 = arith.constant 0 : index
    %c0_22 = arith.constant 0 : index
    %c0_23 = arith.constant 0 : index
    %31 = vector.load %arg3[%c0_21, %c0_22, %c0_23] : memref<1x64x4xf32, #tpu.memory_space<vmem>>, vector<1x64x4xf32>
    %32 = vector.shape_cast %31 : vector<1x64x4xf32> to vector<64x4xf32>
    %33 = arith.truncf %32 : vector<64x4xf32> to vector<64x4xbf16>
    %c0_24 = arith.constant 0 : index
    %c0_25 = arith.constant 0 : index
    %34 = vector.load %arg10[%c0_24, %c0_25] : memref<4x32xf32, #tpu.memory_space<vmem>>, vector<4x32xf32>
    %35 = arith.truncf %34 : vector<4x32xf32> to vector<4x32xbf16>
    %cst_26 = arith.constant dense<0.000000e+00> : vector<64x32xf32>
    %36 = tpu.matmul %33, %35, %cst_26 {dimension_numbers = #tpu.dot_dimension_numbers<[1], [0], [0], [1], [0, 0, 1, 1], [], []>} : vector<64x4xbf16>, vector<4x32xbf16>, vector<64x32xf32> -> vector<64x32xf32>
    %37 = vector.shape_cast %36 : vector<64x32xf32> to vector<8x8x32xf32>
    %c0_27 = arith.constant 0 : index
    %c0_28 = arith.constant 0 : index
    %38 = vector.load %arg13[%c0_27, %c0_28] : memref<4x32xf32, #tpu.memory_space<vmem>>, vector<4x32xf32>
    %39 = arith.truncf %38 : vector<4x32xf32> to vector<4x32xbf16>
    %cst_29 = arith.constant dense<0.000000e+00> : vector<8x32xf32>
    %40 = tpu.matmul %13, %39, %cst_29 {dimension_numbers = #tpu.dot_dimension_numbers<[1], [0], [0], [1], [0, 0, 1, 1], [], []>} : vector<8x4xbf16>, vector<4x32xbf16>, vector<8x32xf32> -> vector<8x32xf32>
    %c0_30 = arith.constant 0 : index
    %c0_31 = arith.constant 0 : index
    %41 = vector.load %arg14[%c0_30, %c0_31] : memref<1x32xf32, #tpu.memory_space<vmem>>, vector<1x32xf32>
    %42 = vector.broadcast %41 : vector<1x32xf32> to vector<8x32xf32>
    %43 = arith.addf %40, %42 : vector<8x32xf32>
    %c0_32 = arith.constant 0 : index
    %c0_33 = arith.constant 0 : index
    %44 = vector.load %arg12[%c0_32, %c0_33] : memref<32x32xf32, #tpu.memory_space<vmem>>, vector<32x32xf32>
    %45 = arith.truncf %44 : vector<32x32xf32> to vector<32x32xbf16>
    %c0_34 = arith.constant 0 : index
    %c0_35 = arith.constant 0 : index
    %46 = vector.load %arg8[%c0_34, %c0_35] : memref<32x32xf32, #tpu.memory_space<vmem>>, vector<32x32xf32>
    %47 = arith.truncf %46 : vector<32x32xf32> to vector<32x32xbf16>
    %c0_36 = arith.constant 0 : index
    %c0_37 = arith.constant 0 : index
    %48 = vector.load %arg9[%c0_36, %c0_37] : memref<32x32xf32, #tpu.memory_space<vmem>>, vector<32x32xf32>
    %49 = arith.truncf %48 : vector<32x32xf32> to vector<32x32xbf16>
    %c0_38 = arith.constant 0 : index
    %c0_39 = arith.constant 0 : index
    %50 = vector.load %arg15[%c0_38, %c0_39] : memref<32x1xf32, #tpu.memory_space<vmem>>, vector<32x1xf32>
    %51 = arith.truncf %50 : vector<32x1xf32> to vector<32x1xbf16>
    %c0_40 = arith.constant 0 : index
    %c0_41 = arith.constant 0 : index
    %52 = vector.load %arg11[%c0_40, %c0_41] : memref<1x32xf32, #tpu.memory_space<vmem>>, vector<1x32xf32>
    %c0_42 = arith.constant 0 : index
    %c0_43 = arith.constant 0 : index
    %53 = vector.load %arg16[%c0_42, %c0_43] : memref<1x1xf32, #tpu.memory_space<vmem>>, vector<1x1xf32>
    %cst_44 = arith.constant 1.000000e+00 : f32
    %54 = vector.broadcast %cst_44 : f32 to vector<1x1xf32>
    %cst_45 = arith.constant 0.000000e+00 : f32
    %55 = vector.broadcast %cst_45 : f32 to vector<8x32xf32>
    %56 = arith.truncf %30 : vector<8x32xf32> to vector<8x32xbf16>
    %cst_46 = arith.constant dense<0.000000e+00> : vector<8x32xf32>
    %57 = tpu.matmul %56, %47, %cst_46 {dimension_numbers = #tpu.dot_dimension_numbers<[1], [0], [0], [1], [0, 0, 1, 1], [], []>} : vector<8x32xbf16>, vector<32x32xbf16>, vector<8x32xf32> -> vector<8x32xf32>
    %58 = vector.broadcast %52 : vector<1x32xf32> to vector<8x32xf32>
    %59 = arith.addf %57, %58 : vector<8x32xf32>
    %cst_47 = arith.constant dense<0.000000e+00> : vector<8x32xf32>
    %60 = tpu.matmul %56, %49, %cst_47 {dimension_numbers = #tpu.dot_dimension_numbers<[1], [0], [0], [1], [0, 0, 1, 1], [], []>} : vector<8x32xbf16>, vector<32x32xbf16>, vector<8x32xf32> -> vector<8x32xf32>
    %61 = vector.shape_cast %60 : vector<8x32xf32> to vector<8x1x32xf32>
    %62 = vector.shape_cast %59 : vector<8x32xf32> to vector<1x8x32xf32>
    %63 = vector.broadcast %61 : vector<8x1x32xf32> to vector<8x8x32xf32>
    %64 = vector.broadcast %62 : vector<1x8x32xf32> to vector<8x8x32xf32>
    %65 = arith.addf %63, %64 : vector<8x8x32xf32>
    %66 = arith.addf %65, %37 : vector<8x8x32xf32>
    %cst_48 = arith.constant 0.000000e+00 : f32
    %67 = vector.broadcast %cst_48 : f32 to vector<8x8x32xf32>
    %68 = arith.maximumf %66, %67 : vector<8x8x32xf32>
    %69 = vector.shape_cast %8 : vector<8x8xf32> to vector<8x8x1xf32>
    %70 = vector.broadcast %69 : vector<8x8x1xf32> to vector<8x8x32xf32>
    %71 = arith.addf %68, %70 : vector<8x8x32xf32>
    %cst_49 = arith.constant dense<0xFF800000> : vector<8x32xf32>
    %72 = vector.multi_reduction <maximumf>, %71, %cst_49 [1] : vector<8x8x32xf32> to vector<8x32xf32>
    %cst_50 = arith.constant 0.000000e+00 : f32
    %73 = vector.shape_cast %12 : vector<8x1xi1> to vector<8x1xi1>
    %74 = vector.broadcast %73 : vector<8x1xi1> to vector<8x32xi1>
    %75 = vector.broadcast %cst_50 : f32 to vector<8x32xf32>
    %76 = arith.select %74, %75, %72 : vector<8x32xi1>, vector<8x32xf32>
    %77 = arith.truncf %76 : vector<8x32xf32> to vector<8x32xbf16>
    %cst_51 = arith.constant dense<0.000000e+00> : vector<8x32xf32>
    %78 = tpu.matmul %77, %45, %cst_51 {dimension_numbers = #tpu.dot_dimension_numbers<[1], [0], [0], [1], [0, 0, 1, 1], [], []>} : vector<8x32xbf16>, vector<32x32xbf16>, vector<8x32xf32> -> vector<8x32xf32>
    %79 = arith.addf %78, %43 : vector<8x32xf32>
    %cst_52 = arith.constant dense<0xFF800000> : vector<32xf32>
    %80 = vector.multi_reduction <maximumf>, %79, %cst_52 [0] : vector<8x32xf32> to vector<32xf32>
    %81 = vector.shape_cast %80 : vector<32xf32> to vector<1x32xf32>
    %82 = arith.truncf %81 : vector<1x32xf32> to vector<1x32xbf16>
    %cst_53 = arith.constant dense<0.000000e+00> : vector<1x1xf32>
    %83 = tpu.matmul %82, %51, %cst_53 {dimension_numbers = #tpu.dot_dimension_numbers<[1], [0], [0], [1], [0, 0, 1, 1], [], []>} : vector<1x32xbf16>, vector<32x1xbf16>, vector<1x1xf32> -> vector<1x1xf32>
    %84 = arith.addf %83, %53 : vector<1x1xf32>
    %85 = arith.negf %84 : vector<1x1xf32>
    %86 = math.exp %85 : vector<1x1xf32>
    %cst_54 = arith.constant 1.000000e+00 : f32
    %87 = vector.broadcast %cst_54 : f32 to vector<1x1xf32>
    %88 = arith.addf %87, %86 : vector<1x1xf32>
    %89 = arith.divf %87, %88 : vector<1x1xf32>
    %90 = arith.mulf %54, %89 : vector<1x1xf32>
    %91 = vector.broadcast %90 : vector<1x1xf32> to vector<8x32xf32>
    %92 = arith.mulf %91, %76 : vector<8x32xf32>
    %93 = arith.addf %55, %92 : vector<8x32xf32>
    %cst_55 = arith.constant 1.000000e+00 : f32
    %94 = vector.broadcast %cst_55 : f32 to vector<1x1xf32>
    %95 = arith.subf %94, %89 : vector<1x1xf32>
    %96 = arith.mulf %54, %95 : vector<1x1xf32>
    %97 = arith.truncf %76 : vector<8x32xf32> to vector<8x32xbf16>
    %cst_56 = arith.constant dense<0.000000e+00> : vector<8x32xf32>
    %98 = tpu.matmul %97, %47, %cst_56 {dimension_numbers = #tpu.dot_dimension_numbers<[1], [0], [0], [1], [0, 0, 1, 1], [], []>} : vector<8x32xbf16>, vector<32x32xbf16>, vector<8x32xf32> -> vector<8x32xf32>
    %99 = vector.broadcast %52 : vector<1x32xf32> to vector<8x32xf32>
    %100 = arith.addf %98, %99 : vector<8x32xf32>
    %cst_57 = arith.constant dense<0.000000e+00> : vector<8x32xf32>
    %101 = tpu.matmul %97, %49, %cst_57 {dimension_numbers = #tpu.dot_dimension_numbers<[1], [0], [0], [1], [0, 0, 1, 1], [], []>} : vector<8x32xbf16>, vector<32x32xbf16>, vector<8x32xf32> -> vector<8x32xf32>
    %102 = vector.shape_cast %101 : vector<8x32xf32> to vector<8x1x32xf32>
    %103 = vector.shape_cast %100 : vector<8x32xf32> to vector<1x8x32xf32>
    %104 = vector.broadcast %102 : vector<8x1x32xf32> to vector<8x8x32xf32>
    %105 = vector.broadcast %103 : vector<1x8x32xf32> to vector<8x8x32xf32>
    %106 = arith.addf %104, %105 : vector<8x8x32xf32>
    %107 = arith.addf %106, %37 : vector<8x8x32xf32>
    %cst_58 = arith.constant 0.000000e+00 : f32
    %108 = vector.broadcast %cst_58 : f32 to vector<8x8x32xf32>
    %109 = arith.maximumf %107, %108 : vector<8x8x32xf32>
    %110 = vector.shape_cast %8 : vector<8x8xf32> to vector<8x8x1xf32>
    %111 = vector.broadcast %110 : vector<8x8x1xf32> to vector<8x8x32xf32>
    %112 = arith.addf %109, %111 : vector<8x8x32xf32>
    %cst_59 = arith.constant dense<0xFF800000> : vector<8x32xf32>
    %113 = vector.multi_reduction <maximumf>, %112, %cst_59 [1] : vector<8x8x32xf32> to vector<8x32xf32>
    %cst_60 = arith.constant 0.000000e+00 : f32
    %114 = vector.shape_cast %12 : vector<8x1xi1> to vector<8x1xi1>
    %115 = vector.broadcast %114 : vector<8x1xi1> to vector<8x32xi1>
    %116 = vector.broadcast %cst_60 : f32 to vector<8x32xf32>
    %117 = arith.select %115, %116, %113 : vector<8x32xi1>, vector<8x32xf32>
    %118 = arith.truncf %117 : vector<8x32xf32> to vector<8x32xbf16>
    %cst_61 = arith.constant dense<0.000000e+00> : vector<8x32xf32>
    %119 = tpu.matmul %118, %45, %cst_61 {dimension_numbers = #tpu.dot_dimension_numbers<[1], [0], [0], [1], [0, 0, 1, 1], [], []>} : vector<8x32xbf16>, vector<32x32xbf16>, vector<8x32xf32> -> vector<8x32xf32>
    %120 = arith.addf %119, %43 : vector<8x32xf32>
    %cst_62 = arith.constant dense<0xFF800000> : vector<32xf32>
    %121 = vector.multi_reduction <maximumf>, %120, %cst_62 [0] : vector<8x32xf32> to vector<32xf32>
    %122 = vector.shape_cast %121 : vector<32xf32> to vector<1x32xf32>
    %123 = arith.truncf %122 : vector<1x32xf32> to vector<1x32xbf16>
    %cst_63 = arith.constant dense<0.000000e+00> : vector<1x1xf32>
    %124 = tpu.matmul %123, %51, %cst_63 {dimension_numbers = #tpu.dot_dimension_numbers<[1], [0], [0], [1], [0, 0, 1, 1], [], []>} : vector<1x32xbf16>, vector<32x1xbf16>, vector<1x1xf32> -> vector<1x1xf32>
    %125 = arith.addf %124, %53 : vector<1x1xf32>
    %126 = arith.negf %125 : vector<1x1xf32>
    %127 = math.exp %126 : vector<1x1xf32>
    %cst_64 = arith.constant 1.000000e+00 : f32
    %128 = vector.broadcast %cst_64 : f32 to vector<1x1xf32>
    %129 = arith.addf %128, %127 : vector<1x1xf32>
    %130 = arith.divf %128, %129 : vector<1x1xf32>
    %131 = arith.mulf %96, %130 : vector<1x1xf32>
    %132 = vector.broadcast %131 : vector<1x1xf32> to vector<8x32xf32>
    %133 = arith.mulf %132, %117 : vector<8x32xf32>
    %134 = arith.addf %93, %133 : vector<8x32xf32>
    %cst_65 = arith.constant 1.000000e+00 : f32
    %135 = vector.broadcast %cst_65 : f32 to vector<1x1xf32>
    %136 = arith.subf %135, %130 : vector<1x1xf32>
    %137 = arith.mulf %96, %136 : vector<1x1xf32>
    %138 = arith.truncf %117 : vector<8x32xf32> to vector<8x32xbf16>
    %cst_66 = arith.constant dense<0.000000e+00> : vector<8x32xf32>
    %139 = tpu.matmul %138, %47, %cst_66 {dimension_numbers = #tpu.dot_dimension_numbers<[1], [0], [0], [1], [0, 0, 1, 1], [], []>} : vector<8x32xbf16>, vector<32x32xbf16>, vector<8x32xf32> -> vector<8x32xf32>
    %140 = vector.broadcast %52 : vector<1x32xf32> to vector<8x32xf32>
    %141 = arith.addf %139, %140 : vector<8x32xf32>
    %cst_67 = arith.constant dense<0.000000e+00> : vector<8x32xf32>
    %142 = tpu.matmul %138, %49, %cst_67 {dimension_numbers = #tpu.dot_dimension_numbers<[1], [0], [0], [1], [0, 0, 1, 1], [], []>} : vector<8x32xbf16>, vector<32x32xbf16>, vector<8x32xf32> -> vector<8x32xf32>
    %143 = vector.shape_cast %142 : vector<8x32xf32> to vector<8x1x32xf32>
    %144 = vector.shape_cast %141 : vector<8x32xf32> to vector<1x8x32xf32>
    %145 = vector.broadcast %143 : vector<8x1x32xf32> to vector<8x8x32xf32>
    %146 = vector.broadcast %144 : vector<1x8x32xf32> to vector<8x8x32xf32>
    %147 = arith.addf %145, %146 : vector<8x8x32xf32>
    %148 = arith.addf %147, %37 : vector<8x8x32xf32>
    %cst_68 = arith.constant 0.000000e+00 : f32
    %149 = vector.broadcast %cst_68 : f32 to vector<8x8x32xf32>
    %150 = arith.maximumf %148, %149 : vector<8x8x32xf32>
    %151 = vector.shape_cast %8 : vector<8x8xf32> to vector<8x8x1xf32>
    %152 = vector.broadcast %151 : vector<8x8x1xf32> to vector<8x8x32xf32>
    %153 = arith.addf %150, %152 : vector<8x8x32xf32>
    %cst_69 = arith.constant dense<0xFF800000> : vector<8x32xf32>
    %154 = vector.multi_reduction <maximumf>, %153, %cst_69 [1] : vector<8x8x32xf32> to vector<8x32xf32>
    %cst_70 = arith.constant 0.000000e+00 : f32
    %155 = vector.shape_cast %12 : vector<8x1xi1> to vector<8x1xi1>
    %156 = vector.broadcast %155 : vector<8x1xi1> to vector<8x32xi1>
    %157 = vector.broadcast %cst_70 : f32 to vector<8x32xf32>
    %158 = arith.select %156, %157, %154 : vector<8x32xi1>, vector<8x32xf32>
    %159 = arith.truncf %158 : vector<8x32xf32> to vector<8x32xbf16>
    %cst_71 = arith.constant dense<0.000000e+00> : vector<8x32xf32>
    %160 = tpu.matmul %159, %45, %cst_71 {dimension_numbers = #tpu.dot_dimension_numbers<[1], [0], [0], [1], [0, 0, 1, 1], [], []>} : vector<8x32xbf16>, vector<32x32xbf16>, vector<8x32xf32> -> vector<8x32xf32>
    %161 = arith.addf %160, %43 : vector<8x32xf32>
    %cst_72 = arith.constant dense<0xFF800000> : vector<32xf32>
    %162 = vector.multi_reduction <maximumf>, %161, %cst_72 [0] : vector<8x32xf32> to vector<32xf32>
    %163 = vector.shape_cast %162 : vector<32xf32> to vector<1x32xf32>
    %164 = arith.truncf %163 : vector<1x32xf32> to vector<1x32xbf16>
    %cst_73 = arith.constant dense<0.000000e+00> : vector<1x1xf32>
    %165 = tpu.matmul %164, %51, %cst_73 {dimension_numbers = #tpu.dot_dimension_numbers<[1], [0], [0], [1], [0, 0, 1, 1], [], []>} : vector<1x32xbf16>, vector<32x1xbf16>, vector<1x1xf32> -> vector<1x1xf32>
    %166 = arith.addf %165, %53 : vector<1x1xf32>
    %167 = arith.negf %166 : vector<1x1xf32>
    %168 = math.exp %167 : vector<1x1xf32>
    %cst_74 = arith.constant 1.000000e+00 : f32
    %169 = vector.broadcast %cst_74 : f32 to vector<1x1xf32>
    %170 = arith.addf %169, %168 : vector<1x1xf32>
    %171 = arith.divf %169, %170 : vector<1x1xf32>
    %172 = arith.mulf %137, %171 : vector<1x1xf32>
    %173 = vector.broadcast %172 : vector<1x1xf32> to vector<8x32xf32>
    %174 = arith.mulf %173, %158 : vector<8x32xf32>
    %175 = arith.addf %134, %174 : vector<8x32xf32>
    %cst_75 = arith.constant 1.000000e+00 : f32
    %176 = vector.broadcast %cst_75 : f32 to vector<1x1xf32>
    %177 = arith.subf %176, %171 : vector<1x1xf32>
    %178 = arith.mulf %137, %177 : vector<1x1xf32>
    %179 = arith.truncf %158 : vector<8x32xf32> to vector<8x32xbf16>
    %cst_76 = arith.constant dense<0.000000e+00> : vector<8x32xf32>
    %180 = tpu.matmul %179, %47, %cst_76 {dimension_numbers = #tpu.dot_dimension_numbers<[1], [0], [0], [1], [0, 0, 1, 1], [], []>} : vector<8x32xbf16>, vector<32x32xbf16>, vector<8x32xf32> -> vector<8x32xf32>
    %181 = vector.broadcast %52 : vector<1x32xf32> to vector<8x32xf32>
    %182 = arith.addf %180, %181 : vector<8x32xf32>
    %cst_77 = arith.constant dense<0.000000e+00> : vector<8x32xf32>
    %183 = tpu.matmul %179, %49, %cst_77 {dimension_numbers = #tpu.dot_dimension_numbers<[1], [0], [0], [1], [0, 0, 1, 1], [], []>} : vector<8x32xbf16>, vector<32x32xbf16>, vector<8x32xf32> -> vector<8x32xf32>
    %184 = vector.shape_cast %183 : vector<8x32xf32> to vector<8x1x32xf32>
    %185 = vector.shape_cast %182 : vector<8x32xf32> to vector<1x8x32xf32>
    %186 = vector.broadcast %184 : vector<8x1x32xf32> to vector<8x8x32xf32>
    %187 = vector.broadcast %185 : vector<1x8x32xf32> to vector<8x8x32xf32>
    %188 = arith.addf %186, %187 : vector<8x8x32xf32>
    %189 = arith.addf %188, %37 : vector<8x8x32xf32>
    %cst_78 = arith.constant 0.000000e+00 : f32
    %190 = vector.broadcast %cst_78 : f32 to vector<8x8x32xf32>
    %191 = arith.maximumf %189, %190 : vector<8x8x32xf32>
    %192 = vector.shape_cast %8 : vector<8x8xf32> to vector<8x8x1xf32>
    %193 = vector.broadcast %192 : vector<8x8x1xf32> to vector<8x8x32xf32>
    %194 = arith.addf %191, %193 : vector<8x8x32xf32>
    %cst_79 = arith.constant dense<0xFF800000> : vector<8x32xf32>
    %195 = vector.multi_reduction <maximumf>, %194, %cst_79 [1] : vector<8x8x32xf32> to vector<8x32xf32>
    %cst_80 = arith.constant 0.000000e+00 : f32
    %196 = vector.shape_cast %12 : vector<8x1xi1> to vector<8x1xi1>
    %197 = vector.broadcast %196 : vector<8x1xi1> to vector<8x32xi1>
    %198 = vector.broadcast %cst_80 : f32 to vector<8x32xf32>
    %199 = arith.select %197, %198, %195 : vector<8x32xi1>, vector<8x32xf32>
    %200 = arith.truncf %199 : vector<8x32xf32> to vector<8x32xbf16>
    %cst_81 = arith.constant dense<0.000000e+00> : vector<8x32xf32>
    %201 = tpu.matmul %200, %45, %cst_81 {dimension_numbers = #tpu.dot_dimension_numbers<[1], [0], [0], [1], [0, 0, 1, 1], [], []>} : vector<8x32xbf16>, vector<32x32xbf16>, vector<8x32xf32> -> vector<8x32xf32>
    %202 = arith.addf %201, %43 : vector<8x32xf32>
    %cst_82 = arith.constant dense<0xFF800000> : vector<32xf32>
    %203 = vector.multi_reduction <maximumf>, %202, %cst_82 [0] : vector<8x32xf32> to vector<32xf32>
    %204 = vector.shape_cast %203 : vector<32xf32> to vector<1x32xf32>
    %205 = arith.truncf %204 : vector<1x32xf32> to vector<1x32xbf16>
    %cst_83 = arith.constant dense<0.000000e+00> : vector<1x1xf32>
    %206 = tpu.matmul %205, %51, %cst_83 {dimension_numbers = #tpu.dot_dimension_numbers<[1], [0], [0], [1], [0, 0, 1, 1], [], []>} : vector<1x32xbf16>, vector<32x1xbf16>, vector<1x1xf32> -> vector<1x1xf32>
    %207 = arith.addf %206, %53 : vector<1x1xf32>
    %208 = arith.negf %207 : vector<1x1xf32>
    %209 = math.exp %208 : vector<1x1xf32>
    %cst_84 = arith.constant 1.000000e+00 : f32
    %210 = vector.broadcast %cst_84 : f32 to vector<1x1xf32>
    %211 = arith.addf %210, %209 : vector<1x1xf32>
    %212 = arith.divf %210, %211 : vector<1x1xf32>
    %213 = arith.mulf %178, %212 : vector<1x1xf32>
    %214 = vector.broadcast %213 : vector<1x1xf32> to vector<8x32xf32>
    %215 = arith.mulf %214, %199 : vector<8x32xf32>
    %216 = arith.addf %175, %215 : vector<8x32xf32>
    %cst_85 = arith.constant 1.000000e+00 : f32
    %217 = vector.broadcast %cst_85 : f32 to vector<1x1xf32>
    %218 = arith.subf %217, %212 : vector<1x1xf32>
    %219 = arith.mulf %178, %218 : vector<1x1xf32>
    %220 = arith.truncf %199 : vector<8x32xf32> to vector<8x32xbf16>
    %cst_86 = arith.constant dense<0.000000e+00> : vector<8x32xf32>
    %221 = tpu.matmul %220, %47, %cst_86 {dimension_numbers = #tpu.dot_dimension_numbers<[1], [0], [0], [1], [0, 0, 1, 1], [], []>} : vector<8x32xbf16>, vector<32x32xbf16>, vector<8x32xf32> -> vector<8x32xf32>
    %222 = vector.broadcast %52 : vector<1x32xf32> to vector<8x32xf32>
    %223 = arith.addf %221, %222 : vector<8x32xf32>
    %cst_87 = arith.constant dense<0.000000e+00> : vector<8x32xf32>
    %224 = tpu.matmul %220, %49, %cst_87 {dimension_numbers = #tpu.dot_dimension_numbers<[1], [0], [0], [1], [0, 0, 1, 1], [], []>} : vector<8x32xbf16>, vector<32x32xbf16>, vector<8x32xf32> -> vector<8x32xf32>
    %225 = vector.shape_cast %224 : vector<8x32xf32> to vector<8x1x32xf32>
    %226 = vector.shape_cast %223 : vector<8x32xf32> to vector<1x8x32xf32>
    %227 = vector.broadcast %225 : vector<8x1x32xf32> to vector<8x8x32xf32>
    %228 = vector.broadcast %226 : vector<1x8x32xf32> to vector<8x8x32xf32>
    %229 = arith.addf %227, %228 : vector<8x8x32xf32>
    %230 = arith.addf %229, %37 : vector<8x8x32xf32>
    %cst_88 = arith.constant 0.000000e+00 : f32
    %231 = vector.broadcast %cst_88 : f32 to vector<8x8x32xf32>
    %232 = arith.maximumf %230, %231 : vector<8x8x32xf32>
    %233 = vector.shape_cast %8 : vector<8x8xf32> to vector<8x8x1xf32>
    %234 = vector.broadcast %233 : vector<8x8x1xf32> to vector<8x8x32xf32>
    %235 = arith.addf %232, %234 : vector<8x8x32xf32>
    %cst_89 = arith.constant dense<0xFF800000> : vector<8x32xf32>
    %236 = vector.multi_reduction <maximumf>, %235, %cst_89 [1] : vector<8x8x32xf32> to vector<8x32xf32>
    %cst_90 = arith.constant 0.000000e+00 : f32
    %237 = vector.shape_cast %12 : vector<8x1xi1> to vector<8x1xi1>
    %238 = vector.broadcast %237 : vector<8x1xi1> to vector<8x32xi1>
    %239 = vector.broadcast %cst_90 : f32 to vector<8x32xf32>
    %240 = arith.select %238, %239, %236 : vector<8x32xi1>, vector<8x32xf32>
    %241 = arith.truncf %240 : vector<8x32xf32> to vector<8x32xbf16>
    %cst_91 = arith.constant dense<0.000000e+00> : vector<8x32xf32>
    %242 = tpu.matmul %241, %45, %cst_91 {dimension_numbers = #tpu.dot_dimension_numbers<[1], [0], [0], [1], [0, 0, 1, 1], [], []>} : vector<8x32xbf16>, vector<32x32xbf16>, vector<8x32xf32> -> vector<8x32xf32>
    %243 = arith.addf %242, %43 : vector<8x32xf32>
    %cst_92 = arith.constant dense<0xFF800000> : vector<32xf32>
    %244 = vector.multi_reduction <maximumf>, %243, %cst_92 [0] : vector<8x32xf32> to vector<32xf32>
    %245 = vector.shape_cast %244 : vector<32xf32> to vector<1x32xf32>
    %246 = arith.truncf %245 : vector<1x32xf32> to vector<1x32xbf16>
    %cst_93 = arith.constant dense<0.000000e+00> : vector<1x1xf32>
    %247 = tpu.matmul %246, %51, %cst_93 {dimension_numbers = #tpu.dot_dimension_numbers<[1], [0], [0], [1], [0, 0, 1, 1], [], []>} : vector<1x32xbf16>, vector<32x1xbf16>, vector<1x1xf32> -> vector<1x1xf32>
    %248 = arith.addf %247, %53 : vector<1x1xf32>
    %249 = arith.negf %248 : vector<1x1xf32>
    %250 = math.exp %249 : vector<1x1xf32>
    %cst_94 = arith.constant 1.000000e+00 : f32
    %251 = vector.broadcast %cst_94 : f32 to vector<1x1xf32>
    %252 = arith.addf %251, %250 : vector<1x1xf32>
    %253 = arith.divf %251, %252 : vector<1x1xf32>
    %254 = arith.mulf %219, %253 : vector<1x1xf32>
    %255 = vector.broadcast %254 : vector<1x1xf32> to vector<8x32xf32>
    %256 = arith.mulf %255, %240 : vector<8x32xf32>
    %257 = arith.addf %216, %256 : vector<8x32xf32>
    %cst_95 = arith.constant 1.000000e+00 : f32
    %258 = vector.broadcast %cst_95 : f32 to vector<1x1xf32>
    %259 = arith.subf %258, %253 : vector<1x1xf32>
    %260 = arith.mulf %219, %259 : vector<1x1xf32>
    %261 = arith.truncf %240 : vector<8x32xf32> to vector<8x32xbf16>
    %cst_96 = arith.constant dense<0.000000e+00> : vector<8x32xf32>
    %262 = tpu.matmul %261, %47, %cst_96 {dimension_numbers = #tpu.dot_dimension_numbers<[1], [0], [0], [1], [0, 0, 1, 1], [], []>} : vector<8x32xbf16>, vector<32x32xbf16>, vector<8x32xf32> -> vector<8x32xf32>
    %263 = vector.broadcast %52 : vector<1x32xf32> to vector<8x32xf32>
    %264 = arith.addf %262, %263 : vector<8x32xf32>
    %cst_97 = arith.constant dense<0.000000e+00> : vector<8x32xf32>
    %265 = tpu.matmul %261, %49, %cst_97 {dimension_numbers = #tpu.dot_dimension_numbers<[1], [0], [0], [1], [0, 0, 1, 1], [], []>} : vector<8x32xbf16>, vector<32x32xbf16>, vector<8x32xf32> -> vector<8x32xf32>
    %266 = vector.shape_cast %265 : vector<8x32xf32> to vector<8x1x32xf32>
    %267 = vector.shape_cast %264 : vector<8x32xf32> to vector<1x8x32xf32>
    %268 = vector.broadcast %266 : vector<8x1x32xf32> to vector<8x8x32xf32>
    %269 = vector.broadcast %267 : vector<1x8x32xf32> to vector<8x8x32xf32>
    %270 = arith.addf %268, %269 : vector<8x8x32xf32>
    %271 = arith.addf %270, %37 : vector<8x8x32xf32>
    %cst_98 = arith.constant 0.000000e+00 : f32
    %272 = vector.broadcast %cst_98 : f32 to vector<8x8x32xf32>
    %273 = arith.maximumf %271, %272 : vector<8x8x32xf32>
    %274 = vector.shape_cast %8 : vector<8x8xf32> to vector<8x8x1xf32>
    %275 = vector.broadcast %274 : vector<8x8x1xf32> to vector<8x8x32xf32>
    %276 = arith.addf %273, %275 : vector<8x8x32xf32>
    %cst_99 = arith.constant dense<0xFF800000> : vector<8x32xf32>
    %277 = vector.multi_reduction <maximumf>, %276, %cst_99 [1] : vector<8x8x32xf32> to vector<8x32xf32>
    %cst_100 = arith.constant 0.000000e+00 : f32
    %278 = vector.shape_cast %12 : vector<8x1xi1> to vector<8x1xi1>
    %279 = vector.broadcast %278 : vector<8x1xi1> to vector<8x32xi1>
    %280 = vector.broadcast %cst_100 : f32 to vector<8x32xf32>
    %281 = arith.select %279, %280, %277 : vector<8x32xi1>, vector<8x32xf32>
    %282 = arith.truncf %281 : vector<8x32xf32> to vector<8x32xbf16>
    %cst_101 = arith.constant dense<0.000000e+00> : vector<8x32xf32>
    %283 = tpu.matmul %282, %45, %cst_101 {dimension_numbers = #tpu.dot_dimension_numbers<[1], [0], [0], [1], [0, 0, 1, 1], [], []>} : vector<8x32xbf16>, vector<32x32xbf16>, vector<8x32xf32> -> vector<8x32xf32>
    %284 = arith.addf %283, %43 : vector<8x32xf32>
    %cst_102 = arith.constant dense<0xFF800000> : vector<32xf32>
    %285 = vector.multi_reduction <maximumf>, %284, %cst_102 [0] : vector<8x32xf32> to vector<32xf32>
    %286 = vector.shape_cast %285 : vector<32xf32> to vector<1x32xf32>
    %287 = arith.truncf %286 : vector<1x32xf32> to vector<1x32xbf16>
    %cst_103 = arith.constant dense<0.000000e+00> : vector<1x1xf32>
    %288 = tpu.matmul %287, %51, %cst_103 {dimension_numbers = #tpu.dot_dimension_numbers<[1], [0], [0], [1], [0, 0, 1, 1], [], []>} : vector<1x32xbf16>, vector<32x1xbf16>, vector<1x1xf32> -> vector<1x1xf32>
    %289 = arith.addf %288, %53 : vector<1x1xf32>
    %290 = arith.negf %289 : vector<1x1xf32>
    %291 = math.exp %290 : vector<1x1xf32>
    %cst_104 = arith.constant 1.000000e+00 : f32
    %292 = vector.broadcast %cst_104 : f32 to vector<1x1xf32>
    %293 = arith.addf %292, %291 : vector<1x1xf32>
    %294 = arith.divf %292, %293 : vector<1x1xf32>
    %295 = arith.mulf %260, %294 : vector<1x1xf32>
    %296 = vector.broadcast %295 : vector<1x1xf32> to vector<8x32xf32>
    %297 = arith.mulf %296, %281 : vector<8x32xf32>
    %298 = arith.addf %257, %297 : vector<8x32xf32>
    %cst_105 = arith.constant 1.000000e+00 : f32
    %299 = vector.broadcast %cst_105 : f32 to vector<1x1xf32>
    %300 = arith.subf %299, %294 : vector<1x1xf32>
    %301 = arith.mulf %260, %300 : vector<1x1xf32>
    %302 = arith.truncf %281 : vector<8x32xf32> to vector<8x32xbf16>
    %cst_106 = arith.constant dense<0.000000e+00> : vector<8x32xf32>
    %303 = tpu.matmul %302, %47, %cst_106 {dimension_numbers = #tpu.dot_dimension_numbers<[1], [0], [0], [1], [0, 0, 1, 1], [], []>} : vector<8x32xbf16>, vector<32x32xbf16>, vector<8x32xf32> -> vector<8x32xf32>
    %304 = vector.broadcast %52 : vector<1x32xf32> to vector<8x32xf32>
    %305 = arith.addf %303, %304 : vector<8x32xf32>
    %cst_107 = arith.constant dense<0.000000e+00> : vector<8x32xf32>
    %306 = tpu.matmul %302, %49, %cst_107 {dimension_numbers = #tpu.dot_dimension_numbers<[1], [0], [0], [1], [0, 0, 1, 1], [], []>} : vector<8x32xbf16>, vector<32x32xbf16>, vector<8x32xf32> -> vector<8x32xf32>
    %307 = vector.shape_cast %306 : vector<8x32xf32> to vector<8x1x32xf32>
    %308 = vector.shape_cast %305 : vector<8x32xf32> to vector<1x8x32xf32>
    %309 = vector.broadcast %307 : vector<8x1x32xf32> to vector<8x8x32xf32>
    %310 = vector.broadcast %308 : vector<1x8x32xf32> to vector<8x8x32xf32>
    %311 = arith.addf %309, %310 : vector<8x8x32xf32>
    %312 = arith.addf %311, %37 : vector<8x8x32xf32>
    %cst_108 = arith.constant 0.000000e+00 : f32
    %313 = vector.broadcast %cst_108 : f32 to vector<8x8x32xf32>
    %314 = arith.maximumf %312, %313 : vector<8x8x32xf32>
    %315 = vector.shape_cast %8 : vector<8x8xf32> to vector<8x8x1xf32>
    %316 = vector.broadcast %315 : vector<8x8x1xf32> to vector<8x8x32xf32>
    %317 = arith.addf %314, %316 : vector<8x8x32xf32>
    %cst_109 = arith.constant dense<0xFF800000> : vector<8x32xf32>
    %318 = vector.multi_reduction <maximumf>, %317, %cst_109 [1] : vector<8x8x32xf32> to vector<8x32xf32>
    %cst_110 = arith.constant 0.000000e+00 : f32
    %319 = vector.shape_cast %12 : vector<8x1xi1> to vector<8x1xi1>
    %320 = vector.broadcast %319 : vector<8x1xi1> to vector<8x32xi1>
    %321 = vector.broadcast %cst_110 : f32 to vector<8x32xf32>
    %322 = arith.select %320, %321, %318 : vector<8x32xi1>, vector<8x32xf32>
    %323 = arith.truncf %322 : vector<8x32xf32> to vector<8x32xbf16>
    %cst_111 = arith.constant dense<0.000000e+00> : vector<8x32xf32>
    %324 = tpu.matmul %323, %45, %cst_111 {dimension_numbers = #tpu.dot_dimension_numbers<[1], [0], [0], [1], [0, 0, 1, 1], [], []>} : vector<8x32xbf16>, vector<32x32xbf16>, vector<8x32xf32> -> vector<8x32xf32>
    %325 = arith.addf %324, %43 : vector<8x32xf32>
    %cst_112 = arith.constant dense<0xFF800000> : vector<32xf32>
    %326 = vector.multi_reduction <maximumf>, %325, %cst_112 [0] : vector<8x32xf32> to vector<32xf32>
    %327 = vector.shape_cast %326 : vector<32xf32> to vector<1x32xf32>
    %328 = arith.truncf %327 : vector<1x32xf32> to vector<1x32xbf16>
    %cst_113 = arith.constant dense<0.000000e+00> : vector<1x1xf32>
    %329 = tpu.matmul %328, %51, %cst_113 {dimension_numbers = #tpu.dot_dimension_numbers<[1], [0], [0], [1], [0, 0, 1, 1], [], []>} : vector<1x32xbf16>, vector<32x1xbf16>, vector<1x1xf32> -> vector<1x1xf32>
    %330 = arith.addf %329, %53 : vector<1x1xf32>
    %331 = arith.negf %330 : vector<1x1xf32>
    %332 = math.exp %331 : vector<1x1xf32>
    %cst_114 = arith.constant 1.000000e+00 : f32
    %333 = vector.broadcast %cst_114 : f32 to vector<1x1xf32>
    %334 = arith.addf %333, %332 : vector<1x1xf32>
    %335 = arith.divf %333, %334 : vector<1x1xf32>
    %336 = arith.mulf %301, %335 : vector<1x1xf32>
    %337 = vector.broadcast %336 : vector<1x1xf32> to vector<8x32xf32>
    %338 = arith.mulf %337, %322 : vector<8x32xf32>
    %339 = arith.addf %298, %338 : vector<8x32xf32>
    %cst_115 = arith.constant 1.000000e+00 : f32
    %340 = vector.broadcast %cst_115 : f32 to vector<1x1xf32>
    %341 = arith.subf %340, %335 : vector<1x1xf32>
    %342 = arith.mulf %301, %341 : vector<1x1xf32>
    %343 = arith.truncf %322 : vector<8x32xf32> to vector<8x32xbf16>
    %cst_116 = arith.constant dense<0.000000e+00> : vector<8x32xf32>
    %344 = tpu.matmul %343, %47, %cst_116 {dimension_numbers = #tpu.dot_dimension_numbers<[1], [0], [0], [1], [0, 0, 1, 1], [], []>} : vector<8x32xbf16>, vector<32x32xbf16>, vector<8x32xf32> -> vector<8x32xf32>
    %345 = vector.broadcast %52 : vector<1x32xf32> to vector<8x32xf32>
    %346 = arith.addf %344, %345 : vector<8x32xf32>
    %cst_117 = arith.constant dense<0.000000e+00> : vector<8x32xf32>
    %347 = tpu.matmul %343, %49, %cst_117 {dimension_numbers = #tpu.dot_dimension_numbers<[1], [0], [0], [1], [0, 0, 1, 1], [], []>} : vector<8x32xbf16>, vector<32x32xbf16>, vector<8x32xf32> -> vector<8x32xf32>
    %348 = vector.shape_cast %347 : vector<8x32xf32> to vector<8x1x32xf32>
    %349 = vector.shape_cast %346 : vector<8x32xf32> to vector<1x8x32xf32>
    %350 = vector.broadcast %348 : vector<8x1x32xf32> to vector<8x8x32xf32>
    %351 = vector.broadcast %349 : vector<1x8x32xf32> to vector<8x8x32xf32>
    %352 = arith.addf %350, %351 : vector<8x8x32xf32>
    %353 = arith.addf %352, %37 : vector<8x8x32xf32>
    %cst_118 = arith.constant 0.000000e+00 : f32
    %354 = vector.broadcast %cst_118 : f32 to vector<8x8x32xf32>
    %355 = arith.maximumf %353, %354 : vector<8x8x32xf32>
    %356 = vector.shape_cast %8 : vector<8x8xf32> to vector<8x8x1xf32>
    %357 = vector.broadcast %356 : vector<8x8x1xf32> to vector<8x8x32xf32>
    %358 = arith.addf %355, %357 : vector<8x8x32xf32>
    %cst_119 = arith.constant dense<0xFF800000> : vector<8x32xf32>
    %359 = vector.multi_reduction <maximumf>, %358, %cst_119 [1] : vector<8x8x32xf32> to vector<8x32xf32>
    %cst_120 = arith.constant 0.000000e+00 : f32
    %360 = vector.shape_cast %12 : vector<8x1xi1> to vector<8x1xi1>
    %361 = vector.broadcast %360 : vector<8x1xi1> to vector<8x32xi1>
    %362 = vector.broadcast %cst_120 : f32 to vector<8x32xf32>
    %363 = arith.select %361, %362, %359 : vector<8x32xi1>, vector<8x32xf32>
    %364 = arith.truncf %363 : vector<8x32xf32> to vector<8x32xbf16>
    %cst_121 = arith.constant dense<0.000000e+00> : vector<8x32xf32>
    %365 = tpu.matmul %364, %45, %cst_121 {dimension_numbers = #tpu.dot_dimension_numbers<[1], [0], [0], [1], [0, 0, 1, 1], [], []>} : vector<8x32xbf16>, vector<32x32xbf16>, vector<8x32xf32> -> vector<8x32xf32>
    %366 = arith.addf %365, %43 : vector<8x32xf32>
    %cst_122 = arith.constant dense<0xFF800000> : vector<32xf32>
    %367 = vector.multi_reduction <maximumf>, %366, %cst_122 [0] : vector<8x32xf32> to vector<32xf32>
    %368 = vector.shape_cast %367 : vector<32xf32> to vector<1x32xf32>
    %369 = arith.truncf %368 : vector<1x32xf32> to vector<1x32xbf16>
    %cst_123 = arith.constant dense<0.000000e+00> : vector<1x1xf32>
    %370 = tpu.matmul %369, %51, %cst_123 {dimension_numbers = #tpu.dot_dimension_numbers<[1], [0], [0], [1], [0, 0, 1, 1], [], []>} : vector<1x32xbf16>, vector<32x1xbf16>, vector<1x1xf32> -> vector<1x1xf32>
    %371 = arith.addf %370, %53 : vector<1x1xf32>
    %372 = arith.negf %371 : vector<1x1xf32>
    %373 = math.exp %372 : vector<1x1xf32>
    %cst_124 = arith.constant 1.000000e+00 : f32
    %374 = vector.broadcast %cst_124 : f32 to vector<1x1xf32>
    %375 = arith.addf %374, %373 : vector<1x1xf32>
    %376 = arith.divf %374, %375 : vector<1x1xf32>
    %377 = arith.mulf %342, %376 : vector<1x1xf32>
    %378 = vector.broadcast %377 : vector<1x1xf32> to vector<8x32xf32>
    %379 = arith.mulf %378, %363 : vector<8x32xf32>
    %380 = arith.addf %339, %379 : vector<8x32xf32>
    %cst_125 = arith.constant 1.000000e+00 : f32
    %381 = vector.broadcast %cst_125 : f32 to vector<1x1xf32>
    %382 = arith.subf %381, %376 : vector<1x1xf32>
    %383 = arith.mulf %342, %382 : vector<1x1xf32>
    %384 = arith.truncf %363 : vector<8x32xf32> to vector<8x32xbf16>
    %cst_126 = arith.constant dense<0.000000e+00> : vector<8x32xf32>
    %385 = tpu.matmul %384, %47, %cst_126 {dimension_numbers = #tpu.dot_dimension_numbers<[1], [0], [0], [1], [0, 0, 1, 1], [], []>} : vector<8x32xbf16>, vector<32x32xbf16>, vector<8x32xf32> -> vector<8x32xf32>
    %386 = vector.broadcast %52 : vector<1x32xf32> to vector<8x32xf32>
    %387 = arith.addf %385, %386 : vector<8x32xf32>
    %cst_127 = arith.constant dense<0.000000e+00> : vector<8x32xf32>
    %388 = tpu.matmul %384, %49, %cst_127 {dimension_numbers = #tpu.dot_dimension_numbers<[1], [0], [0], [1], [0, 0, 1, 1], [], []>} : vector<8x32xbf16>, vector<32x32xbf16>, vector<8x32xf32> -> vector<8x32xf32>
    %389 = vector.shape_cast %388 : vector<8x32xf32> to vector<8x1x32xf32>
    %390 = vector.shape_cast %387 : vector<8x32xf32> to vector<1x8x32xf32>
    %391 = vector.broadcast %389 : vector<8x1x32xf32> to vector<8x8x32xf32>
    %392 = vector.broadcast %390 : vector<1x8x32xf32> to vector<8x8x32xf32>
    %393 = arith.addf %391, %392 : vector<8x8x32xf32>
    %394 = arith.addf %393, %37 : vector<8x8x32xf32>
    %cst_128 = arith.constant 0.000000e+00 : f32
    %395 = vector.broadcast %cst_128 : f32 to vector<8x8x32xf32>
    %396 = arith.maximumf %394, %395 : vector<8x8x32xf32>
    %397 = vector.shape_cast %8 : vector<8x8xf32> to vector<8x8x1xf32>
    %398 = vector.broadcast %397 : vector<8x8x1xf32> to vector<8x8x32xf32>
    %399 = arith.addf %396, %398 : vector<8x8x32xf32>
    %cst_129 = arith.constant dense<0xFF800000> : vector<8x32xf32>
    %400 = vector.multi_reduction <maximumf>, %399, %cst_129 [1] : vector<8x8x32xf32> to vector<8x32xf32>
    %cst_130 = arith.constant 0.000000e+00 : f32
    %401 = vector.shape_cast %12 : vector<8x1xi1> to vector<8x1xi1>
    %402 = vector.broadcast %401 : vector<8x1xi1> to vector<8x32xi1>
    %403 = vector.broadcast %cst_130 : f32 to vector<8x32xf32>
    %404 = arith.select %402, %403, %400 : vector<8x32xi1>, vector<8x32xf32>
    %405 = arith.truncf %404 : vector<8x32xf32> to vector<8x32xbf16>
    %cst_131 = arith.constant dense<0.000000e+00> : vector<8x32xf32>
    %406 = tpu.matmul %405, %45, %cst_131 {dimension_numbers = #tpu.dot_dimension_numbers<[1], [0], [0], [1], [0, 0, 1, 1], [], []>} : vector<8x32xbf16>, vector<32x32xbf16>, vector<8x32xf32> -> vector<8x32xf32>
    %407 = arith.addf %406, %43 : vector<8x32xf32>
    %cst_132 = arith.constant dense<0xFF800000> : vector<32xf32>
    %408 = vector.multi_reduction <maximumf>, %407, %cst_132 [0] : vector<8x32xf32> to vector<32xf32>
    %409 = vector.shape_cast %408 : vector<32xf32> to vector<1x32xf32>
    %410 = arith.truncf %409 : vector<1x32xf32> to vector<1x32xbf16>
    %cst_133 = arith.constant dense<0.000000e+00> : vector<1x1xf32>
    %411 = tpu.matmul %410, %51, %cst_133 {dimension_numbers = #tpu.dot_dimension_numbers<[1], [0], [0], [1], [0, 0, 1, 1], [], []>} : vector<1x32xbf16>, vector<32x1xbf16>, vector<1x1xf32> -> vector<1x1xf32>
    %412 = arith.addf %411, %53 : vector<1x1xf32>
    %413 = arith.negf %412 : vector<1x1xf32>
    %414 = math.exp %413 : vector<1x1xf32>
    %cst_134 = arith.constant 1.000000e+00 : f32
    %415 = vector.broadcast %cst_134 : f32 to vector<1x1xf32>
    %416 = arith.addf %415, %414 : vector<1x1xf32>
    %417 = arith.divf %415, %416 : vector<1x1xf32>
    %418 = arith.mulf %383, %417 : vector<1x1xf32>
    %419 = vector.broadcast %418 : vector<1x1xf32> to vector<8x32xf32>
    %420 = arith.mulf %419, %404 : vector<8x32xf32>
    %421 = arith.addf %380, %420 : vector<8x32xf32>
    %cst_135 = arith.constant 1.000000e+00 : f32
    %422 = vector.broadcast %cst_135 : f32 to vector<1x1xf32>
    %423 = arith.subf %422, %417 : vector<1x1xf32>
    %424 = arith.mulf %383, %423 : vector<1x1xf32>
    %425 = arith.truncf %404 : vector<8x32xf32> to vector<8x32xbf16>
    %cst_136 = arith.constant dense<0.000000e+00> : vector<8x32xf32>
    %426 = tpu.matmul %425, %47, %cst_136 {dimension_numbers = #tpu.dot_dimension_numbers<[1], [0], [0], [1], [0, 0, 1, 1], [], []>} : vector<8x32xbf16>, vector<32x32xbf16>, vector<8x32xf32> -> vector<8x32xf32>
    %427 = vector.broadcast %52 : vector<1x32xf32> to vector<8x32xf32>
    %428 = arith.addf %426, %427 : vector<8x32xf32>
    %cst_137 = arith.constant dense<0.000000e+00> : vector<8x32xf32>
    %429 = tpu.matmul %425, %49, %cst_137 {dimension_numbers = #tpu.dot_dimension_numbers<[1], [0], [0], [1], [0, 0, 1, 1], [], []>} : vector<8x32xbf16>, vector<32x32xbf16>, vector<8x32xf32> -> vector<8x32xf32>
    %430 = vector.shape_cast %429 : vector<8x32xf32> to vector<8x1x32xf32>
    %431 = vector.shape_cast %428 : vector<8x32xf32> to vector<1x8x32xf32>
    %432 = vector.broadcast %430 : vector<8x1x32xf32> to vector<8x8x32xf32>
    %433 = vector.broadcast %431 : vector<1x8x32xf32> to vector<8x8x32xf32>
    %434 = arith.addf %432, %433 : vector<8x8x32xf32>
    %435 = arith.addf %434, %37 : vector<8x8x32xf32>
    %cst_138 = arith.constant 0.000000e+00 : f32
    %436 = vector.broadcast %cst_138 : f32 to vector<8x8x32xf32>
    %437 = arith.maximumf %435, %436 : vector<8x8x32xf32>
    %438 = vector.shape_cast %8 : vector<8x8xf32> to vector<8x8x1xf32>
    %439 = vector.broadcast %438 : vector<8x8x1xf32> to vector<8x8x32xf32>
    %440 = arith.addf %437, %439 : vector<8x8x32xf32>
    %cst_139 = arith.constant dense<0xFF800000> : vector<8x32xf32>
    %441 = vector.multi_reduction <maximumf>, %440, %cst_139 [1] : vector<8x8x32xf32> to vector<8x32xf32>
    %cst_140 = arith.constant 0.000000e+00 : f32
    %442 = vector.shape_cast %12 : vector<8x1xi1> to vector<8x1xi1>
    %443 = vector.broadcast %442 : vector<8x1xi1> to vector<8x32xi1>
    %444 = vector.broadcast %cst_140 : f32 to vector<8x32xf32>
    %445 = arith.select %443, %444, %441 : vector<8x32xi1>, vector<8x32xf32>
    %446 = arith.truncf %445 : vector<8x32xf32> to vector<8x32xbf16>
    %cst_141 = arith.constant dense<0.000000e+00> : vector<8x32xf32>
    %447 = tpu.matmul %446, %45, %cst_141 {dimension_numbers = #tpu.dot_dimension_numbers<[1], [0], [0], [1], [0, 0, 1, 1], [], []>} : vector<8x32xbf16>, vector<32x32xbf16>, vector<8x32xf32> -> vector<8x32xf32>
    %448 = arith.addf %447, %43 : vector<8x32xf32>
    %cst_142 = arith.constant dense<0xFF800000> : vector<32xf32>
    %449 = vector.multi_reduction <maximumf>, %448, %cst_142 [0] : vector<8x32xf32> to vector<32xf32>
    %450 = vector.shape_cast %449 : vector<32xf32> to vector<1x32xf32>
    %451 = arith.truncf %450 : vector<1x32xf32> to vector<1x32xbf16>
    %cst_143 = arith.constant dense<0.000000e+00> : vector<1x1xf32>
    %452 = tpu.matmul %451, %51, %cst_143 {dimension_numbers = #tpu.dot_dimension_numbers<[1], [0], [0], [1], [0, 0, 1, 1], [], []>} : vector<1x32xbf16>, vector<32x1xbf16>, vector<1x1xf32> -> vector<1x1xf32>
    %453 = arith.addf %452, %53 : vector<1x1xf32>
    %454 = arith.negf %453 : vector<1x1xf32>
    %455 = math.exp %454 : vector<1x1xf32>
    %cst_144 = arith.constant 1.000000e+00 : f32
    %456 = vector.broadcast %cst_144 : f32 to vector<1x1xf32>
    %457 = arith.addf %456, %455 : vector<1x1xf32>
    %458 = arith.divf %456, %457 : vector<1x1xf32>
    %459 = arith.mulf %424, %458 : vector<1x1xf32>
    %460 = vector.broadcast %459 : vector<1x1xf32> to vector<8x32xf32>
    %461 = arith.mulf %460, %445 : vector<8x32xf32>
    %462 = arith.addf %421, %461 : vector<8x32xf32>
    %463 = arith.truncf %462 : vector<8x32xf32> to vector<8x32xbf16>
    %cst_145 = arith.constant dense<0.000000e+00> : vector<8x32xf32>
    %464 = tpu.matmul %463, %45, %cst_145 {dimension_numbers = #tpu.dot_dimension_numbers<[1], [0], [0], [1], [0, 0, 1, 1], [], []>} : vector<8x32xbf16>, vector<32x32xbf16>, vector<8x32xf32> -> vector<8x32xf32>
    %465 = arith.addf %464, %43 : vector<8x32xf32>
    %cst_146 = arith.constant dense<0xFF800000> : vector<32xf32>
    %466 = vector.multi_reduction <maximumf>, %465, %cst_146 [0] : vector<8x32xf32> to vector<32xf32>
    %467 = vector.shape_cast %466 : vector<32xf32> to vector<1x32xf32>
    %468 = arith.truncf %467 : vector<1x32xf32> to vector<1x32xbf16>
    %c0_147 = arith.constant 0 : index
    %c0_148 = arith.constant 0 : index
    %469 = vector.load %arg17[%c0_147, %c0_148] : memref<32x2xf32, #tpu.memory_space<vmem>>, vector<32x2xf32>
    %470 = arith.truncf %469 : vector<32x2xf32> to vector<32x2xbf16>
    %cst_149 = arith.constant dense<0.000000e+00> : vector<1x2xf32>
    %471 = tpu.matmul %468, %470, %cst_149 {dimension_numbers = #tpu.dot_dimension_numbers<[1], [0], [0], [1], [0, 0, 1, 1], [], []>} : vector<1x32xbf16>, vector<32x2xbf16>, vector<1x2xf32> -> vector<1x2xf32>
    %c0_150 = arith.constant 0 : index
    %c0_151 = arith.constant 0 : index
    %472 = vector.load %arg18[%c0_150, %c0_151] : memref<1x2xf32, #tpu.memory_space<vmem>>, vector<1x2xf32>
    %473 = arith.addf %471, %472 : vector<1x2xf32>
    %c0_152 = arith.constant 0 : index
    %c0_153 = arith.constant 0 : index
    %c0_154 = arith.constant 0 : index
    %474 = vector.load %arg19[%c0_152, %c0_153, %c0_154] : memref<1x1x2xf32, #tpu.memory_space<vmem>>, vector<1x1x2xf32>
    %475 = vector.shape_cast %474 : vector<1x1x2xf32> to vector<1x2xf32>
    %476 = vector.shape_cast %473 : vector<1x2xf32> to vector<1x1x2xf32>
    tpu.vector_store %arg19[%c0_152, %c0_153, %c0_154], %476 {strides = array<i32>} : memref<1x1x2xf32, #tpu.memory_space<vmem>>, vector<1x1x2xf32>,
    return
  }
  func.func @transform_0(%arg0: i32) -> (i32, i32, i32) {
    %c0_i32 = arith.constant 0 : i32
    %c0_i32_0 = arith.constant 0 : i32
    %c0_i32_1 = arith.constant 0 : i32
    return %arg0, %c0_i32, %c0_i32_0 : i32, i32, i32
  }
  func.func @transform_1(%arg0: i32) -> (i32, i32, i32) {
    %c0_i32 = arith.constant 0 : i32
    %c0_i32_0 = arith.constant 0 : i32
    %c0_i32_1 = arith.constant 0 : i32
    return %arg0, %c0_i32, %c0_i32_0 : i32, i32, i32
  }
  func.func @transform_2(%arg0: i32) -> (i32, i32, i32) {
    %c0_i32 = arith.constant 0 : i32
    %c0_i32_0 = arith.constant 0 : i32
    %c0_i32_1 = arith.constant 0 : i32
    return %arg0, %c0_i32, %c0_i32_0 : i32, i32, i32
  }
  func.func @transform_3(%arg0: i32) -> (i32, i32) {
    %c0_i32 = arith.constant 0 : i32
    %c0_i32_0 = arith.constant 0 : i32
    %c0_i32_1 = arith.constant 0 : i32
    return %c0_i32, %c0_i32_0 : i32, i32
  }
  func.func @transform_4(%arg0: i32) -> (i32, i32) {
    %c0_i32 = arith.constant 0 : i32
    %c0_i32_0 = arith.constant 0 : i32
    %c0_i32_1 = arith.constant 0 : i32
    return %c0_i32, %c0_i32_0 : i32, i32
  }
  func.func @transform_5(%arg0: i32) -> (i32, i32) {
    %c0_i32 = arith.constant 0 : i32
    %c0_i32_0 = arith.constant 0 : i32
    %c0_i32_1 = arith.constant 0 : i32
    return %c0_i32, %c0_i32_0 : i32, i32
  }
  func.func @transform_6(%arg0: i32) -> (i32, i32) {
    %c0_i32 = arith.constant 0 : i32
    %c0_i32_0 = arith.constant 0 : i32
    %c0_i32_1 = arith.constant 0 : i32
    return %c0_i32, %c0_i32_0 : i32, i32
  }
  func.func @transform_7(%arg0: i32) -> (i32, i32) {
    %c0_i32 = arith.constant 0 : i32
    %c0_i32_0 = arith.constant 0 : i32
    %c0_i32_1 = arith.constant 0 : i32
    return %c0_i32, %c0_i32_0 : i32, i32
  }
  func.func @transform_8(%arg0: i32) -> (i32, i32) {
    %c0_i32 = arith.constant 0 : i32
    %c0_i32_0 = arith.constant 0 : i32
    %c0_i32_1 = arith.constant 0 : i32
    return %c0_i32, %c0_i32_0 : i32, i32
  }
  func.func @transform_9(%arg0: i32) -> (i32, i32) {
    %c0_i32 = arith.constant 0 : i32
    %c0_i32_0 = arith.constant 0 : i32
    %c0_i32_1 = arith.constant 0 : i32
    return %c0_i32, %c0_i32_0 : i32, i32
  }
  func.func @transform_10(%arg0: i32) -> (i32, i32) {
    %c0_i32 = arith.constant 0 : i32
    %c0_i32_0 = arith.constant 0 : i32
    %c0_i32_1 = arith.constant 0 : i32
    return %c0_i32, %c0_i32_0 : i32, i32
  }
  func.func @transform_11(%arg0: i32) -> (i32, i32) {
    %c0_i32 = arith.constant 0 : i32
    %c0_i32_0 = arith.constant 0 : i32
    %c0_i32_1 = arith.constant 0 : i32
    return %c0_i32, %c0_i32_0 : i32, i32
  }
  func.func @transform_12(%arg0: i32) -> (i32, i32) {
    %c0_i32 = arith.constant 0 : i32
    %c0_i32_0 = arith.constant 0 : i32
    %c0_i32_1 = arith.constant 0 : i32
    return %c0_i32, %c0_i32_0 : i32, i32
  }
  func.func @transform_13(%arg0: i32) -> (i32, i32) {
    %c0_i32 = arith.constant 0 : i32
    %c0_i32_0 = arith.constant 0 : i32
    %c0_i32_1 = arith.constant 0 : i32
    return %c0_i32, %c0_i32_0 : i32, i32
  }
  func.func @transform_14(%arg0: i32) -> (i32, i32) {
    %c0_i32 = arith.constant 0 : i32
    %c0_i32_0 = arith.constant 0 : i32
    %c0_i32_1 = arith.constant 0 : i32
    return %c0_i32, %c0_i32_0 : i32, i32
  }
  func.func @transform_15(%arg0: i32) -> (i32, i32) {
    %c0_i32 = arith.constant 0 : i32
    %c0_i32_0 = arith.constant 0 : i32
    %c0_i32_1 = arith.constant 0 : i32
    return %c0_i32, %c0_i32_0 : i32, i32
  }
  func.func @transform_16(%arg0: i32) -> (i32, i32) {
    %c0_i32 = arith.constant 0 : i32
    %c0_i32_0 = arith.constant 0 : i32
    %c0_i32_1 = arith.constant 0 : i32
    return %c0_i32, %c0_i32_0 : i32, i32
  }
  func.func @transform_17(%arg0: i32) -> (i32, i32) {
    %c0_i32 = arith.constant 0 : i32
    %c0_i32_0 = arith.constant 0 : i32
    %c0_i32_1 = arith.constant 0 : i32
    return %c0_i32, %c0_i32_0 : i32, i32
  }
  func.func @transform_18(%arg0: i32) -> (i32, i32, i32) {
    %c0_i32 = arith.constant 0 : i32
    %c0_i32_0 = arith.constant 0 : i32
    %c0_i32_1 = arith.constant 0 : i32
    return %arg0, %c0_i32, %c0_i32_0 : i32, i32, i32
  }
}

</mosaic_0001>

<bundles_post_ra>
// kernel: tpu_custom_call.1
= control target key start
LH: loop header
LB: loop body
LE: loop exit
PB: predicated region body
PF: predicated region fallthrough
CT: control target
= control target key end

     0   :  { %s5776_s29 = smov 0   ;;  %s6906_s0 = inlined_call_operand.vmem [shape: f32[4,8,4], index: 0, kind: input, shape index: {}]   ;;  %s6907_s1 = inlined_call_operand.vmem [shape: f32[4,8,8], index: 1, kind: input, shape index: {}]   ;;  %s6908_s2 = inlined_call_operand.vmem [shape: f32[4,64,4], index: 2, kind: input, shape index: {}]   ;;  %s6909_s3 = inlined_call_operand.vmem [shape: f32[4,18], index: 3, kind: input, shape index: {}]   ;;  %s6910_s4 = inlined_call_operand.vmem [shape: f32[1,18], index: 4, kind: input, shape index: {}]   ;;  %s6911_s5 = inlined_call_operand.vmem [shape: f32[18,32], index: 5, kind: input, shape index: {}]   ;;  %s6912_s6 = inlined_call_operand.vmem [shape: f32[1,32], index: 6, kind: input, shape index: {}]   ;;  %s6913_s7 = inlined_call_operand.vmem [shape: f32[32,32], index: 7, kind: input, shape index: {}]   ;;  %s6914_s8 = inlined_call_operand.vmem [shape: f32[32,32], index: 8, kind: input, shape index: {}]   ;;  %s6915_s9 = inlined_call_operand.vmem [shape: f32[4,32], index: 9, kind: input, shape index: {}]   ;;  %s6916_s10 = inlined_call_operand.vmem [shape: f32[1,32], index: 10, kind: input, shape index: {}]   ;;  %s6917_s11 = inlined_call_operand.vmem [shape: f32[32,32], index: 11, kind: input, shape index: {}]   ;;  %s6918_s12 = inlined_call_operand.vmem [shape: f32[4,32], index: 12, kind: input, shape index: {}]   ;;  %s6919_s13 = inlined_call_operand.vmem [shape: f32[1,32], index: 13, kind: input, shape index: {}]   ;;  %s6920_s14 = inlined_call_operand.vmem [shape: f32[32,1], index: 14, kind: input, shape index: {}]   ;;  %s6921_s15 = inlined_call_operand.<no memory space> [shape: f32[1,1], index: 15, kind: input, shape index: {}]   ;;  %s6922_s16 = inlined_call_operand.vmem [shape: f32[32,2], index: 16, kind: input, shape index: {}]   ;;  %s6923_s17 = inlined_call_operand.vmem [shape: f32[1,2], index: 17, kind: input, shape index: {}]   ;;  %s6924_s18 = inlined_call_operand.vmem [shape: f32[4,1,2], index: 18, kind: output, shape index: {}]  }
   0x1   :  { %6942 = sst [smem:[#allocation14_spill]] %s6906_s0  ;;  %v23_v0 = vstv %s6921_s15 }
   0x2   :  { %6943 = sst [smem:[#allocation15_spill]] %s6907_s1  ;;  %24 = vst [vmem:[#allocation2] sm:$0x1] %v23_v0 }
   0x3   :  { %6944 = sst [smem:[#allocation16_spill]] %s6908_s2 }
   0x4 LB: > { %s5008_s30 = sadd.s32 4294967295, %s5672_s29   ;;  %p5012_p0 = scmp.ge.s32.totalorder %s5672_s29, 1  ;;  %s5672_s29 = sphi %s5776_s29, %s30_s29  }
   0x5   : > { %p532_p1 = scmp.lt.s32.totalorder %s5672_s29, 5 }
   0x7   : > { %p533_p2 = pnand %p5012_p0, %p532_p1 }
   0x9   : > { %536 = sbr.rel (%p533_p2) target bundleno = 6097 (0x17d1), region = 92 }
  0x10   : > { %v619_v1 = vld [vmem:[%s6909_s3] sm:$0xf]  ;;  %vm632_vm0 = vcmask 1041408   ;;  %p592_p3 = scmp.lt.s32.totalorder %s5008_s30, 3  ;;  %v6925_v2 = vmov 0.0   ;;  %vm5675_vm1 = vmmov 0   ;;  %v1007_v52 = vlaneseq }
  0x11   : > { %5221 = vmatprep.subr.bf16.mxu0 %v6925_v2  ;;  %v620_v3 = vpack.c.bf16 %v619_v1, %v619_v1  ;;  %5223 = vmatprep.mubr.msk.bf16.mxu0 %vm5675_vm1, %v6925_v2  ;;  %s6945_s21 = sld [smem:[#allocation14_spill]]  ;;  %vm628_vm2 = vcmask 31744   ;;  %v678_v7 = vld [vmem:[%s6911_s5] sm:$0xff]  ;;  %v679_v8 = vld [vmem:[%s6911_s5 + $0x8] sm:$0xff]  ;;  %v680_v10 = vld [vmem:[%s6911_s5 + $0x10] sm:$0x3] }
  0x12   : > { %s6988_s30 = smov (!%p592_p3, %s5008_s30), 3  ;;  %5227 = vmatprep.subr.bf16.mxu1 %v6925_v2  ;;  %5231 = vmatprep.mubr.msk.bf16.mxu1 %vm5675_vm1, %v6925_v2  ;;  %v681_v9 = vpack.c.bf16 %v679_v8, %v678_v7  ;;  %v682_v11 = vpack.c.bf16 %v680_v10, %v680_v10  ;;  %vm694_vm3 = vcmask 1040384   ;;  %s6946_s1 = sld [smem:[#allocation16_spill]]  ;;  %v751_v13 = vld [vmem:[%s6915_s9] sm:$0xf]  ;;  %v898_v21 = vld [vmem:[%s6914_s8 + $0x8] sm:$0xff] }
  0x13   : > { %v634_v4 = vsel %vm632_vm0, %v620_v3, 0  ;;  %s5013_s15 = sshll.u32 %s6988_s30, 3  ;;  %s5082_s28 = sshll.u32 %s6988_s30, 6  ;;  %v752_v16 = vpack.c.bf16 %v751_v13, %v751_v13  ;;  %v897_v20 = vld [vmem:[%s6914_s8] sm:$0xff]  ;;  %v899_v30 = vld [vmem:[%s6914_s8 + $0x10] sm:$0xff]  ;;  %v900_v31 = vld [vmem:[%s6914_s8 + $0x18] sm:$0xff] }
  0x14   : > { %5222 = vmatpush3.bf16.msra.mxu0 %v634_v4  ;;  %5228 = vmatpush3.bf16.msra.mxu1 %v681_v9  ;;  %v696_v12 = vsel %vm694_vm3, %v682_v11, 0  ;;  %v5833_v26 = vpack.c.bf16 %v898_v21, %v897_v20  ;;  %v5846_v32 = vpack.c.bf16 %v900_v31, %v899_v30  ;;  %v5017_v34 = vld [vmem:[%s6910_s4] ss:$0 sm:$0xff]  ;;  %vm690_vm4 = vcmask 146432   ;;  %v892_v46 = vld [vmem:[%s6913_s7 + $0x8] sm:$0xff]  ;;  %s6947_s27 = sld [smem:[#allocation15_spill]] }
  0x15   : > { %5229 = vmatprep.subr.bf16.mxu1 %v6925_v2  ;;  %5587 = vmatprep.subr.msk.bf16.mxu0 %vm632_vm0, %v752_v16  ;;  %v766_v24 = vsel %vm632_vm0, %v752_v16, 0  ;;  %v833_v35 = vld [vmem:[%s6918_s12] sm:$0xf]  ;;  %v893_v48 = vld [vmem:[%s6913_s7 + $0x10] sm:$0xff]  ;;  %v894_v49 = vld [vmem:[%s6913_s7 + $0x18] sm:$0xff]  ;;  %v5892_v53 = vshrl.u32 %v1007_v52, 7 }
  0x16   : > { %v834_v39 = vpack.c.bf16 %v833_v35, %v833_v35  ;;  %v891_v45 = vld [vmem:[%s6913_s7] sm:$0xff]  ;;  %v5888_v50 = vpack.c.bf16 %v894_v49, %v893_v48  ;;  %v5676_v54 = vmov -1e+30   ;;  %vm613_vm6 = vcmask 64512  }
  0x17   : > { %s595_s22 = scalar_lea.vmem %s6945_s21, %s5013_s15  ;;  %v5873_v47 = vpack.c.bf16 %v892_v46, %v891_v45  ;;  %v5895_v56 = vsub.s32 0, %v5892_v53  ;;  %v1125_v57 = vsub.s32 1, %v5892_v53  ;;  %v1132_v58 = vsub.s32 2, %v5892_v53  ;;  %v885_v31 = vld [vmem:[%s6917_s11] sm:$0xff] }
  0x18   : > { %v609_v5 = vld [vmem:[%s595_s22] sm:$0xff]  ;;  %s604_s20 = scalar_lea.vmem %s6946_s1, %s5082_s28  ;;  %5230 = vmatpush3.bf16.msra.mxu1 %v696_v12  ;;  %v843_v44 = vsel %vm632_vm0, %v834_v39, 0  ;;  %v1139_v59 = vsub.s32 3, %v5892_v53  ;;  %v1146_v1 = vsub.s32 4, %v5892_v53  ;;  %v1160_v10 = vsub.s32 6, %v5892_v53 }
  0x19   : > { %v5802_v6 = vpack.c.bf16 %v609_v5, %v609_v5  ;;  %5245 = vmatprep.subr.bf16.mxu1 %v6925_v2  ;;  %v739_v14 = vld [vmem:[%s604_s20] sm:$0xff]  ;;  %v740_v15 = vld [vmem:[%s604_s20 + $0x8] sm:$0xff]  ;;  %v741_v18 = vld [vmem:[%s604_s20 + $0x10] sm:$0xff]  ;;  %v1153_v5 = vsub.s32 5, %v5892_v53  ;;  %v1167_v13 = vsub.s32 7, %v5892_v53  ;;  %vm918_vm7 = vcmask 261120  }
  0x1a   : > { %v747_v17 = vpack.c.bf16 %v740_v15, %v739_v14  ;;  %v742_v19 = vld [vmem:[%s604_s20 + $0x18] sm:$0xff]  ;;  %v743_v22 = vld [vmem:[%s604_s20 + $0x20] sm:$0xff]  ;;  %v744_v23 = vld [vmem:[%s604_s20 + $0x28] sm:$0xff]  ;;  %s599_s28 = scalar_lea.vmem %s6947_s27, %s5013_s15  ;;  %vm1246_vm8 = vcmask 1041409   ;;  %vm1248_vm9 = vcmask 1042434   ;;  %vm1250_vm10 = vcmask 1043459  }
  0x1b   : > { %5224 = vmatmul.mubr.msk.bf16.vlgmr.msra.gmra.mrb[0].mxu0 %vm628_vm2, %v5802_v6  ;;  %v748_v25 = vpack.c.bf16 %v742_v19, %v741_v18  ;;  %v749_v27 = vpack.c.bf16 %v744_v23, %v743_v22  ;;  %v745_v28 = vld [vmem:[%s604_s20 + $0x30] sm:$0xff]  ;;  %v746_v29 = vld [vmem:[%s604_s20 + $0x38] sm:$0xff]  ;;  %v610_v51 = vld [vmem:[%s599_s28] sm:$0xff]  ;;  %vm1252_vm11 = vcmask 1044484   ;;  %vm1254_vm12 = vcmask 1045509  }
  0x1c   : > { %5237 = vmatprep.mubr.msk.bf16.mxu0 %vm628_vm2, %v747_v17  ;;  %5236 = vmatpush3.bf16.msra.mxu0 %v766_v24  ;;  %v750_v33 = vpack.c.bf16 %v746_v29, %v745_v28  ;;  %vm611_vm5 = vcmp.gt.f32.partialorder %v610_v51, 0.0  ;;  %v614_v17 = vsel %vm613_vm6, %v610_v51, 0.0  ;;  %v5019_v18 = vld [vmem:[%s6912_s6] ss:$0 sm:$0xff]  ;;  %vm1256_vm13 = vcmask 1046534  }
  0x1d   : > { %5259 = vmatprep.subr.bf16.mxu0 %v6925_v2  ;;  %v612_v55 = vsel %vm611_vm5, 0.0, %v5676_v54  ;;  %vm1258_vm14 = vcmask 1047559   ;;  %vm4935_vm0 = vcmask 8192  }
  0x1e   : > { %v1119_v60 = vrot.slane %v612_v55, %v5895_v56  ;;  %v1133_v62 = vrot.slane %v612_v55, %v1132_v58  ;;  %v1126_v0 = vrot.slane %v612_v55, %v1125_v57  ;;  %v1140_v4 = vrot.slane %v612_v55, %v1139_v59 }
  0x1f   : > { %v1147_v9 = vrot.slane %v612_v55, %v1146_v1  ;;  %v1154_v12 = vrot.slane %v612_v55, %v1153_v5  ;;  %v1161_v15 = vrot.slane %v612_v55, %v1160_v10  ;;  %v1168_v16 = vrot.slane %v612_v55, %v1167_v13  ;;  %v5963_v55 = vld [vmem:[%s6916_s10] ss:$0 sm:$0xff] }
  0x20   : > { %1121 = vbcast.lane.b32.xlu0 %v1119_v60, 256  ;;  %1135 = vbcast.lane.b32.xlu1 %v1133_v62, 256 }
  0x23   : > { %5238 = vmatmul.mubr.msk.bf16.vlgmr.msra.gmra.mrb[4].mxu0 %vm628_vm2, %v748_v25 }
  0x24   : > { %5260 = vmatpush3.bf16.msra.mxu0 %v5833_v26  ;;  %5241 = vmatprep.mubr.msk.bf16.mxu0 %vm628_vm2, %v749_v27 }
  0x25   : > { %5261 = vmatprep.subr.bf16.mxu0 %v6925_v2  ;;  %1128 = vbcast.lane.b32.xlu0 %v1126_v0, 256 }
  0x26   : > { %1142 = vbcast.lane.b32.xlu1 %v1140_v4, 256 }
  0x28   : > { %5262 = vmatpush3.bf16.msra.mxu0 %v5846_v32 }
  0x29   : > { %5275 = vmatprep.subr.bf16.mxu0 %v6925_v2  ;;  %1149 = vbcast.lane.b32.xlu0 %v1147_v9, 256 }
  0x2a   : > { %1156 = vbcast.lane.b32.xlu1 %v1154_v12, 256 }
  0x2b   : > { %5242 = vmatmul.mubr.msk.bf16.gmra.mrb[8].mxu0 %vm628_vm2, %v750_v33  ;;  %v886_v33 = vld [vmem:[%s6917_s11 + $0x8] sm:$0xff] }
  0x2c   : > { %5263 = vmatprep.mubr.msk.bf16.mxu0 %vm5675_vm1, %v6925_v2  ;;  %v5941_v35 = vpack.c.bf16 %v886_v33, %v885_v31 }
  0x2d   : > { %1163 = vbcast.lane.b32.xlu0 %v1161_v15, 256 }
  0x2e   : > { %1170 = vbcast.lane.b32.xlu1 %v1168_v16, 256 }
  0x4c   : > { %615 = vadd.xlane.f32.xlu0 %v614_v17 }
  0xee   : > { %v670_v36 = vpop.f32.mrb[0].mxu0 }
  0xef   : > { %v671_v37 = vadd.f32 %v5017_v34, %v670_v36  ;;  %v5225_v38 = vpop.f32.mrb[1].mxu0  ;;  %v887_v34 = vld [vmem:[%s6917_s11 + $0x10] sm:$0xff]  ;;  %v888_v36 = vld [vmem:[%s6917_s11 + $0x18] sm:$0xff] }
  0xf0   : > { %v673_v40 = vpop.f32.mrb[2].mxu0  ;;  %v5677_v38 = vmov 1966171168  }
  0xf1   : > { %v676_v41 = vmax.f32 %v671_v37, 0.0  ;;  %v5226_v42 = vpop.f32.mrb[3].mxu0  ;;  %v5947_v37 = vpack.c.bf16 %v888_v36, %v887_v34  ;;  %v1005_v39 = vunpack.c.l.s4 %v5677_v38 }
  0xf2   : > { %v5955_v42 = vpop.permute.xlu0 %1121 }
  0xf3   : > { %v677_v43 = vpack.c.bf16 %v676_v41, %v676_v41  ;;  %v1006_v40 = vunpack.c.0.s8 %v1005_v39 }
  0xf5   : > { %5232 = vmatmul.mubr.msk.bf16.vlgmr.msra.gmra.mrb[0].mxu1 %vm690_vm4, %v677_v43  ;;  %v5953_v41 = vsub.s32 %v1006_v40, %v5892_v53  ;;  %v5957_v43 = vpop.permute.xlu1 %1135 }
  0xf6   : > { %5246 = vmatpush3.bf16.msra.mxu1 %v843_v44  ;;  %5247 = vmatprep.mubr.msk.bf16.mxu1 %vm5675_vm1, %v6925_v2  ;;  %v5901_v61 = vpop.f32.mrb[4].mxu0  ;;  %v5967_v62 = vpop.permute.xlu0 %1128 }
  0xf7   : > { %5251 = vmatprep.subr.bf16.mxu1 %v6925_v2  ;;  %v5903_v63 = vpop.f32.mrb[5].mxu0 }
  0xf8   : > { %v5906_v3 = vpop.f32.mrb[6].mxu0 }
  0xf9   : > { %v5971_v9 = vpop.permute.xlu1 %1142 }
  0xfd   : > { %5248 = vmatmul.mubr.msk.bf16.vlgmr.msra.gmra.mrb[4].mxu1 %vm628_vm2, %v5802_v6  ;;  %v5909_v6 = vpop.f32.mrb[7].mxu0  ;;  %v5986_v39 = vpop.permute.xlu1 %1156 }
  0xfe   : > { %5255 = vmatprep.mubr.msk.bf16.mxu1 %vm5675_vm1, %v6925_v2  ;;  %5252 = vmatpush3.bf16.msra.mxu1 %v5873_v47  ;;  %v5911_v7 = vpop.f32.mrb[8].mxu0  ;;  %6948 = vst [vmem:[#allocation3_spill] sm:$0xff] %v5986_v39 }
  0xff   : > { %5253 = vmatprep.subr.bf16.mxu1 %v6925_v2  ;;  %v5913_v8 = vpop.f32.mrb[9].mxu0 }
 0x100   : > { %v5916_v11 = vpop.f32.mrb[10].mxu0 }
 0x101   : > { %v5919_v14 = vpop.f32.mrb[11].mxu0 }
 0x102   : > { %5254 = vmatpush3.bf16.msra.mxu1 %v5888_v50 }
 0x103   : > { %5267 = vmatprep.subr.bf16.mxu1 %v6925_v2 }
 0x1c8   : > { %v732_v19 = vpop.f32.mrb[0].mxu1 }
 0x1c9   : > { %v733_v20 = vadd.f32 %v5019_v18, %v732_v19  ;;  %v5233_v21 = vpop.f32.mrb[1].mxu1 }
 0x1ca   : > { %v735_v22 = vpop.f32.mrb[2].mxu1 }
 0x1cb   : > { %v738_v23 = vmax.f32 %v733_v20, 0.0  ;;  %v5234_v24 = vpop.f32.mrb[3].mxu1 }
 0x1cd   : > { %v911_v25 = vpack.c.bf16 %v738_v23, %v738_v23 }
 0x1cf   : > { %5256 = vmatmul.mubr.msk.bf16.vlgmr.msra.gmra.mrb[8].mxu1 %vm918_vm7, %v911_v25  ;;  %5264 = vmatmul.mubr.msk.bf16.vlgmr.msra.gmra.mrb[12].mxu0 %vm918_vm7, %v911_v25  ;;  %v5982_v25 = vpop.permute.xlu0 %1149 }
 0x1d0   : > { %v5926_v27 = vpop.f32.mrb[4].mxu1  ;;  %5271 = vmatprep.mubr.msk.bf16.mxu1 %vm5675_vm1, %v6925_v2  ;;  %5279 = vmatprep.mubr.msk.bf16.mxu0 %vm5675_vm1, %v6925_v2 }
 0x1d1   : > { %v5249_v28 = vpop.f32.mrb[5].mxu1  ;;  %5268 = vmatpush3.bf16.msra.mxu1 %v5941_v35 }
 0x1d2   : > { %v882_v29 = vpop.f32.mrb[6].mxu1  ;;  %5269 = vmatprep.subr.bf16.mxu1 %v6925_v2 }
 0x1d3   : > { %v5250_v30 = vpop.f32.mrb[7].mxu1 }
 0x1d5   : > { %5270 = vmatpush3.bf16.msra.mxu1 %v5947_v37 }
 0x1d6   : > { %5283 = vmatprep.subr.bf16.mxu1 %v6925_v2 }
 0x2a2   : > { %v956_v44 = vpop.f32.mrb[8].mxu1  ;;  %v996_v45 = vpop.f32.mrb[12].mxu0 }
 0x2a3   : > { %v1003_v46 = vcombine.high %v996_v45, %v996_v45  ;;  %v1010_v48 = vrot.slane %v996_v45, %v5953_v41  ;;  %v5257_v49 = vpop.f32.mrb[9].mxu1  ;;  %v5265_v51 = vpop.f32.mrb[13].mxu0  ;;  %v957_v10 = vadd.f32 %v5963_v55, %v956_v44 }
 0x2a4   : > { %v959_v52 = vpop.f32.mrb[10].mxu1  ;;  %v999_v54 = vpop.f32.mrb[14].mxu0 }
 0x2a5   : > { %v1017_v53 = vrot.slane %v1003_v46, %v5953_v41  ;;  %v1018_v57 = vcombine.high %v1010_v48, %v1010_v48  ;;  %v1026_v58 = vrot.slane %v1010_v48, %v5953_v41  ;;  %v5258_v59 = vpop.f32.mrb[11].mxu1  ;;  %v5266_v60 = vpop.f32.mrb[15].mxu0 }
 0x2a7   : > { %v1019_v0 = vcombine.high %v1017_v53, %v1017_v53  ;;  %v1033_v1 = vrot.slane %v1017_v53, %v5953_v41  ;;  %v1040_v4 = vrot.slane %v1018_v57, %v5953_v41  ;;  %v1048_v5 = vcombine.high %v1026_v58, %v1026_v58 }
 0x2a8   : > { %v1055_v12 = vrot.slane %v1026_v58, %v5895_v56 }
 0x2a9   : > { %v1047_v13 = vrot.slane %v1019_v0, %v5953_v41  ;;  %v1049_v15 = vcombine.high %v1033_v1, %v1033_v1  ;;  %v1050_v16 = vcombine.high %v1040_v4, %v1040_v4  ;;  %v1059_v17 = vrot.slane %v1040_v4, %v5895_v56  ;;  %v5996_v4 = vpop.permute.xlu0 %1163 }
 0x2aa   : > { %v1063_v18 = vrot.slane %v1048_v5, %v5895_v56  ;;  %v1071_v19 = vrot.slane %v1033_v1, %v5895_v56  ;;  %v1092_v20 = vadd.f32 %v1055_v12, %v957_v10  ;;  %6949 = vst [vmem:[#allocation4_spill] sm:$0xff] %v5996_v4 }
 0x2ab   : > { %v1051_v21 = vcombine.high %v1047_v13, %v1047_v13  ;;  %v1067_v22 = vrot.slane %v1050_v16, %v5895_v56  ;;  %v1075_v23 = vrot.slane %v1047_v13, %v5895_v56  ;;  %v1079_v24 = vrot.slane %v1049_v15, %v5895_v56 }
 0x2ac   : > { %v1093_v28 = vadd.f32 %v1059_v17, %v957_v10  ;;  %v1094_v29 = vadd.f32 %v1063_v18, %v957_v10  ;;  %v1096_v30 = vadd.f32 %v1071_v19, %v957_v10  ;;  %v1100_v31 = vadd.f32 %v1092_v20, %v5903_v63  ;;  %v6004_v19 = vpop.permute.xlu1 %1170 }
 0x2ad   : > { %v1083_v33 = vrot.slane %v1051_v21, %v5895_v56  ;;  %v1095_v34 = vadd.f32 %v1067_v22, %v957_v10  ;;  %v1097_v36 = vadd.f32 %v1075_v23, %v957_v10  ;;  %v1098_v38 = vadd.f32 %v1079_v24, %v957_v10  ;;  %6950 = vst [vmem:[#allocation5_spill] sm:$0xff] %v6004_v19 }
 0x2ae   : > { %v1101_v40 = vadd.f32 %v1093_v28, %v5909_v6  ;;  %v1102_v44 = vadd.f32 %v5901_v61, %v1094_v29  ;;  %v1104_v45 = vadd.f32 %v1096_v30, %v5913_v8  ;;  %v1108_v46 = vmax.f32 %v1100_v31, 0.0 }
 0x2af   : > { %v1099_v48 = vadd.f32 %v1083_v33, %v957_v10  ;;  %v1103_v49 = vadd.f32 %v5906_v3, %v1095_v34  ;;  %v1105_v51 = vadd.f32 %v1097_v36, %v5919_v14  ;;  %v1106_v52 = vadd.f32 %v5911_v7, %v1098_v38 }
 0x2b0   : > { %v1109_v54 = vmax.f32 %v1101_v40, 0.0  ;;  %v1110_v53 = vmax.f32 %v1102_v44, 0.0  ;;  %v1112_v57 = vmax.f32 %v1104_v45, 0.0  ;;  %v1172_v58 = vadd.f32 %v5955_v42, %v1108_v46 }
 0x2b1   : > { %v1107_v59 = vadd.f32 %v5916_v11, %v1099_v48  ;;  %v1111_v60 = vmax.f32 %v1103_v49, 0.0  ;;  %v1113_v0 = vmax.f32 %v1105_v51, 0.0  ;;  %v1114_v1 = vmax.f32 %v1106_v52, 0.0 }
 0x2b2   : > { %v1173_v5 = vadd.f32 %v5967_v62, %v1109_v54  ;;  %v1176_v10 = vadd.f32 %v5982_v25, %v1112_v57  ;;  %v1180_v12 = vsel %vm918_vm7, %v1172_v58, -inf  ;;  %v1174_v13 = vadd.f32 %v5957_v43, %v1110_v53 }
 0x2b3   : > { %v1115_v15 = vmax.f32 %v1107_v59, 0.0  ;;  %v1178_v16 = vadd.f32 %v5996_v4, %v1114_v1  ;;  %v1181_v17 = vrot.slane %v1180_v12, 4  ;;  %v1175_v18 = vadd.f32 %v5971_v9, %v1111_v60 }
 0x2b4   : > { %v1187_v20 = vsel %vm918_vm7, %v1173_v5, -inf  ;;  %v1208_v21 = vsel %vm918_vm7, %v1176_v10, -inf  ;;  %v1194_v22 = vsel %vm918_vm7, %v1174_v13, -inf  ;;  %v1177_v23 = vadd.f32 %v5986_v39, %v1113_v0 }
 0x2b5   : > { %v1182_v24 = vmax.f32 %v1180_v12, %v1181_v17  ;;  %v1188_v28 = vrot.slane %v1187_v20, 4  ;;  %v1209_v29 = vrot.slane %v1208_v21, 4  ;;  %v1222_v30 = vsel %vm918_vm7, %v1178_v16, -inf }
 0x2b6   : > { %v1223_v31 = vrot.slane %v1222_v30, 4  ;;  %v1195_v33 = vrot.slane %v1194_v22, 4  ;;  %v1201_v34 = vsel %vm918_vm7, %v1175_v18, -inf  ;;  %v1179_v36 = vadd.f32 %v6004_v19, %v1115_v15 }
 0x2b7   : > { %v1183_v38 = vrot.slane %v1182_v24, 2  ;;  %v1189_v40 = vmax.f32 %v1187_v20, %v1188_v28  ;;  %v1210_v44 = vmax.f32 %v1208_v21, %v1209_v29  ;;  %v1202_v45 = vrot.slane %v1201_v34, 4 }
 0x2b8   : > { %v1224_v46 = vmax.f32 %v1222_v30, %v1223_v31  ;;  %v1196_v48 = vmax.f32 %v1194_v22, %v1195_v33  ;;  %v1215_v49 = vsel %vm918_vm7, %v1177_v23, -inf  ;;  %v1229_v51 = vsel %vm918_vm7, %v1179_v36, -inf }
 0x2b9   : > { %v1184_v52 = vmax.f32 %v1182_v24, %v1183_v38  ;;  %v1190_v54 = vrot.slane %v1189_v40, 2  ;;  %v1211_v53 = vrot.slane %v1210_v44, 2  ;;  %v1203_v57 = vmax.f32 %v1201_v34, %v1202_v45 }
 0x2ba   : > { %v1225_v58 = vrot.slane %v1224_v46, 2  ;;  %v1197_v59 = vrot.slane %v1196_v48, 2  ;;  %v1216_v60 = vrot.slane %v1215_v49, 4  ;;  %v1230_v0 = vrot.slane %v1229_v51, 4 }
 0x2bb   : > { %v1185_v1 = vrot.slane %v1184_v52, 1  ;;  %v1191_v5 = vmax.f32 %v1189_v40, %v1190_v54  ;;  %v1212_v10 = vmax.f32 %v1210_v44, %v1211_v53  ;;  %v1204_v12 = vrot.slane %v1203_v57, 2 }
 0x2bc   : > { %v1198_v13 = vmax.f32 %v1196_v48, %v1197_v59  ;;  %v1217_v15 = vmax.f32 %v1215_v49, %v1216_v60  ;;  %v1231_v16 = vmax.f32 %v1229_v51, %v1230_v0  ;;  %v1226_v18 = vmax.f32 %v1224_v46, %v1225_v58  ;;  %v6017_v49 = vpop.xlane.xlu0 %615 }
 0x2bd   : > { %v1192_v17 = vrot.slane %v1191_v5, 1  ;;  %v1205_v20 = vmax.f32 %v1203_v57, %v1204_v12  ;;  %v1213_v21 = vrot.slane %v1212_v10, 1  ;;  %v1186_v28 = vmax.f32 %v1184_v52, %v1185_v1 }
 0x2be   : > { %v1199_v22 = vrot.slane %v1198_v13, 1  ;;  %v1218_v23 = vrot.slane %v1217_v15, 2  ;;  %v1232_v24 = vrot.slane %v1231_v16, 2  ;;  %v1227_v40 = vrot.slane %v1226_v18, 1 }
 0x2bf   : > { %v1193_v29 = vmax.f32 %v1191_v5, %v1192_v17  ;;  %v1206_v30 = vrot.slane %v1205_v20, 1  ;;  %v1214_v44 = vmax.f32 %v1212_v10, %v1213_v21  ;;  %vm617_vm15 = vcmp.eq.f32.partialorder %v6017_v49, 0.0  ;;  %v903_v5 = vld [vmem:[%s6920_s14] sm:$0xff]  ;;  %v904_v10 = vld [vmem:[%s6920_s14 + $0x8] sm:$0xff] }
 0x2c0   : > { %v1200_v31 = vmax.f32 %v1198_v13, %v1199_v22  ;;  %v1219_v33 = vmax.f32 %v1217_v15, %v1218_v23  ;;  %v1233_v34 = vmax.f32 %v1231_v16, %v1232_v24  ;;  %v1228_v53 = vmax.f32 %v1226_v18, %v1227_v40  ;;  %v905_v13 = vld [vmem:[%s6920_s14 + $0x10] sm:$0xff]  ;;  %v906_v15 = vld [vmem:[%s6920_s14 + $0x18] sm:$0xff]  ;;  %v5025_v17 = vld [vmem:[%s6919_s13] ss:$0 sm:$0xff] }
 0x2c1   : > { %v1247_v36 = vsel %vm1246_vm8, %v1193_v29, %v1186_v28  ;;  %v1207_v38 = vmax.f32 %v1205_v20, %v1206_v30  ;;  %v6051_v12 = vpack.c.bf16 %v904_v10, %v903_v5  ;;  %v6061_v16 = vpack.c.bf16 %v906_v15, %v905_v13 }
 0x2c2   : > { %v1220_v45 = vrot.slane %v1219_v33, 1  ;;  %v1234_v46 = vrot.slane %v1233_v34, 1  ;;  %v1249_v48 = vsel %vm1248_vm9, %v1200_v31, %v1247_v36  ;;  %v6069_v18 = vadd.f32 %v5025_v17, %v5926_v27 }
 0x2c3   : > { %v1251_v51 = vsel %vm1250_vm10, %v1207_v38, %v1249_v48  ;;  %5276 = vmatpush3.bf16.msra.mxu0 %v6051_v12 }
 0x2c4   : > { %v1221_v52 = vmax.f32 %v1219_v33, %v1220_v45  ;;  %v1253_v54 = vsel %vm1252_vm11, %v1214_v44, %v1251_v51  ;;  %v1235_v57 = vmax.f32 %v1233_v34, %v1234_v46  ;;  %5277 = vmatprep.subr.bf16.mxu0 %v6925_v2  ;;  %v6087_v46 = vld [vmem:[#allocation2] sm:$0x1] }
 0x2c6   : > { %v1255_v58 = vsel %vm1254_vm12, %v1221_v52, %v1253_v54 }
 0x2c7   : > { %v1257_v59 = vsel %vm1256_vm13, %v1228_v53, %v1255_v58  ;;  %5278 = vmatpush3.bf16.msra.mxu0 %v6061_v16 }
 0x2c8   : > { %v1259_v60 = vsel %vm1258_vm14, %v1235_v57, %v1257_v59  ;;  %5291 = vmatprep.subr.bf16.mxu0 %v6925_v2 }
 0x2c9   : > { %v6027_v0 = vsel %vm617_vm15, 0.0, %v1259_v60 }
 0x2ca   : > { %6951 = vst [vmem:[#allocation6_spill] sm:$0xff] %v6027_v0  ;;  %v1262_v1 = vpack.c.bf16 %v6027_v0, %v6027_v0 }
 0x2cc   : > { %5272 = vmatmul.mubr.msk.bf16.vlgmr.msra.gmra.mrb[12].mxu1 %vm918_vm7, %v1262_v1 }
 0x2cd   : > { %5284 = vmatpush3.bf16.msra.mxu1 %v5873_v47  ;;  %5287 = vmatprep.mubr.msk.bf16.mxu1 %vm5675_vm1, %v6925_v2 }
 0x2ce   : > { %5285 = vmatprep.subr.bf16.mxu1 %v6925_v2 }
 0x2d1   : > { %5286 = vmatpush3.bf16.msra.mxu1 %v5888_v50 }
 0x2d2   : > { %5299 = vmatprep.subr.bf16.mxu1 %v6925_v2 }
 0x2d4   : > { %5288 = vmatmul.mubr.msk.bf16.vlgmr.msra.gmra.mrb[16].mxu1 %vm918_vm7, %v1262_v1 }
 0x2d5   : > { %5300 = vmatpush3.bf16.msra.mxu1 %v5941_v35  ;;  %5303 = vmatprep.mubr.msk.bf16.mxu1 %vm5675_vm1, %v6925_v2 }
 0x2d6   : > { %5301 = vmatprep.subr.bf16.mxu1 %v6925_v2 }
 0x2d9   : > { %5302 = vmatpush3.bf16.msra.mxu1 %v5947_v37 }
 0x2da   : > { %5315 = vmatprep.subr.bf16.mxu1 %v6925_v2 }
 0x39f   : > { %v1300_v20 = vpop.f32.mrb[12].mxu1 }
 0x3a0   : > { %v1301_v21 = vadd.f32 %v1300_v20, %v6069_v18  ;;  %v5273_v22 = vpop.f32.mrb[13].mxu1 }
 0x3a1   : > { %v1303_v23 = vpop.f32.mrb[14].mxu1 }
 0x3a2   : > { %v1306_v24 = vsel %vm918_vm7, %v1301_v21, -inf  ;;  %v5274_v28 = vpop.f32.mrb[15].mxu1 }
 0x3a3   : > { %v1307_v29 = vrot.slane %v1306_v24, 4 }
 0x3a5   : > { %v1308_v30 = vmax.f32 %v1306_v24, %v1307_v29 }
 0x3a7   : > { %v1309_v31 = vrot.slane %v1308_v30, 2  ;;  %v1404_v33 = vpop.f32.mrb[16].mxu1 }
 0x3a8   : > { %v5289_v34 = vpop.f32.mrb[17].mxu1  ;;  %v1405_v24 = vadd.f32 %v5963_v55, %v1404_v33 }
 0x3a9   : > { %v1310_v36 = vmax.f32 %v1308_v30, %v1309_v31  ;;  %v1407_v38 = vpop.f32.mrb[18].mxu1 }
 0x3aa   : > { %v5290_v40 = vpop.f32.mrb[19].mxu1 }
 0x3ab   : > { %v1311_v44 = vrot.slane %v1310_v36, 1 }
 0x3ad   : > { %v1312_v45 = vmax.f32 %v1310_v36, %v1311_v44 }
 0x3af   : > { %v1313_v27 = vpack.c.bf16 %v1312_v45, %v1312_v45 }
 0x3b1   : > { %5280 = vmatmul.mubr.msk.bf16.vlgmr.msra.gmra.mrb[16].mxu0 %vm918_vm7, %v1313_v27 }
 0x3b2   : > { %5292 = vmatpush3.bf16.msra.mxu0 %v5833_v26  ;;  %5295 = vmatprep.mubr.msk.bf16.mxu0 %vm5675_vm1, %v6925_v2 }
 0x3b3   : > { %5293 = vmatprep.subr.bf16.mxu0 %v6925_v2 }
 0x3b6   : > { %5294 = vmatpush3.bf16.msra.mxu0 %v5846_v32 }
 0x3b7   : > { %5307 = vmatprep.subr.bf16.mxu0 %v6925_v2 }
 0x3b9   : > { %5296 = vmatmul.mubr.msk.bf16.vlgmr.msra.gmra.mrb[20].mxu0 %vm918_vm7, %v1262_v1 }
 0x3ba   : > { %5308 = vmatpush3.bf16.msra.mxu0 %v6051_v12  ;;  %5311 = vmatprep.mubr.msk.bf16.mxu0 %vm5675_vm1, %v6925_v2 }
 0x3bb   : > { %5309 = vmatprep.subr.bf16.mxu0 %v6925_v2 }
 0x3be   : > { %5310 = vmatpush3.bf16.msra.mxu0 %v6061_v16 }
 0x3bf   : > { %5323 = vmatprep.subr.bf16.mxu0 %v6925_v2 }
 0x484   : > { %v1351_v48 = vpop.f32.mrb[16].mxu0 }
 0x485   : > { %v1352_v51 = vadd.f32 %v1351_v48, %v6087_v46  ;;  %v5281_v52 = vpop.f32.mrb[17].mxu0 }
 0x486   : > { %v1354_v54 = vpop.f32.mrb[18].mxu0 }
 0x487   : > { %v5032_v53 = vmul.f32 -1.442695, %v1352_v51  ;;  %v5282_v57 = vpop.f32.mrb[19].mxu0 }
 0x489   : > { %5620 = vpow2.f32 %v5032_v53 }
 0x48c   : > { %v1444_v58 = vpop.f32.mrb[20].mxu0 }
 0x48d   : > { %v1451_v59 = vcombine.high %v1444_v58, %v1444_v58  ;;  %v1458_v60 = vrot.slane %v1444_v58, %v5953_v41  ;;  %v5297_v1 = vpop.f32.mrb[21].mxu0 }
 0x48e   : > { %v1447_v5 = vpop.f32.mrb[22].mxu0 }
 0x48f   : > { %v1465_v10 = vrot.slane %v1451_v59, %v5953_v41  ;;  %v1466_v13 = vcombine.high %v1458_v60, %v1458_v60  ;;  %v1474_v15 = vrot.slane %v1458_v60, %v5953_v41  ;;  %v5298_v17 = vpop.f32.mrb[23].mxu0 }
 0x491   : > { %v1467_v20 = vcombine.high %v1465_v10, %v1465_v10  ;;  %v1481_v21 = vrot.slane %v1465_v10, %v5953_v41  ;;  %v1488_v22 = vrot.slane %v1466_v13, %v5953_v41  ;;  %v1496_v23 = vcombine.high %v1474_v15, %v1474_v15 }
 0x492   : > { %v1503_v28 = vrot.slane %v1474_v15, %v5895_v56 }
 0x493   : > { %v5621_v29 = vpop.eup %5620  ;;  %v1495_v30 = vrot.slane %v1467_v20, %v5953_v41  ;;  %v1497_v31 = vcombine.high %v1481_v21, %v1481_v21  ;;  %v1498_v34 = vcombine.high %v1488_v22, %v1488_v22  ;;  %v1507_v36 = vrot.slane %v1488_v22, %v5895_v56 }
 0x494   : > { %v1360_v38 = vadd.f32 1.0, %v5621_v29  ;;  %v1511_v40 = vrot.slane %v1496_v23, %v5895_v56  ;;  %v1519_v44 = vrot.slane %v1481_v21, %v5895_v56  ;;  %v1540_v45 = vadd.f32 %v1503_v28, %v1405_v24 }
 0x495   : > { %v1499_v27 = vcombine.high %v1495_v30, %v1495_v30  ;;  %v1515_v48 = vrot.slane %v1498_v34, %v5895_v56  ;;  %v1523_v33 = vrot.slane %v1495_v30, %v5895_v56  ;;  %v1527_v51 = vrot.slane %v1497_v31, %v5895_v56 }
 0x496   : > { %5622 = vrcp.f32 %v1360_v38  ;;  %v1541_v52 = vadd.f32 %v1507_v36, %v1405_v24  ;;  %v1542_v54 = vadd.f32 %v1511_v40, %v1405_v24  ;;  %v1544_v53 = vadd.f32 %v1519_v44, %v1405_v24 }
 0x497   : > { %v1531_v57 = vrot.slane %v1499_v27, %v5895_v56  ;;  %v1543_v58 = vadd.f32 %v1515_v48, %v1405_v24  ;;  %v1545_v59 = vadd.f32 %v1523_v33, %v1405_v24  ;;  %v1546_v60 = vadd.f32 %v1527_v51, %v1405_v24 }
 0x498   : > { %v1548_v1 = vadd.f32 %v1540_v45, %v5903_v63  ;;  %v1549_v5 = vadd.f32 %v1541_v52, %v5909_v6  ;;  %v1550_v10 = vadd.f32 %v5901_v61, %v1542_v54  ;;  %v1552_v13 = vadd.f32 %v1544_v53, %v5913_v8 }
 0x499   : > { %v1547_v15 = vadd.f32 %v1531_v57, %v1405_v24  ;;  %v1551_v17 = vadd.f32 %v5906_v3, %v1543_v58  ;;  %v1553_v20 = vadd.f32 %v1545_v59, %v5919_v14  ;;  %v1554_v21 = vadd.f32 %v5911_v7, %v1546_v60 }
 0x49a   : > { %v1556_v22 = vmax.f32 %v1548_v1, 0.0  ;;  %v1557_v23 = vmax.f32 %v1549_v5, 0.0  ;;  %v1558_v28 = vmax.f32 %v1550_v10, 0.0  ;;  %v1560_v29 = vmax.f32 %v1552_v13, 0.0 }
 0x49b   : > { %v1555_v30 = vadd.f32 %v5916_v11, %v1547_v15  ;;  %v1559_v31 = vmax.f32 %v1551_v17, 0.0  ;;  %v1561_v34 = vmax.f32 %v1553_v20, 0.0  ;;  %v1562_v36 = vmax.f32 %v1554_v21, 0.0 }
 0x49c   : > { %v1564_v38 = vadd.f32 %v1556_v22, %v5955_v42  ;;  %v1565_v40 = vadd.f32 %v1557_v23, %v5967_v62  ;;  %v1566_v24 = vadd.f32 %v1558_v28, %v5957_v43  ;;  %v1568_v44 = vadd.f32 %v1560_v29, %v5982_v25 }
 0x49d   : > { %v1563_v45 = vmax.f32 %v1555_v30, 0.0  ;;  %v1567_v27 = vadd.f32 %v1559_v31, %v5971_v9  ;;  %v1569_v48 = vadd.f32 %v1561_v34, %v5986_v39  ;;  %v1570_v33 = vadd.f32 %v1562_v36, %v5996_v4 }
 0x49e   : > { %v1572_v51 = vsel %vm918_vm7, %v1564_v38, -inf  ;;  %v1579_v52 = vsel %vm918_vm7, %v1565_v40, -inf  ;;  %v1586_v54 = vsel %vm918_vm7, %v1566_v24, -inf  ;;  %v1600_v53 = vsel %vm918_vm7, %v1568_v44, -inf }
 0x49f   : > { %v1571_v57 = vadd.f32 %v1563_v45, %v6004_v19  ;;  %v1573_v58 = vrot.slane %v1572_v51, 4  ;;  %v1580_v59 = vrot.slane %v1579_v52, 4  ;;  %v1587_v60 = vrot.slane %v1586_v54, 4 }
 0x4a0   : > { %v6125_v1 = vpop.eup %5622  ;;  %v1593_v5 = vsel %vm918_vm7, %v1567_v27, -inf  ;;  %v1601_v10 = vrot.slane %v1600_v53, 4  ;;  %v1607_v13 = vsel %vm918_vm7, %v1569_v48, -inf  ;;  %v1614_v15 = vsel %vm918_vm7, %v1570_v33, -inf }
 0x4a1   : > { %v1574_v17 = vmax.f32 %v1572_v51, %v1573_v58  ;;  %v1581_v20 = vmax.f32 %v1579_v52, %v1580_v59  ;;  %v1588_v21 = vmax.f32 %v1586_v54, %v1587_v60  ;;  %v1594_v22 = vrot.slane %v1593_v5, 4  ;;  %5588 = vpush %v6125_v1 }
 0x4a2   : > { %v1602_v23 = vmax.f32 %v1600_v53, %v1601_v10  ;;  %v1608_v28 = vrot.slane %v1607_v13, 4  ;;  %v1615_v29 = vrot.slane %v1614_v15, 4  ;;  %v1621_v30 = vsel %vm918_vm7, %v1571_v57, -inf }
 0x4a3   : > { %v1575_v31 = vrot.slane %v1574_v17, 2  ;;  %v1582_v34 = vrot.slane %v1581_v20, 2  ;;  %v1589_v36 = vrot.slane %v1588_v21, 2  ;;  %v1595_v38 = vmax.f32 %v1593_v5, %v1594_v22 }
 0x4a4   : > { %v1603_v40 = vrot.slane %v1602_v23, 2  ;;  %v1609_v24 = vmax.f32 %v1607_v13, %v1608_v28  ;;  %v1616_v44 = vmax.f32 %v1614_v15, %v1615_v29  ;;  %v1622_v45 = vrot.slane %v1621_v30, 4 }
 0x4a5   : > { %v1576_v27 = vmax.f32 %v1574_v17, %v1575_v31  ;;  %v1583_v48 = vmax.f32 %v1581_v20, %v1582_v34  ;;  %v1590_v33 = vmax.f32 %v1588_v21, %v1589_v36  ;;  %v1596_v51 = vrot.slane %v1595_v38, 2 }
 0x4a6   : > { %v1604_v52 = vmax.f32 %v1602_v23, %v1603_v40  ;;  %v1610_v54 = vrot.slane %v1609_v24, 2  ;;  %v1617_v58 = vrot.slane %v1616_v44, 2  ;;  %v1623_v53 = vmax.f32 %v1621_v30, %v1622_v45 }
 0x4a7   : > { %v1577_v59 = vrot.slane %v1576_v27, 1  ;;  %v1584_v60 = vrot.slane %v1583_v48, 1  ;;  %v1591_v10 = vrot.slane %v1590_v33, 1  ;;  %v1597_v57 = vmax.f32 %v1595_v38, %v1596_v51 }
 0x4a8   : > { %v1605_v2 = vrot.slane %v1604_v52, 1  ;;  %v1611_v0 = vmax.f32 %v1609_v24, %v1610_v54  ;;  %v1618_v19 = vmax.f32 %v1616_v44, %v1617_v58  ;;  %v1624_v5 = vrot.slane %v1623_v53, 2 }
 0x4a9   : > { %v1578_v22 = vmax.f32 %v1576_v27, %v1577_v59  ;;  %v1585_v13 = vmax.f32 %v1583_v48, %v1584_v60  ;;  %v1592_v15 = vmax.f32 %v1590_v33, %v1591_v10  ;;  %v1598_v28 = vrot.slane %v1597_v57, 1 }
 0x4aa   : > { %v1612_v17 = vrot.slane %v1611_v0, 1  ;;  %v1619_v20 = vrot.slane %v1618_v19, 1  ;;  %v1625_v21 = vmax.f32 %v1623_v53, %v1624_v5  ;;  %v1606_v31 = vmax.f32 %v1604_v52, %v1605_v2 }
 0x4ab   : > { %v1599_v29 = vmax.f32 %v1597_v57, %v1598_v28  ;;  %v1636_v23 = vsel %vm1246_vm8, %v1585_v13, %v1578_v22 }
 0x4ac   : > { %v1626_v30 = vrot.slane %v1625_v21, 1  ;;  %v1637_v34 = vsel %vm1248_vm9, %v1592_v15, %v1636_v23  ;;  %v1613_v36 = vmax.f32 %v1611_v0, %v1612_v17  ;;  %v1620_v40 = vmax.f32 %v1618_v19, %v1619_v20 }
 0x4ad   : > { %v1638_v38 = vsel %vm1250_vm10, %v1599_v29, %v1637_v34  ;;  %v6953_v19 = vmov 0.0  }
 0x4ae   : > { %v1639_v24 = vsel %vm1252_vm11, %v1606_v31, %v1638_v38  ;;  %v1627_v44 = vmax.f32 %v1625_v21, %v1626_v30 }
 0x4af   : > { %v1640_v45 = vsel %vm1254_vm12, %v1613_v36, %v1639_v24 }
 0x4b0   : > { %v1641_v27 = vsel %vm1256_vm13, %v1620_v40, %v1640_v45 }
 0x4b1   : > { %v1642_v48 = vsel %vm1258_vm14, %v1627_v44, %v1641_v27 }
 0x4b2   : > { %v6141_v33 = vsel %vm617_vm15, 0.0, %v1642_v48 }
 0x4b3   : > { %6952 = vst [vmem:[#allocation7_spill] sm:$0xff] %v6141_v33  ;;  %v1645_v2 = vpack.c.bf16 %v6141_v33, %v6141_v33 }
 0x4b5   : > { %5304 = vmatmul.mubr.msk.bf16.vlgmr.msra.gmra.mrb[20].mxu1 %vm918_vm7, %v1645_v2 }
 0x4b6   : > { %5316 = vmatpush3.bf16.msra.mxu1 %v5873_v47  ;;  %5319 = vmatprep.mubr.msk.bf16.mxu1 %vm5675_vm1, %v6953_v19 }
 0x4b7   : > { %5317 = vmatprep.subr.bf16.mxu1 %v6953_v19 }
 0x4ba   : > { %5318 = vmatpush3.bf16.msra.mxu1 %v5888_v50 }
 0x4bb   : > { %5331 = vmatprep.subr.bf16.mxu1 %v6953_v19 }
 0x4bd   : > { %5320 = vmatmul.mubr.msk.bf16.vlgmr.msra.gmra.mrb[24].mxu1 %vm918_vm7, %v1645_v2 }
 0x4be   : > { %5332 = vmatpush3.bf16.msra.mxu1 %v5941_v35  ;;  %5335 = vmatprep.mubr.msk.bf16.mxu1 %vm5675_vm1, %v6953_v19 }
 0x4bf   : > { %5333 = vmatprep.subr.bf16.mxu1 %v6953_v19 }
 0x4c2   : > { %5334 = vmatpush3.bf16.msra.mxu1 %v5947_v37 }
 0x4c3   : > { %5347 = vmatprep.subr.bf16.mxu1 %v6953_v19 }
 0x4d2   : > { %s5589_s15 = spop %5588 }
 0x588   : > { %v1683_v0 = vpop.f32.mrb[20].mxu1 }
 0x589   : > { %v1684_v51 = vadd.f32 %v1683_v0, %v6069_v18  ;;  %v5305_v52 = vpop.f32.mrb[21].mxu1 }
 0x58a   : > { %v1686_v54 = vpop.f32.mrb[22].mxu1 }
 0x58b   : > { %v1689_v58 = vsel %vm918_vm7, %v1684_v51, -inf  ;;  %v5306_v53 = vpop.f32.mrb[23].mxu1 }
 0x58c   : > { %v1690_v59 = vrot.slane %v1689_v58, 4 }
 0x58e   : > { %v1691_v60 = vmax.f32 %v1689_v58, %v1690_v59 }
 0x590   : > { %v1692_v10 = vrot.slane %v1691_v60, 2  ;;  %v1789_v57 = vpop.f32.mrb[24].mxu1 }
 0x591   : > { %v5321_v5 = vpop.f32.mrb[25].mxu1  ;;  %v1790_v58 = vadd.f32 %v5963_v55, %v1789_v57 }
 0x592   : > { %v1693_v22 = vmax.f32 %v1691_v60, %v1692_v10  ;;  %v1792_v13 = vpop.f32.mrb[26].mxu1 }
 0x593   : > { %v5322_v15 = vpop.f32.mrb[27].mxu1 }
 0x594   : > { %v1694_v28 = vrot.slane %v1693_v22, 1 }
 0x596   : > { %v1695_v17 = vmax.f32 %v1693_v22, %v1694_v28 }
 0x598   : > { %v1696_v20 = vpack.c.bf16 %v1695_v17, %v1695_v17 }
 0x59a   : > { %5312 = vmatmul.mubr.msk.bf16.vlgmr.msra.gmra.mrb[24].mxu0 %vm918_vm7, %v1696_v20 }
 0x59b   : > { %5324 = vmatpush3.bf16.msra.mxu0 %v5833_v26  ;;  %5327 = vmatprep.mubr.msk.bf16.mxu0 %vm5675_vm1, %v6953_v19 }
 0x59c   : > { %5325 = vmatprep.subr.bf16.mxu0 %v6953_v19 }
 0x59f   : > { %5326 = vmatpush3.bf16.msra.mxu0 %v5846_v32 }
 0x5a0   : > { %5339 = vmatprep.subr.bf16.mxu0 %v6953_v19 }
 0x5a2   : > { %5328 = vmatmul.mubr.msk.bf16.vlgmr.msra.gmra.mrb[28].mxu0 %vm918_vm7, %v1645_v2 }
 0x5a3   : > { %5340 = vmatpush3.bf16.msra.mxu0 %v6051_v12  ;;  %5343 = vmatprep.mubr.msk.bf16.mxu0 %vm5675_vm1, %v6953_v19 }
 0x5a4   : > { %5341 = vmatprep.subr.bf16.mxu0 %v6953_v19 }
 0x5a7   : > { %5342 = vmatpush3.bf16.msra.mxu0 %v6061_v16 }
 0x5a8   : > { %5355 = vmatprep.subr.bf16.mxu0 %v6953_v19 }
 0x66d   : > { %v1734_v21 = vpop.f32.mrb[24].mxu0 }
 0x66e   : > { %v1735_v29 = vadd.f32 %v1734_v21, %v6087_v46  ;;  %v5313_v23 = vpop.f32.mrb[25].mxu0 }
 0x66f   : > { %v1737_v31 = vpop.f32.mrb[26].mxu0 }
 0x670   : > { %v5037_v30 = vmul.f32 -1.442695, %v1735_v29  ;;  %v5314_v34 = vpop.f32.mrb[27].mxu0 }
 0x672   : > { %5624 = vpow2.f32 %v5037_v30 }
 0x675   : > { %v1829_v36 = vpop.f32.mrb[28].mxu0 }
 0x676   : > { %v1836_v38 = vcombine.high %v1829_v36, %v1829_v36  ;;  %v1843_v40 = vrot.slane %v1829_v36, %v5953_v41  ;;  %v5329_v24 = vpop.f32.mrb[29].mxu0 }
 0x677   : > { %v1832_v44 = vpop.f32.mrb[30].mxu0 }
 0x678   : > { %v1850_v45 = vrot.slane %v1836_v38, %v5953_v41  ;;  %v1851_v27 = vcombine.high %v1843_v40, %v1843_v40  ;;  %v1859_v48 = vrot.slane %v1843_v40, %v5953_v41  ;;  %v5330_v2 = vpop.f32.mrb[31].mxu0 }
 0x67a   : > { %v1852_v0 = vcombine.high %v1850_v45, %v1850_v45  ;;  %v1866_v51 = vrot.slane %v1850_v45, %v5953_v41  ;;  %v1873_v52 = vrot.slane %v1851_v27, %v5953_v41  ;;  %v1881_v54 = vcombine.high %v1859_v48, %v1859_v48 }
 0x67b   : > { %v1888_v53 = vrot.slane %v1859_v48, %v5895_v56 }
 0x67c   : > { %v5625_v60 = vpop.eup %5624  ;;  %v1880_v10 = vrot.slane %v1852_v0, %v5953_v41  ;;  %v1882_v5 = vcombine.high %v1866_v51, %v1866_v51  ;;  %v1883_v22 = vcombine.high %v1873_v52, %v1873_v52  ;;  %v1892_v13 = vrot.slane %v1873_v52, %v5895_v56 }
 0x67d   : > { %v1743_v15 = vadd.f32 1.0, %v5625_v60  ;;  %v1896_v28 = vrot.slane %v1881_v54, %v5895_v56  ;;  %v1904_v17 = vrot.slane %v1866_v51, %v5895_v56  ;;  %v1925_v20 = vadd.f32 %v1888_v53, %v1790_v58 }
 0x67e   : > { %v1884_v21 = vcombine.high %v1880_v10, %v1880_v10  ;;  %v1900_v55 = vrot.slane %v1883_v22, %v5895_v56  ;;  %v1908_v57 = vrot.slane %v1880_v10, %v5895_v56  ;;  %v1912_v29 = vrot.slane %v1882_v5, %v5895_v56 }
 0x67f   : > { %5626 = vrcp.f32 %v1743_v15  ;;  %v1926_v23 = vadd.f32 %v1892_v13, %v1790_v58  ;;  %v1927_v31 = vadd.f32 %v1896_v28, %v1790_v58  ;;  %v1929_v30 = vadd.f32 %v1904_v17, %v1790_v58 }
 0x680   : > { %v1916_v34 = vrot.slane %v1884_v21, %v5895_v56  ;;  %v1928_v36 = vadd.f32 %v1900_v55, %v1790_v58  ;;  %v1930_v38 = vadd.f32 %v1908_v57, %v1790_v58  ;;  %v1931_v40 = vadd.f32 %v1912_v29, %v1790_v58 }
 0x681   : > { %v1933_v24 = vadd.f32 %v1925_v20, %v5903_v63  ;;  %v1934_v44 = vadd.f32 %v1926_v23, %v5909_v6  ;;  %v1935_v45 = vadd.f32 %v5901_v61, %v1927_v31  ;;  %v1937_v27 = vadd.f32 %v1929_v30, %v5913_v8 }
 0x682   : > { %v1932_v48 = vadd.f32 %v1916_v34, %v1790_v58  ;;  %v1936_v2 = vadd.f32 %v5906_v3, %v1928_v36  ;;  %v1938_v0 = vadd.f32 %v1930_v38, %v5919_v14  ;;  %v1939_v51 = vadd.f32 %v5911_v7, %v1931_v40  ;;  %v6954_v34 = vld [vmem:[#allocation5_spill] sm:$0xff] }
 0x683   : > { %v1941_v52 = vmax.f32 %v1933_v24, 0.0  ;;  %v1942_v54 = vmax.f32 %v1934_v44, 0.0  ;;  %v1943_v53 = vmax.f32 %v1935_v45, 0.0  ;;  %v1945_v60 = vmax.f32 %v1937_v27, 0.0 }
 0x684   : > { %v1940_v10 = vadd.f32 %v5916_v11, %v1932_v48  ;;  %v1944_v5 = vmax.f32 %v1936_v2, 0.0  ;;  %v1946_v22 = vmax.f32 %v1938_v0, 0.0  ;;  %v1947_v13 = vmax.f32 %v1939_v51, 0.0 }
 0x685   : > { %v1949_v15 = vadd.f32 %v1941_v52, %v5955_v42  ;;  %v1950_v28 = vadd.f32 %v1942_v54, %v5967_v62  ;;  %v1951_v58 = vadd.f32 %v1943_v53, %v5957_v43  ;;  %v1953_v17 = vadd.f32 %v1945_v60, %v5982_v25 }
 0x686   : > { %v1948_v20 = vmax.f32 %v1940_v10, 0.0  ;;  %v1952_v21 = vadd.f32 %v1944_v5, %v5971_v9  ;;  %v1954_v55 = vadd.f32 %v1946_v22, %v5986_v39  ;;  %v1955_v57 = vadd.f32 %v1947_v13, %v5996_v4 }
 0x687   : > { %v1957_v29 = vsel %vm918_vm7, %v1949_v15, -inf  ;;  %v1964_v23 = vsel %vm918_vm7, %v1950_v28, -inf  ;;  %v1971_v31 = vsel %vm918_vm7, %v1951_v58, -inf  ;;  %v1985_v30 = vsel %vm918_vm7, %v1953_v17, -inf }
 0x688   : > { %v1956_v36 = vadd.f32 %v1948_v20, %v6954_v34  ;;  %v1958_v38 = vrot.slane %v1957_v29, 4  ;;  %v1965_v40 = vrot.slane %v1964_v23, 4  ;;  %v1972_v24 = vrot.slane %v1971_v31, 4 }
 0x689   : > { %v5627_v44 = vpop.eup %5626  ;;  %v1978_v45 = vsel %vm918_vm7, %v1952_v21, -inf  ;;  %v1986_v27 = vrot.slane %v1985_v30, 4  ;;  %v1992_v48 = vsel %vm918_vm7, %v1954_v55, -inf  ;;  %v1999_v2 = vsel %vm918_vm7, %v1955_v57, -inf }
 0x68a   : > { %v1959_v0 = vmax.f32 %v1957_v29, %v1958_v38  ;;  %v1966_v51 = vmax.f32 %v1964_v23, %v1965_v40  ;;  %v1973_v52 = vmax.f32 %v1971_v31, %v1972_v24  ;;  %v1979_v54 = vrot.slane %v1978_v45, 4 }
 0x68b   : > { %v1987_v53 = vmax.f32 %v1985_v30, %v1986_v27  ;;  %v1993_v60 = vrot.slane %v1992_v48, 4  ;;  %v2000_v10 = vrot.slane %v1999_v2, 4  ;;  %v2006_v5 = vsel %vm918_vm7, %v1956_v36, -inf }
 0x68c   : > { %v1960_v22 = vrot.slane %v1959_v0, 2  ;;  %v1967_v13 = vrot.slane %v1966_v51, 2  ;;  %v1974_v15 = vrot.slane %v1973_v52, 2  ;;  %v1980_v28 = vmax.f32 %v1978_v45, %v1979_v54 }
 0x68d   : > { %v1988_v58 = vrot.slane %v1987_v53, 2  ;;  %v1994_v17 = vmax.f32 %v1992_v48, %v1993_v60  ;;  %v2001_v20 = vmax.f32 %v1999_v2, %v2000_v10  ;;  %v2007_v21 = vrot.slane %v2006_v5, 4 }
 0x68e   : > { %v1961_v55 = vmax.f32 %v1959_v0, %v1960_v22  ;;  %v1968_v59 = vmax.f32 %v1966_v51, %v1967_v13  ;;  %v1975_v57 = vmax.f32 %v1973_v52, %v1974_v15  ;;  %v1981_v29 = vrot.slane %v1980_v28, 2 }
 0x68f   : > { %v1989_v23 = vmax.f32 %v1987_v53, %v1988_v58  ;;  %v1995_v31 = vrot.slane %v1994_v17, 2  ;;  %v2002_v38 = vrot.slane %v2001_v20, 2  ;;  %v2008_v30 = vmax.f32 %v2006_v5, %v2007_v21 }
 0x690   : > { %v1962_v40 = vrot.slane %v1961_v55, 1  ;;  %v1969_v24 = vrot.slane %v1968_v59, 1  ;;  %v1976_v27 = vrot.slane %v1975_v57, 1  ;;  %v1982_v36 = vmax.f32 %v1980_v28, %v1981_v29 }
 0x691   : > { %v1990_v33 = vrot.slane %v1989_v23, 1  ;;  %v1996_v34 = vmax.f32 %v1994_v17, %v1995_v31  ;;  %v2003_v4 = vmax.f32 %v2001_v20, %v2002_v38  ;;  %v6955_v45 = vsub.f32 1.0, %v6125_v1 }
 0x692   : > { %v1963_v2 = vmax.f32 %v1961_v55, %v1962_v40  ;;  %v1970_v54 = vmax.f32 %v1968_v59, %v1969_v24  ;;  %v1977_v0 = vmax.f32 %v1975_v57, %v1976_v27  ;;  %v1983_v51 = vrot.slane %v1982_v36, 1 }
 0x693   : > { %v1746_v48 = vmul.f32 %v5627_v44, %v6955_v45  ;;  %v1997_v52 = vrot.slane %v1996_v34, 1  ;;  %v2004_v53 = vrot.slane %v2003_v4, 1  ;;  %v2009_v60 = vrot.slane %v2008_v30, 2 }
 0x694   : > { %v1984_v10 = vmax.f32 %v1982_v36, %v1983_v51  ;;  %v2021_v5 = vsel %vm1246_vm8, %v1970_v54, %v1963_v2  ;;  %v1753_v22 = vsub.f32 1.0, %v5627_v44  ;;  %v1991_v13 = vmax.f32 %v1989_v23, %v1990_v33 }
 0x695   : > { %5590 = vpush %v1746_v48  ;;  %v2010_v15 = vmax.f32 %v2008_v30, %v2009_v60  ;;  %v2022_v28 = vsel %vm1248_vm9, %v1977_v0, %v2021_v5  ;;  %v1998_v58 = vmax.f32 %v1996_v34, %v1997_v52  ;;  %v6956_v20 = vmov %v6955_v45 }
 0x696   : > { %v2023_v17 = vsel %vm1250_vm10, %v1984_v10, %v2022_v28  ;;  %v6223_v59 = vmul.f32 %v1753_v22, %v6956_v20  ;;  %v2005_v21 = vmax.f32 %v2003_v4, %v2004_v53 }
 0x697   : > { %v2011_v55 = vrot.slane %v2010_v15, 1  ;;  %v2024_v57 = vsel %vm1252_vm11, %v1991_v13, %v2023_v17 }
 0x698   : > { %v2025_v29 = vsel %vm1254_vm12, %v1998_v58, %v2024_v57 }
 0x699   : > { %v2012_v31 = vmax.f32 %v2010_v15, %v2011_v55  ;;  %v2026_v44 = vsel %vm1256_vm13, %v2005_v21, %v2025_v29 }
 0x69b   : > { %v2027_v33 = vsel %vm1258_vm14, %v2012_v31, %v2026_v44 }
 0x69c   : > { %v6231_v34 = vsel %vm617_vm15, 0.0, %v2027_v33 }
 0x69d   : > { %6957 = vst [vmem:[#allocation8_spill] sm:$0xff] %v6231_v34  ;;  %v2030_v1 = vpack.c.bf16 %v6231_v34, %v6231_v34 }
 0x69f   : > { %5336 = vmatmul.mubr.msk.bf16.vlgmr.msra.gmra.mrb[28].mxu1 %vm918_vm7, %v2030_v1 }
 0x6a0   : > { %5348 = vmatpush3.bf16.msra.mxu1 %v5873_v47  ;;  %5351 = vmatprep.mubr.msk.bf16.mxu1 %vm5675_vm1, %v6953_v19 }
 0x6a1   : > { %5349 = vmatprep.subr.bf16.mxu1 %v6953_v19 }
 0x6a4   : > { %5350 = vmatpush3.bf16.msra.mxu1 %v5888_v50 }
 0x6a5   : > { %5363 = vmatprep.subr.bf16.mxu1 %v6953_v19 }
 0x6a7   : > { %5352 = vmatmul.mubr.msk.bf16.vlgmr.msra.gmra.mrb[32].mxu1 %vm918_vm7, %v2030_v1 }
 0x6a8   : > { %5364 = vmatpush3.bf16.msra.mxu1 %v5941_v35  ;;  %5367 = vmatprep.mubr.msk.bf16.mxu1 %vm5675_vm1, %v6953_v19 }
 0x6a9   : > { %5365 = vmatprep.subr.bf16.mxu1 %v6953_v19 }
 0x6ac   : > { %5366 = vmatpush3.bf16.msra.mxu1 %v5947_v37 }
 0x6ad   : > { %5379 = vmatprep.subr.bf16.mxu1 %v6953_v19 }
 0x6c6   : > { %s5591_s21 = spop %5590 }
 0x772   : > { %v2068_v4 = vpop.f32.mrb[28].mxu1 }
 0x773   : > { %v2069_v23 = vadd.f32 %v2068_v4, %v6069_v18  ;;  %v5337_v38 = vpop.f32.mrb[29].mxu1 }
 0x774   : > { %v2071_v30 = vpop.f32.mrb[30].mxu1 }
 0x775   : > { %v2074_v40 = vsel %vm918_vm7, %v2069_v23, -inf  ;;  %v5338_v24 = vpop.f32.mrb[31].mxu1  ;;  %v6274_v23 = vld [vmem:[%s6916_s10] ss:$0 sm:$0xff] }
 0x776   : > { %v2075_v27 = vrot.slane %v2074_v40, 4 }
 0x778   : > { %v2076_v36 = vmax.f32 %v2074_v40, %v2075_v27 }
 0x77a   : > { %v2077_v45 = vrot.slane %v2076_v36, 2  ;;  %v2174_v48 = vpop.f32.mrb[32].mxu1 }
 0x77b   : > { %v5353_v2 = vpop.f32.mrb[33].mxu1  ;;  %v2175_v38 = vadd.f32 %v6274_v23, %v2174_v48 }
 0x77c   : > { %v2078_v54 = vmax.f32 %v2076_v36, %v2077_v45  ;;  %v2177_v0 = vpop.f32.mrb[34].mxu1 }
 0x77d   : > { %v5354_v51 = vpop.f32.mrb[35].mxu1 }
 0x77e   : > { %v2079_v52 = vrot.slane %v2078_v54, 1 }
 0x780   : > { %v2080_v53 = vmax.f32 %v2078_v54, %v2079_v52 }
 0x782   : > { %v2081_v60 = vpack.c.bf16 %v2080_v53, %v2080_v53 }
 0x784   : > { %5344 = vmatmul.mubr.msk.bf16.vlgmr.msra.gmra.mrb[32].mxu0 %vm918_vm7, %v2081_v60 }
 0x785   : > { %5356 = vmatpush3.bf16.msra.mxu0 %v5833_v26  ;;  %5359 = vmatprep.mubr.msk.bf16.mxu0 %vm5675_vm1, %v6953_v19 }
 0x786   : > { %5357 = vmatprep.subr.bf16.mxu0 %v6953_v19 }
 0x789   : > { %5358 = vmatpush3.bf16.msra.mxu0 %v5846_v32 }
 0x78a   : > { %5371 = vmatprep.subr.bf16.mxu0 %v6953_v19 }
 0x78c   : > { %5360 = vmatmul.mubr.msk.bf16.vlgmr.msra.gmra.mrb[36].mxu0 %vm918_vm7, %v2030_v1 }
 0x78d   : > { %5372 = vmatpush3.bf16.msra.mxu0 %v6051_v12  ;;  %5375 = vmatprep.mubr.msk.bf16.mxu0 %vm5675_vm1, %v6953_v19 }
 0x78e   : > { %5373 = vmatprep.subr.bf16.mxu0 %v6953_v19 }
 0x791   : > { %5374 = vmatpush3.bf16.msra.mxu0 %v6061_v16 }
 0x792   : > { %5387 = vmatprep.subr.bf16.mxu0 %v6953_v19 }
 0x857   : > { %v2119_v10 = vpop.f32.mrb[32].mxu0 }
 0x858   : > { %v2120_v5 = vadd.f32 %v2119_v10, %v6087_v46  ;;  %v5345_v22 = vpop.f32.mrb[33].mxu0 }
 0x859   : > { %v2122_v13 = vpop.f32.mrb[34].mxu0 }
 0x85a   : > { %v5042_v15 = vmul.f32 -1.442695, %v2120_v5  ;;  %v5346_v28 = vpop.f32.mrb[35].mxu0 }
 0x85c   : > { %5628 = vpow2.f32 %v5042_v15 }
 0x85f   : > { %v2214_v58 = vpop.f32.mrb[36].mxu0 }
 0x860   : > { %v2221_v17 = vcombine.high %v2214_v58, %v2214_v58  ;;  %v2228_v20 = vrot.slane %v2214_v58, %v5953_v41  ;;  %v5361_v21 = vpop.f32.mrb[37].mxu0 }
 0x861   : > { %v2217_v55 = vpop.f32.mrb[38].mxu0 }
 0x862   : > { %v2235_v57 = vrot.slane %v2221_v17, %v5953_v41  ;;  %v2236_v29 = vcombine.high %v2228_v20, %v2228_v20  ;;  %v2244_v31 = vrot.slane %v2228_v20, %v5953_v41  ;;  %v5362_v44 = vpop.f32.mrb[39].mxu0 }
 0x864   : > { %v2237_v33 = vcombine.high %v2235_v57, %v2235_v57  ;;  %v2251_v46 = vrot.slane %v2235_v57, %v5953_v41  ;;  %v2258_v1 = vrot.slane %v2236_v29, %v5953_v41  ;;  %v2266_v4 = vcombine.high %v2244_v31, %v2244_v31 }
 0x865   : > { %v2273_v30 = vrot.slane %v2244_v31, %v5895_v56 }
 0x866   : > { %v5629_v40 = vpop.eup %5628  ;;  %v2265_v24 = vrot.slane %v2237_v33, %v5953_v41  ;;  %v2267_v27 = vcombine.high %v2251_v46, %v2251_v46  ;;  %v2268_v36 = vcombine.high %v2258_v1, %v2258_v1  ;;  %v2277_v45 = vrot.slane %v2258_v1, %v5895_v56 }
 0x867   : > { %v2128_v2 = vadd.f32 1.0, %v5629_v40  ;;  %v2281_v54 = vrot.slane %v2266_v4, %v5895_v56  ;;  %v2289_v0 = vrot.slane %v2251_v46, %v5895_v56  ;;  %v2310_v51 = vadd.f32 %v2273_v30, %v2175_v38 }
 0x868   : > { %v2269_v52 = vcombine.high %v2265_v24, %v2265_v24  ;;  %v2285_v53 = vrot.slane %v2268_v36, %v5895_v56  ;;  %v2293_v48 = vrot.slane %v2265_v24, %v5895_v56  ;;  %v2297_v60 = vrot.slane %v2267_v27, %v5895_v56 }
 0x869   : > { %5630 = vrcp.f32 %v2128_v2  ;;  %v2311_v10 = vadd.f32 %v2277_v45, %v2175_v38  ;;  %v2312_v5 = vadd.f32 %v2281_v54, %v2175_v38  ;;  %v2314_v22 = vadd.f32 %v2289_v0, %v2175_v38 }
 0x86a   : > { %v2301_v13 = vrot.slane %v2269_v52, %v5895_v56  ;;  %v2313_v15 = vadd.f32 %v2285_v53, %v2175_v38  ;;  %v2315_v28 = vadd.f32 %v2293_v48, %v2175_v38  ;;  %v2316_v58 = vadd.f32 %v2297_v60, %v2175_v38  ;;  %v6958_v52 = vld [vmem:[#allocation4_spill] sm:$0xff] }
 0x86b   : > { %v2318_v17 = vadd.f32 %v2310_v51, %v5903_v63  ;;  %v2319_v20 = vadd.f32 %v2311_v10, %v5909_v6  ;;  %v2320_v21 = vadd.f32 %v5901_v61, %v2312_v5  ;;  %v2322_v55 = vadd.f32 %v2314_v22, %v5913_v8  ;;  %v6959_v22 = vld [vmem:[#allocation5_spill] sm:$0xff] }
 0x86c   : > { %v2317_v57 = vadd.f32 %v2301_v13, %v2175_v38  ;;  %v2321_v29 = vadd.f32 %v5906_v3, %v2313_v15  ;;  %v2323_v31 = vadd.f32 %v2315_v28, %v5919_v14  ;;  %v2324_v44 = vadd.f32 %v5911_v7, %v2316_v58 }
 0x86d   : > { %v2326_v33 = vmax.f32 %v2318_v17, 0.0  ;;  %v2327_v46 = vmax.f32 %v2319_v20, 0.0  ;;  %v2328_v1 = vmax.f32 %v2320_v21, 0.0  ;;  %v2330_v4 = vmax.f32 %v2322_v55, 0.0 }
 0x86e   : > { %v2325_v30 = vadd.f32 %v5916_v11, %v2317_v57  ;;  %v2329_v40 = vmax.f32 %v2321_v29, 0.0  ;;  %v2331_v24 = vmax.f32 %v2323_v31, 0.0  ;;  %v2332_v27 = vmax.f32 %v2324_v44, 0.0 }
 0x86f   : > { %v2334_v36 = vadd.f32 %v2326_v33, %v5955_v42  ;;  %v2335_v45 = vadd.f32 %v2327_v46, %v5967_v62  ;;  %v2336_v38 = vadd.f32 %v2328_v1, %v5957_v43  ;;  %v2338_v2 = vadd.f32 %v2330_v4, %v5982_v25 }
 0x870   : > { %v2333_v54 = vmax.f32 %v2325_v30, 0.0  ;;  %v2337_v0 = vadd.f32 %v2329_v40, %v5971_v9  ;;  %v2339_v51 = vadd.f32 %v2331_v24, %v5986_v39  ;;  %v2340_v53 = vadd.f32 %v2332_v27, %v6958_v52 }
 0x871   : > { %v2342_v48 = vsel %vm918_vm7, %v2334_v36, -inf  ;;  %v2349_v60 = vsel %vm918_vm7, %v2335_v45, -inf  ;;  %v2356_v10 = vsel %vm918_vm7, %v2336_v38, -inf  ;;  %v2370_v5 = vsel %vm918_vm7, %v2338_v2, -inf }
 0x872   : > { %v2341_v13 = vadd.f32 %v2333_v54, %v6959_v22  ;;  %v2343_v15 = vrot.slane %v2342_v48, 4  ;;  %v2350_v28 = vrot.slane %v2349_v60, 4  ;;  %v2357_v58 = vrot.slane %v2356_v10, 4 }
 0x873   : > { %v5631_v17 = vpop.eup %5630  ;;  %v2363_v20 = vsel %vm918_vm7, %v2337_v0, -inf  ;;  %v2371_v21 = vrot.slane %v2370_v5, 4  ;;  %v2377_v55 = vsel %vm918_vm7, %v2339_v51, -inf  ;;  %v2384_v57 = vsel %vm918_vm7, %v2340_v53, -inf }
 0x874   : > { %v2344_v29 = vmax.f32 %v2342_v48, %v2343_v15  ;;  %v2351_v31 = vmax.f32 %v2349_v60, %v2350_v28  ;;  %v2358_v44 = vmax.f32 %v2356_v10, %v2357_v58  ;;  %v2364_v33 = vrot.slane %v2363_v20, 4 }
 0x875   : > { %v2372_v46 = vmax.f32 %v2370_v5, %v2371_v21  ;;  %v2378_v1 = vrot.slane %v2377_v55, 4  ;;  %v2385_v4 = vrot.slane %v2384_v57, 4  ;;  %v2391_v30 = vsel %vm918_vm7, %v2341_v13, -inf }
 0x876   : > { %v2345_v40 = vrot.slane %v2344_v29, 2  ;;  %v2352_v24 = vrot.slane %v2351_v31, 2  ;;  %v2359_v27 = vrot.slane %v2358_v44, 2  ;;  %v2365_v36 = vmax.f32 %v2363_v20, %v2364_v33 }
 0x877   : > { %v2373_v45 = vrot.slane %v2372_v46, 2  ;;  %v2379_v38 = vmax.f32 %v2377_v55, %v2378_v1  ;;  %v2386_v2 = vmax.f32 %v2384_v57, %v2385_v4  ;;  %v2392_v54 = vrot.slane %v2391_v30, 4 }
 0x878   : > { %v2346_v0 = vmax.f32 %v2344_v29, %v2345_v40  ;;  %v2353_v51 = vmax.f32 %v2351_v31, %v2352_v24  ;;  %v2360_v53 = vmax.f32 %v2358_v44, %v2359_v27  ;;  %v2366_v48 = vrot.slane %v2365_v36, 2 }
 0x879   : > { %v2374_v60 = vmax.f32 %v2372_v46, %v2373_v45  ;;  %v2380_v10 = vrot.slane %v2379_v38, 2  ;;  %v2387_v15 = vrot.slane %v2386_v2, 2  ;;  %v2393_v5 = vmax.f32 %v2391_v30, %v2392_v54 }
 0x87a   : > { %v2347_v28 = vrot.slane %v2346_v0, 1  ;;  %v2354_v58 = vrot.slane %v2353_v51, 1  ;;  %v2361_v21 = vrot.slane %v2360_v53, 1  ;;  %v2367_v13 = vmax.f32 %v2365_v36, %v2366_v48 }
 0x87b   : > { %v2375_v34 = vrot.slane %v2374_v60, 1  ;;  %v2381_v22 = vmax.f32 %v2379_v38, %v2380_v10  ;;  %v2388_v52 = vmax.f32 %v2386_v2, %v2387_v15  ;;  %v2131_v20 = vmul.f32 %v5631_v17, %v6223_v59 }
 0x87c   : > { %v2348_v55 = vmax.f32 %v2346_v0, %v2347_v28  ;;  %v2355_v57 = vmax.f32 %v2353_v51, %v2354_v58  ;;  %v2362_v33 = vmax.f32 %v2360_v53, %v2361_v21  ;;  %v2368_v29 = vrot.slane %v2367_v13, 1 }
 0x87d   : > { %v2382_v31 = vrot.slane %v2381_v22, 1  ;;  %5592 = vpush %v2131_v20  ;;  %v2389_v44 = vrot.slane %v2388_v52, 1  ;;  %v2394_v46 = vrot.slane %v2393_v5, 2  ;;  %v2138_v30 = vsub.f32 1.0, %v5631_v17 }
 0x87e   : > { %v2369_v1 = vmax.f32 %v2367_v13, %v2368_v29  ;;  %v2406_v4 = vsel %vm1246_vm8, %v2355_v57, %v2348_v55  ;;  %v2376_v40 = vmax.f32 %v2374_v60, %v2375_v34 }
 0x87f   : > { %v2395_v24 = vmax.f32 %v2393_v5, %v2394_v46  ;;  %v2407_v27 = vsel %vm1248_vm9, %v2362_v33, %v2406_v4  ;;  %v2383_v36 = vmax.f32 %v2381_v22, %v2382_v31  ;;  %v6315_v38 = vmul.f32 %v2138_v30, %v6223_v59 }
 0x880   : > { %v2408_v45 = vsel %vm1250_vm10, %v2369_v1, %v2407_v27  ;;  %v2390_v2 = vmax.f32 %v2388_v52, %v2389_v44  ;;  %v6357_v1 = vld [vmem:[#allocation2] sm:$0x1] }
 0x881   : > { %v2396_v54 = vrot.slane %v2395_v24, 1  ;;  %v2409_v0 = vsel %vm1252_vm11, %v2376_v40, %v2408_v45 }
 0x882   : > { %v2410_v51 = vsel %vm1254_vm12, %v2383_v36, %v2409_v0 }
 0x883   : > { %v2397_v53 = vmax.f32 %v2395_v24, %v2396_v54  ;;  %v2411_v48 = vsel %vm1256_vm13, %v2390_v2, %v2410_v51 }
 0x885   : > { %v2412_v34 = vsel %vm1258_vm14, %v2397_v53, %v2411_v48 }
 0x886   : > { %v6323_v17 = vsel %vm617_vm15, 0.0, %v2412_v34 }
 0x887   : > { %6960 = vst [vmem:[#allocation9_spill] sm:$0xff] %v6323_v17  ;;  %v2415_v22 = vpack.c.bf16 %v6323_v17, %v6323_v17 }
 0x889   : > { %5368 = vmatmul.mubr.msk.bf16.vlgmr.msra.gmra.mrb[36].mxu1 %vm918_vm7, %v2415_v22 }
 0x88a   : > { %5380 = vmatpush3.bf16.msra.mxu1 %v5873_v47  ;;  %5383 = vmatprep.mubr.msk.bf16.mxu1 %vm5675_vm1, %v6953_v19 }
 0x88b   : > { %5381 = vmatprep.subr.bf16.mxu1 %v6953_v19 }
 0x88e   : > { %5382 = vmatpush3.bf16.msra.mxu1 %v5888_v50 }
 0x88f   : > { %5395 = vmatprep.subr.bf16.mxu1 %v6953_v19 }
 0x891   : > { %5384 = vmatmul.mubr.msk.bf16.vlgmr.msra.gmra.mrb[40].mxu1 %vm918_vm7, %v2415_v22 }
 0x892   : > { %5396 = vmatpush3.bf16.msra.mxu1 %v5941_v35  ;;  %5399 = vmatprep.mubr.msk.bf16.mxu1 %vm5675_vm1, %v6953_v19 }
 0x893   : > { %5397 = vmatprep.subr.bf16.mxu1 %v6953_v19 }
 0x896   : > { %5398 = vmatpush3.bf16.msra.mxu1 %v5947_v37 }
 0x897   : > { %5411 = vmatprep.subr.bf16.mxu1 %v6953_v19 }
 0x8ae   : > { %s5593_s22 = spop %5592 }
 0x95c   : > { %v2453_v59 = vpop.f32.mrb[36].mxu1 }
 0x95d   : > { %v2454_v52 = vadd.f32 %v2453_v59, %v6069_v18  ;;  %v5369_v60 = vpop.f32.mrb[37].mxu1 }
 0x95e   : > { %v2456_v10 = vpop.f32.mrb[38].mxu1 }
 0x95f   : > { %v2459_v15 = vsel %vm918_vm7, %v2454_v52, -inf  ;;  %v5370_v5 = vpop.f32.mrb[39].mxu1 }
 0x960   : > { %v2460_v28 = vrot.slane %v2459_v15, 4 }
 0x962   : > { %v2461_v58 = vmax.f32 %v2459_v15, %v2460_v28 }
 0x964   : > { %v2462_v21 = vrot.slane %v2461_v58, 2  ;;  %v2559_v13 = vpop.f32.mrb[40].mxu1 }
 0x965   : > { %v5385_v20 = vpop.f32.mrb[41].mxu1  ;;  %v2560_v10 = vadd.f32 %v6274_v23, %v2559_v13 }
 0x966   : > { %v2463_v55 = vmax.f32 %v2461_v58, %v2462_v21  ;;  %v2562_v57 = vpop.f32.mrb[42].mxu1 }
 0x967   : > { %v5386_v33 = vpop.f32.mrb[43].mxu1 }
 0x968   : > { %v2464_v29 = vrot.slane %v2463_v55, 1 }
 0x96a   : > { %v2465_v31 = vmax.f32 %v2463_v55, %v2464_v29 }
 0x96c   : > { %v2466_v44 = vpack.c.bf16 %v2465_v31, %v2465_v31 }
 0x96e   : > { %5376 = vmatmul.mubr.msk.bf16.vlgmr.msra.gmra.mrb[40].mxu0 %vm918_vm7, %v2466_v44 }
 0x96f   : > { %5388 = vmatpush3.bf16.msra.mxu0 %v5833_v26  ;;  %5391 = vmatprep.mubr.msk.bf16.mxu0 %vm5675_vm1, %v6953_v19 }
 0x970   : > { %5389 = vmatprep.subr.bf16.mxu0 %v6953_v19 }
 0x973   : > { %5390 = vmatpush3.bf16.msra.mxu0 %v5846_v32 }
 0x974   : > { %5403 = vmatprep.subr.bf16.mxu0 %v6953_v19 }
 0x976   : > { %5392 = vmatmul.mubr.msk.bf16.vlgmr.msra.gmra.mrb[44].mxu0 %vm918_vm7, %v2415_v22 }
 0x977   : > { %5404 = vmatpush3.bf16.msra.mxu0 %v6051_v12  ;;  %5407 = vmatprep.mubr.msk.bf16.mxu0 %vm5675_vm1, %v6953_v19 }
 0x978   : > { %5405 = vmatprep.subr.bf16.mxu0 %v6953_v19 }
 0x97b   : > { %5406 = vmatpush3.bf16.msra.mxu0 %v6061_v16 }
 0x97c   : > { %5419 = vmatprep.subr.bf16.mxu0 %v6953_v19 }
 0xa41   : > { %v2504_v46 = vpop.f32.mrb[40].mxu0 }
 0xa42   : > { %v2505_v4 = vadd.f32 %v6357_v1, %v2504_v46  ;;  %v5377_v30 = vpop.f32.mrb[41].mxu0 }
 0xa43   : > { %v2507_v40 = vpop.f32.mrb[42].mxu0 }
 0xa44   : > { %v5047_v24 = vmul.f32 -1.442695, %v2505_v4  ;;  %v5378_v27 = vpop.f32.mrb[43].mxu0 }
 0xa46   : > { %5632 = vpow2.f32 %v5047_v24 }
 0xa49   : > { %v2599_v36 = vpop.f32.mrb[44].mxu0 }
 0xa4a   : > { %v2606_v45 = vcombine.high %v2599_v36, %v2599_v36  ;;  %v2613_v2 = vrot.slane %v2599_v36, %v5953_v41  ;;  %v5393_v54 = vpop.f32.mrb[45].mxu0 }
 0xa4b   : > { %v2602_v0 = vpop.f32.mrb[46].mxu0 }
 0xa4c   : > { %v2620_v51 = vrot.slane %v2606_v45, %v5953_v41  ;;  %v2621_v53 = vcombine.high %v2613_v2, %v2613_v2  ;;  %v2629_v48 = vrot.slane %v2613_v2, %v5953_v41  ;;  %v5394_v34 = vpop.f32.mrb[47].mxu0 }
 0xa4e   : > { %v2622_v22 = vcombine.high %v2620_v51, %v2620_v51  ;;  %v2636_v59 = vrot.slane %v2620_v51, %v5953_v41  ;;  %v2643_v52 = vrot.slane %v2621_v53, %v5953_v41  ;;  %v2651_v60 = vcombine.high %v2629_v48, %v2629_v48 }
 0xa4f   : > { %v2658_v15 = vrot.slane %v2629_v48, %v5895_v56 }
 0xa50   : > { %v5633_v5 = vpop.eup %5632  ;;  %v2650_v28 = vrot.slane %v2622_v22, %v5953_v41  ;;  %v2652_v58 = vcombine.high %v2636_v59, %v2636_v59  ;;  %v2653_v21 = vcombine.high %v2643_v52, %v2643_v52  ;;  %v2662_v20 = vrot.slane %v2643_v52, %v5895_v56 }
 0xa51   : > { %v2513_v55 = vadd.f32 1.0, %v5633_v5  ;;  %v2666_v57 = vrot.slane %v2651_v60, %v5895_v56  ;;  %v2674_v33 = vrot.slane %v2636_v59, %v5895_v56  ;;  %v2695_v29 = vadd.f32 %v2658_v15, %v2560_v10 }
 0xa52   : > { %v2654_v31 = vcombine.high %v2650_v28, %v2650_v28  ;;  %v2670_v44 = vrot.slane %v2653_v21, %v5895_v56  ;;  %v2678_v13 = vrot.slane %v2650_v28, %v5895_v56  ;;  %v2682_v46 = vrot.slane %v2652_v58, %v5895_v56 }
 0xa53   : > { %5634 = vrcp.f32 %v2513_v55  ;;  %v2696_v4 = vadd.f32 %v2662_v20, %v2560_v10  ;;  %v2697_v30 = vadd.f32 %v2666_v57, %v2560_v10  ;;  %v2699_v40 = vadd.f32 %v2674_v33, %v2560_v10 }
 0xa54   : > { %v2686_v24 = vrot.slane %v2654_v31, %v5895_v56  ;;  %v2698_v27 = vadd.f32 %v2670_v44, %v2560_v10  ;;  %v2700_v36 = vadd.f32 %v2678_v13, %v2560_v10  ;;  %v2701_v45 = vadd.f32 %v2682_v46, %v2560_v10  ;;  %v6961_v44 = vld [vmem:[#allocation4_spill] sm:$0xff] }
 0xa55   : > { %v2703_v2 = vadd.f32 %v2695_v29, %v5903_v63  ;;  %v2704_v54 = vadd.f32 %v2696_v4, %v5909_v6  ;;  %v2705_v0 = vadd.f32 %v5901_v61, %v2697_v30  ;;  %v2707_v51 = vadd.f32 %v2699_v40, %v5913_v8 }
 0xa56   : > { %v2702_v53 = vadd.f32 %v2686_v24, %v2560_v10  ;;  %v2706_v48 = vadd.f32 %v5906_v3, %v2698_v27  ;;  %v2708_v34 = vadd.f32 %v2700_v36, %v5919_v14  ;;  %v2709_v22 = vadd.f32 %v5911_v7, %v2701_v45  ;;  %v6962_v24 = vld [vmem:[#allocation5_spill] sm:$0xff] }
 0xa57   : > { %v2711_v59 = vmax.f32 %v2703_v2, 0.0  ;;  %v2712_v52 = vmax.f32 %v2704_v54, 0.0  ;;  %v2713_v60 = vmax.f32 %v2705_v0, 0.0  ;;  %v2715_v15 = vmax.f32 %v2707_v51, 0.0 }
 0xa58   : > { %v2710_v5 = vadd.f32 %v5916_v11, %v2702_v53  ;;  %v2714_v28 = vmax.f32 %v2706_v48, 0.0  ;;  %v2716_v58 = vmax.f32 %v2708_v34, 0.0  ;;  %v2717_v21 = vmax.f32 %v2709_v22, 0.0 }
 0xa59   : > { %v2719_v20 = vadd.f32 %v2711_v59, %v5955_v42  ;;  %v2720_v55 = vadd.f32 %v2712_v52, %v5967_v62  ;;  %v2721_v10 = vadd.f32 %v2713_v60, %v5957_v43  ;;  %v2723_v57 = vadd.f32 %v2715_v15, %v5982_v25 }
 0xa5a   : > { %v2718_v33 = vmax.f32 %v2710_v5, 0.0  ;;  %v2722_v29 = vadd.f32 %v2714_v28, %v5971_v9  ;;  %v2724_v31 = vadd.f32 %v2716_v58, %v5986_v39  ;;  %v2725_v13 = vadd.f32 %v2717_v21, %v6961_v44 }
 0xa5b   : > { %v2727_v46 = vsel %vm918_vm7, %v2719_v20, -inf  ;;  %v2734_v4 = vsel %vm918_vm7, %v2720_v55, -inf  ;;  %v2741_v30 = vsel %vm918_vm7, %v2721_v10, -inf  ;;  %v2755_v40 = vsel %vm918_vm7, %v2723_v57, -inf }
 0xa5c   : > { %v2726_v27 = vadd.f32 %v2718_v33, %v6962_v24  ;;  %v2728_v36 = vrot.slane %v2727_v46, 4  ;;  %v2735_v45 = vrot.slane %v2734_v4, 4  ;;  %v2742_v2 = vrot.slane %v2741_v30, 4 }
 0xa5d   : > { %v5635_v54 = vpop.eup %5634  ;;  %v2748_v0 = vsel %vm918_vm7, %v2722_v29, -inf  ;;  %v2756_v51 = vrot.slane %v2755_v40, 4  ;;  %v2762_v53 = vsel %vm918_vm7, %v2724_v31, -inf  ;;  %v2769_v48 = vsel %vm918_vm7, %v2725_v13, -inf }
 0xa5e   : > { %v2729_v34 = vmax.f32 %v2727_v46, %v2728_v36  ;;  %v2736_v22 = vmax.f32 %v2734_v4, %v2735_v45  ;;  %v2743_v59 = vmax.f32 %v2741_v30, %v2742_v2  ;;  %v2749_v52 = vrot.slane %v2748_v0, 4 }
 0xa5f   : > { %v2757_v60 = vmax.f32 %v2755_v40, %v2756_v51  ;;  %v2763_v15 = vrot.slane %v2762_v53, 4  ;;  %v2770_v5 = vrot.slane %v2769_v48, 4  ;;  %v2776_v28 = vsel %vm918_vm7, %v2726_v27, -inf }
 0xa60   : > { %v2730_v58 = vrot.slane %v2729_v34, 2  ;;  %v2737_v21 = vrot.slane %v2736_v22, 2  ;;  %v2744_v20 = vrot.slane %v2743_v59, 2  ;;  %v2750_v55 = vmax.f32 %v2748_v0, %v2749_v52 }
 0xa61   : > { %v2758_v10 = vrot.slane %v2757_v60, 2  ;;  %v2764_v57 = vmax.f32 %v2762_v53, %v2763_v15  ;;  %v2771_v33 = vmax.f32 %v2769_v48, %v2770_v5  ;;  %v2777_v29 = vrot.slane %v2776_v28, 4 }
 0xa62   : > { %v2731_v31 = vmax.f32 %v2729_v34, %v2730_v58  ;;  %v2738_v17 = vmax.f32 %v2736_v22, %v2737_v21  ;;  %v2745_v13 = vmax.f32 %v2743_v59, %v2744_v20  ;;  %v2751_v46 = vrot.slane %v2750_v55, 2 }
 0xa63   : > { %v2759_v4 = vmax.f32 %v2757_v60, %v2758_v10  ;;  %v2765_v30 = vrot.slane %v2764_v57, 2  ;;  %v2772_v36 = vrot.slane %v2771_v33, 2  ;;  %v2778_v40 = vmax.f32 %v2776_v28, %v2777_v29 }
 0xa64   : > { %v2732_v45 = vrot.slane %v2731_v31, 1  ;;  %v2739_v2 = vrot.slane %v2738_v17, 1  ;;  %v2746_v51 = vrot.slane %v2745_v13, 1  ;;  %v2752_v27 = vmax.f32 %v2750_v55, %v2751_v46 }
 0xa65   : > { %v2760_v24 = vrot.slane %v2759_v4, 1  ;;  %v2766_v44 = vmax.f32 %v2764_v57, %v2765_v30  ;;  %v2773_v39 = vmax.f32 %v2771_v33, %v2772_v36  ;;  %v2516_v0 = vmul.f32 %v5635_v54, %v6315_v38 }
 0xa66   : > { %v2733_v53 = vmax.f32 %v2731_v31, %v2732_v45  ;;  %v2740_v48 = vmax.f32 %v2738_v17, %v2739_v2  ;;  %v2747_v52 = vmax.f32 %v2745_v13, %v2746_v51  ;;  %v2753_v34 = vrot.slane %v2752_v27, 1 }
 0xa67   : > { %v2767_v22 = vrot.slane %v2766_v44, 1  ;;  %5594 = vpush %v2516_v0  ;;  %v2774_v59 = vrot.slane %v2773_v39, 1  ;;  %v2779_v60 = vrot.slane %v2778_v40, 2  ;;  %v2523_v28 = vsub.f32 1.0, %v5635_v54 }
 0xa68   : > { %v2754_v15 = vmax.f32 %v2752_v27, %v2753_v34  ;;  %v2791_v5 = vsel %vm1246_vm8, %v2740_v48, %v2733_v53  ;;  %v2761_v58 = vmax.f32 %v2759_v4, %v2760_v24 }
 0xa69   : > { %v2780_v21 = vmax.f32 %v2778_v40, %v2779_v60  ;;  %v2792_v20 = vsel %vm1248_vm9, %v2747_v52, %v2791_v5  ;;  %v2768_v55 = vmax.f32 %v2766_v44, %v2767_v22  ;;  %v6404_v57 = vmul.f32 %v2523_v28, %v6315_v38 }
 0xa6a   : > { %v2793_v10 = vsel %vm1250_vm10, %v2754_v15, %v2792_v20  ;;  %v2775_v17 = vmax.f32 %v2773_v39, %v2774_v59 }
 0xa6b   : > { %v2781_v33 = vrot.slane %v2780_v21, 1  ;;  %v2794_v29 = vsel %vm1252_vm11, %v2761_v58, %v2793_v10 }
 0xa6c   : > { %v2795_v31 = vsel %vm1254_vm12, %v2768_v55, %v2794_v29 }
 0xa6d   : > { %v2782_v13 = vmax.f32 %v2780_v21, %v2781_v33  ;;  %v2796_v46 = vsel %vm1256_vm13, %v2775_v17, %v2795_v31 }
 0xa6f   : > { %v2797_v24 = vsel %vm1258_vm14, %v2782_v13, %v2796_v46 }
 0xa70   : > { %v6412_v54 = vsel %vm617_vm15, 0.0, %v2797_v24 }
 0xa71   : > { %6963 = vst [vmem:[#allocation10_spill] sm:$0xff] %v6412_v54  ;;  %v2800_v44 = vpack.c.bf16 %v6412_v54, %v6412_v54 }
 0xa73   : > { %5400 = vmatmul.mubr.msk.bf16.vlgmr.msra.gmra.mrb[44].mxu1 %vm918_vm7, %v2800_v44 }
 0xa74   : > { %5412 = vmatpush3.bf16.msra.mxu1 %v5873_v47  ;;  %5415 = vmatprep.mubr.msk.bf16.mxu1 %vm5675_vm1, %v6953_v19 }
 0xa75   : > { %5413 = vmatprep.subr.bf16.mxu1 %v6953_v19 }
 0xa78   : > { %5414 = vmatpush3.bf16.msra.mxu1 %v5888_v50 }
 0xa79   : > { %5427 = vmatprep.subr.bf16.mxu1 %v6953_v19 }
 0xa7b   : > { %5416 = vmatmul.mubr.msk.bf16.vlgmr.msra.gmra.mrb[48].mxu1 %vm918_vm7, %v2800_v44 }
 0xa7c   : > { %5428 = vmatpush3.bf16.msra.mxu1 %v5941_v35  ;;  %5431 = vmatprep.mubr.msk.bf16.mxu1 %vm5675_vm1, %v6953_v19 }
 0xa7d   : > { %5429 = vmatprep.subr.bf16.mxu1 %v6953_v19 }
 0xa80   : > { %5430 = vmatpush3.bf16.msra.mxu1 %v5947_v37 }
 0xa81   : > { %5443 = vmatprep.subr.bf16.mxu1 %v6953_v19 }
 0xa98   : > { %s5595_s2 = spop %5594 }
 0xb46   : > { %v2838_v39 = vpop.f32.mrb[44].mxu1 }
 0xb47   : > { %v2839_v38 = vadd.f32 %v2838_v39, %v6069_v18  ;;  %v5401_v4 = vpop.f32.mrb[45].mxu1 }
 0xb48   : > { %v2841_v30 = vpop.f32.mrb[46].mxu1 }
 0xb49   : > { %v2844_v36 = vsel %vm918_vm7, %v2839_v38, -inf  ;;  %v5402_v40 = vpop.f32.mrb[47].mxu1 }
 0xb4a   : > { %v2845_v45 = vrot.slane %v2844_v36, 4 }
 0xb4c   : > { %v2846_v2 = vmax.f32 %v2844_v36, %v2845_v45 }
 0xb4e   : > { %v2847_v51 = vrot.slane %v2846_v2, 2  ;;  %v2944_v27 = vpop.f32.mrb[48].mxu1 }
 0xb4f   : > { %v5417_v0 = vpop.f32.mrb[49].mxu1  ;;  %v2945_v4 = vadd.f32 %v6274_v23, %v2944_v27 }
 0xb50   : > { %v2848_v53 = vmax.f32 %v2846_v2, %v2847_v51  ;;  %v2947_v48 = vpop.f32.mrb[50].mxu1 }
 0xb51   : > { %v5418_v52 = vpop.f32.mrb[51].mxu1 }
 0xb52   : > { %v2849_v34 = vrot.slane %v2848_v53, 1 }
 0xb54   : > { %v2850_v22 = vmax.f32 %v2848_v53, %v2849_v34 }
 0xb56   : > { %v2851_v59 = vpack.c.bf16 %v2850_v22, %v2850_v22 }
 0xb58   : > { %5408 = vmatmul.mubr.msk.bf16.vlgmr.msra.gmra.mrb[48].mxu0 %vm918_vm7, %v2851_v59 }
 0xb59   : > { %5420 = vmatpush3.bf16.msra.mxu0 %v5833_v26  ;;  %5423 = vmatprep.mubr.msk.bf16.mxu0 %vm5675_vm1, %v6953_v19 }
 0xb5a   : > { %5421 = vmatprep.subr.bf16.mxu0 %v6953_v19 }
 0xb5d   : > { %5422 = vmatpush3.bf16.msra.mxu0 %v5846_v32 }
 0xb5e   : > { %5435 = vmatprep.subr.bf16.mxu0 %v6953_v19 }
 0xb60   : > { %5424 = vmatmul.mubr.msk.bf16.vlgmr.msra.gmra.mrb[52].mxu0 %vm918_vm7, %v2800_v44 }
 0xb61   : > { %5436 = vmatpush3.bf16.msra.mxu0 %v6051_v12  ;;  %5439 = vmatprep.mubr.msk.bf16.mxu0 %vm5675_vm1, %v6953_v19 }
 0xb62   : > { %5437 = vmatprep.subr.bf16.mxu0 %v6953_v19 }
 0xb65   : > { %5438 = vmatpush3.bf16.msra.mxu0 %v6061_v16 }
 0xb66   : > { %5451 = vmatprep.subr.bf16.mxu0 %v6953_v19 }
 0xc2b   : > { %v2889_v60 = vpop.f32.mrb[48].mxu0 }
 0xc2c   : > { %v2890_v15 = vadd.f32 %v6357_v1, %v2889_v60  ;;  %v5409_v5 = vpop.f32.mrb[49].mxu0 }
 0xc2d   : > { %v2892_v28 = vpop.f32.mrb[50].mxu0 }
 0xc2e   : > { %v5052_v58 = vmul.f32 -1.442695, %v2890_v15  ;;  %v5410_v21 = vpop.f32.mrb[51].mxu0 }
 0xc30   : > { %5636 = vpow2.f32 %v5052_v58 }
 0xc33   : > { %v2984_v20 = vpop.f32.mrb[52].mxu0 }
 0xc34   : > { %v2991_v55 = vcombine.high %v2984_v20, %v2984_v20  ;;  %v2998_v10 = vrot.slane %v2984_v20, %v5953_v41  ;;  %v5425_v17 = vpop.f32.mrb[53].mxu0 }
 0xc35   : > { %v2987_v33 = vpop.f32.mrb[54].mxu0 }
 0xc36   : > { %v3005_v29 = vrot.slane %v2991_v55, %v5953_v41  ;;  %v3006_v31 = vcombine.high %v2998_v10, %v2998_v10  ;;  %v3014_v13 = vrot.slane %v2998_v10, %v5953_v41  ;;  %v5426_v46 = vpop.f32.mrb[55].mxu0 }
 0xc38   : > { %v3007_v24 = vcombine.high %v3005_v29, %v3005_v29  ;;  %v3021_v44 = vrot.slane %v3005_v29, %v5953_v41  ;;  %v3028_v39 = vrot.slane %v3006_v31, %v5953_v41  ;;  %v3036_v38 = vcombine.high %v3014_v13, %v3014_v13 }
 0xc39   : > { %v3043_v30 = vrot.slane %v3014_v13, %v5895_v56 }
 0xc3a   : > { %v5637_v36 = vpop.eup %5636  ;;  %v3035_v40 = vrot.slane %v3007_v24, %v5953_v41  ;;  %v3037_v45 = vcombine.high %v3021_v44, %v3021_v44  ;;  %v3038_v2 = vcombine.high %v3028_v39, %v3028_v39  ;;  %v3047_v51 = vrot.slane %v3028_v39, %v5895_v56 }
 0xc3b   : > { %v2898_v0 = vadd.f32 1.0, %v5637_v36  ;;  %v3051_v53 = vrot.slane %v3036_v38, %v5895_v56  ;;  %v3059_v48 = vrot.slane %v3021_v44, %v5895_v56  ;;  %v3080_v52 = vadd.f32 %v3043_v30, %v2945_v4 }
 0xc3c   : > { %v3039_v34 = vcombine.high %v3035_v40, %v3035_v40  ;;  %v3055_v22 = vrot.slane %v3038_v2, %v5895_v56  ;;  %v3063_v23 = vrot.slane %v3035_v40, %v5895_v56  ;;  %v3067_v27 = vrot.slane %v3037_v45, %v5895_v56 }
 0xc3d   : > { %5638 = vrcp.f32 %v2898_v0  ;;  %v3081_v59 = vadd.f32 %v3047_v51, %v2945_v4  ;;  %v3082_v60 = vadd.f32 %v3051_v53, %v2945_v4  ;;  %v3084_v15 = vadd.f32 %v3059_v48, %v2945_v4  ;;  %v6964_v48 = vld [vmem:[#allocation3_spill] sm:$0xff] }
 0xc3e   : > { %v3071_v5 = vrot.slane %v3039_v34, %v5895_v56  ;;  %v3083_v28 = vadd.f32 %v3055_v22, %v2945_v4  ;;  %v3085_v58 = vadd.f32 %v3063_v23, %v2945_v4  ;;  %v3086_v21 = vadd.f32 %v3067_v27, %v2945_v4  ;;  %v6965_v34 = vld [vmem:[#allocation4_spill] sm:$0xff] }
 0xc3f   : > { %v3088_v20 = vadd.f32 %v3080_v52, %v5903_v63  ;;  %v3089_v55 = vadd.f32 %v3081_v59, %v5909_v6  ;;  %v3090_v10 = vadd.f32 %v5901_v61, %v3082_v60  ;;  %v3092_v17 = vadd.f32 %v3084_v15, %v5913_v8  ;;  %v6966_v15 = vld [vmem:[#allocation5_spill] sm:$0xff] }
 0xc40   : > { %v3087_v33 = vadd.f32 %v3071_v5, %v2945_v4  ;;  %v3091_v29 = vadd.f32 %v5906_v3, %v3083_v28  ;;  %v3093_v31 = vadd.f32 %v3085_v58, %v5919_v14  ;;  %v3094_v13 = vadd.f32 %v5911_v7, %v3086_v21 }
 0xc41   : > { %v3096_v46 = vmax.f32 %v3088_v20, 0.0  ;;  %v3097_v24 = vmax.f32 %v3089_v55, 0.0  ;;  %v3098_v44 = vmax.f32 %v3090_v10, 0.0  ;;  %v3100_v39 = vmax.f32 %v3092_v17, 0.0 }
 0xc42   : > { %v3095_v38 = vadd.f32 %v5916_v11, %v3087_v33  ;;  %v3099_v30 = vmax.f32 %v3091_v29, 0.0  ;;  %v3101_v36 = vmax.f32 %v3093_v31, 0.0  ;;  %v3102_v40 = vmax.f32 %v3094_v13, 0.0 }
 0xc43   : > { %v3104_v45 = vadd.f32 %v3096_v46, %v5955_v42  ;;  %v3105_v2 = vadd.f32 %v3097_v24, %v5967_v62  ;;  %v3106_v4 = vadd.f32 %v3098_v44, %v5957_v43  ;;  %v3108_v51 = vadd.f32 %v3100_v39, %v5982_v25 }
 0xc44   : > { %v3103_v0 = vmax.f32 %v3095_v38, 0.0  ;;  %v3107_v53 = vadd.f32 %v3099_v30, %v5971_v9  ;;  %v3109_v52 = vadd.f32 %v3101_v36, %v6964_v48  ;;  %v3110_v22 = vadd.f32 %v3102_v40, %v6965_v34 }
 0xc45   : > { %v3112_v23 = vsel %vm918_vm7, %v3104_v45, -inf  ;;  %v3119_v27 = vsel %vm918_vm7, %v3105_v2, -inf  ;;  %v3126_v59 = vsel %vm918_vm7, %v3106_v4, -inf  ;;  %v3140_v60 = vsel %vm918_vm7, %v3108_v51, -inf }
 0xc46   : > { %v3111_v5 = vadd.f32 %v3103_v0, %v6966_v15  ;;  %v3113_v28 = vrot.slane %v3112_v23, 4  ;;  %v3120_v58 = vrot.slane %v3119_v27, 4  ;;  %v3127_v21 = vrot.slane %v3126_v59, 4 }
 0xc47   : > { %v5639_v20 = vpop.eup %5638  ;;  %v3133_v55 = vsel %vm918_vm7, %v3107_v53, -inf  ;;  %v3141_v10 = vrot.slane %v3140_v60, 4  ;;  %v3147_v17 = vsel %vm918_vm7, %v3109_v52, -inf  ;;  %v3154_v33 = vsel %vm918_vm7, %v3110_v22, -inf }
 0xc48   : > { %v3114_v29 = vmax.f32 %v3112_v23, %v3113_v28  ;;  %v3121_v31 = vmax.f32 %v3119_v27, %v3120_v58  ;;  %v3128_v13 = vmax.f32 %v3126_v59, %v3127_v21  ;;  %v3134_v46 = vrot.slane %v3133_v55, 4 }
 0xc49   : > { %v3142_v24 = vmax.f32 %v3140_v60, %v3141_v10  ;;  %v3148_v44 = vrot.slane %v3147_v17, 4  ;;  %v3155_v39 = vrot.slane %v3154_v33, 4  ;;  %v3161_v38 = vsel %vm918_vm7, %v3111_v5, -inf }
 0xc4a   : > { %v3115_v30 = vrot.slane %v3114_v29, 2  ;;  %v3122_v36 = vrot.slane %v3121_v31, 2  ;;  %v3129_v40 = vrot.slane %v3128_v13, 2  ;;  %v3135_v45 = vmax.f32 %v3133_v55, %v3134_v46 }
 0xc4b   : > { %v3143_v2 = vrot.slane %v3142_v24, 2  ;;  %v3149_v4 = vmax.f32 %v3147_v17, %v3148_v44  ;;  %v3156_v51 = vmax.f32 %v3154_v33, %v3155_v39  ;;  %v3162_v0 = vrot.slane %v3161_v38, 4 }
 0xc4c   : > { %v3116_v53 = vmax.f32 %v3114_v29, %v3115_v30  ;;  %v3123_v52 = vmax.f32 %v3121_v31, %v3122_v36  ;;  %v3130_v22 = vmax.f32 %v3128_v13, %v3129_v40  ;;  %v3136_v23 = vrot.slane %v3135_v45, 2 }
 0xc4d   : > { %v3144_v27 = vmax.f32 %v3142_v24, %v3143_v2  ;;  %v3150_v59 = vrot.slane %v3149_v4, 2  ;;  %v3157_v28 = vrot.slane %v3156_v51, 2  ;;  %v3163_v60 = vmax.f32 %v3161_v38, %v3162_v0 }
 0xc4e   : > { %v3117_v58 = vrot.slane %v3116_v53, 1  ;;  %v3124_v21 = vrot.slane %v3123_v52, 1  ;;  %v3131_v10 = vrot.slane %v3130_v22, 1  ;;  %v3137_v5 = vmax.f32 %v3135_v45, %v3136_v23 }
 0xc4f   : > { %v3145_v54 = vrot.slane %v3144_v27, 1  ;;  %v3151_v15 = vmax.f32 %v3149_v4, %v3150_v59  ;;  %v3158_v34 = vmax.f32 %v3156_v51, %v3157_v28  ;;  %v2901_v55 = vmul.f32 %v5639_v20, %v6404_v57 }
 0xc50   : > { %v3118_v17 = vmax.f32 %v3116_v53, %v3117_v58  ;;  %v3125_v33 = vmax.f32 %v3123_v52, %v3124_v21  ;;  %v3132_v46 = vmax.f32 %v3130_v22, %v3131_v10  ;;  %v3138_v29 = vrot.slane %v3137_v5, 1 }
 0xc51   : > { %v3152_v31 = vrot.slane %v3151_v15, 1  ;;  %5596 = vpush %v2901_v55  ;;  %v3159_v13 = vrot.slane %v3158_v34, 1  ;;  %v3164_v24 = vrot.slane %v3163_v60, 2  ;;  %v2908_v38 = vsub.f32 1.0, %v5639_v20 }
 0xc52   : > { %v3139_v44 = vmax.f32 %v3137_v5, %v3138_v29  ;;  %v3176_v39 = vsel %vm1246_vm8, %v3125_v33, %v3118_v17  ;;  %v3146_v30 = vmax.f32 %v3144_v27, %v3145_v54 }
 0xc53   : > { %v3165_v36 = vmax.f32 %v3163_v60, %v3164_v24  ;;  %v3177_v40 = vsel %vm1248_vm9, %v3132_v46, %v3176_v39  ;;  %v3153_v45 = vmax.f32 %v3151_v15, %v3152_v31  ;;  %v6491_v4 = vmul.f32 %v2908_v38, %v6404_v57 }
 0xc54   : > { %v3178_v2 = vsel %vm1250_vm10, %v3139_v44, %v3177_v40  ;;  %v3160_v51 = vmax.f32 %v3158_v34, %v3159_v13 }
 0xc55   : > { %v3166_v0 = vrot.slane %v3165_v36, 1  ;;  %v3179_v53 = vsel %vm1252_vm11, %v3146_v30, %v3178_v2 }
 0xc56   : > { %v3180_v52 = vsel %vm1254_vm12, %v3153_v45, %v3179_v53 }
 0xc57   : > { %v3167_v22 = vmax.f32 %v3165_v36, %v3166_v0  ;;  %v3181_v23 = vsel %vm1256_vm13, %v3160_v51, %v3180_v52 }
 0xc59   : > { %v3182_v54 = vsel %vm1258_vm14, %v3167_v22, %v3181_v23 }
 0xc5a   : > { %v6499_v20 = vsel %vm617_vm15, 0.0, %v3182_v54 }
 0xc5b   : > { %6967 = vst [vmem:[#allocation11_spill] sm:$0xff] %v6499_v20  ;;  %v3185_v15 = vpack.c.bf16 %v6499_v20, %v6499_v20 }
 0xc5d   : > { %5432 = vmatmul.mubr.msk.bf16.vlgmr.msra.gmra.mrb[52].mxu1 %vm918_vm7, %v3185_v15 }
 0xc5e   : > { %5444 = vmatpush3.bf16.msra.mxu1 %v5873_v47  ;;  %5447 = vmatprep.mubr.msk.bf16.mxu1 %vm5675_vm1, %v6953_v19 }
 0xc5f   : > { %5445 = vmatprep.subr.bf16.mxu1 %v6953_v19 }
 0xc62   : > { %5446 = vmatpush3.bf16.msra.mxu1 %v5888_v50 }
 0xc63   : > { %5459 = vmatprep.subr.bf16.mxu1 %v6953_v19 }
 0xc65   : > { %5448 = vmatmul.mubr.msk.bf16.vlgmr.msra.gmra.mrb[56].mxu1 %vm918_vm7, %v3185_v15 }
 0xc66   : > { %5460 = vmatpush3.bf16.msra.mxu1 %v5941_v35  ;;  %5463 = vmatprep.mubr.msk.bf16.mxu1 %vm5675_vm1, %v6953_v19 }
 0xc67   : > { %5461 = vmatprep.subr.bf16.mxu1 %v6953_v19 }
 0xc6a   : > { %5462 = vmatpush3.bf16.msra.mxu1 %v5947_v37 }
 0xc6b   : > { %5475 = vmatprep.subr.bf16.mxu1 %v6953_v19 }
 0xc82   : > { %s5597_s23 = spop %5596 }
 0xd30   : > { %v3223_v57 = vpop.f32.mrb[52].mxu1 }
 0xd31   : > { %v3224_v34 = vadd.f32 %v3223_v57, %v6069_v18  ;;  %v5433_v27 = vpop.f32.mrb[53].mxu1 }
 0xd32   : > { %v3226_v59 = vpop.f32.mrb[54].mxu1 }
 0xd33   : > { %v3229_v28 = vsel %vm918_vm7, %v3224_v34, -inf  ;;  %v5434_v60 = vpop.f32.mrb[55].mxu1  ;;  %v6542_v34 = vld [vmem:[%s6916_s10] ss:$0 sm:$0xff] }
 0xd34   : > { %v3230_v58 = vrot.slane %v3229_v28, 4 }
 0xd36   : > { %v3231_v21 = vmax.f32 %v3229_v28, %v3230_v58 }
 0xd38   : > { %v3232_v10 = vrot.slane %v3231_v21, 2  ;;  %v3329_v5 = vpop.f32.mrb[56].mxu1 }
 0xd39   : > { %v5449_v55 = vpop.f32.mrb[57].mxu1  ;;  %v3330_v27 = vadd.f32 %v6542_v34, %v3329_v5 }
 0xd3a   : > { %v3233_v17 = vmax.f32 %v3231_v21, %v3232_v10  ;;  %v3332_v33 = vpop.f32.mrb[58].mxu1 }
 0xd3b   : > { %v5450_v46 = vpop.f32.mrb[59].mxu1 }
 0xd3c   : > { %v3234_v29 = vrot.slane %v3233_v17, 1 }
 0xd3e   : > { %v3235_v31 = vmax.f32 %v3233_v17, %v3234_v29 }
 0xd40   : > { %v3236_v13 = vpack.c.bf16 %v3235_v31, %v3235_v31 }
 0xd42   : > { %5440 = vmatmul.mubr.msk.bf16.vlgmr.msra.gmra.mrb[56].mxu0 %vm918_vm7, %v3236_v13 }
 0xd43   : > { %5452 = vmatpush3.bf16.msra.mxu0 %v5833_v26  ;;  %5455 = vmatprep.mubr.msk.bf16.mxu0 %vm5675_vm1, %v6953_v19 }
 0xd44   : > { %5453 = vmatprep.subr.bf16.mxu0 %v6953_v19 }
 0xd47   : > { %5454 = vmatpush3.bf16.msra.mxu0 %v5846_v32 }
 0xd48   : > { %5467 = vmatprep.subr.bf16.mxu0 %v6953_v19 }
 0xd4a   : > { %5456 = vmatmul.mubr.msk.bf16.vlgmr.msra.gmra.mrb[60].mxu0 %vm918_vm7, %v3185_v15 }
 0xd4b   : > { %5468 = vmatpush3.bf16.msra.mxu0 %v6051_v12  ;;  %5471 = vmatprep.mubr.msk.bf16.mxu0 %vm5675_vm1, %v6953_v19 }
 0xd4c   : > { %5469 = vmatprep.subr.bf16.mxu0 %v6953_v19 }
 0xd4f   : > { %5470 = vmatpush3.bf16.msra.mxu0 %v6061_v16 }
 0xd50   : > { %5483 = vmatprep.subr.bf16.mxu0 %v6953_v19 }
 0xe15   : > { %v3274_v24 = vpop.f32.mrb[56].mxu0 }
 0xe16   : > { %v3275_v44 = vadd.f32 %v6357_v1, %v3274_v24  ;;  %v5441_v39 = vpop.f32.mrb[57].mxu0 }
 0xe17   : > { %v3277_v38 = vpop.f32.mrb[58].mxu0 }
 0xe18   : > { %v5057_v30 = vmul.f32 -1.442695, %v3275_v44  ;;  %v5442_v36 = vpop.f32.mrb[59].mxu0 }
 0xe1a   : > { %5640 = vpow2.f32 %v5057_v30 }
 0xe1d   : > { %v3369_v40 = vpop.f32.mrb[60].mxu0 }
 0xe1e   : > { %v3376_v45 = vcombine.high %v3369_v40, %v3369_v40  ;;  %v3383_v2 = vrot.slane %v3369_v40, %v5953_v41  ;;  %v5457_v51 = vpop.f32.mrb[61].mxu0 }
 0xe1f   : > { %v3372_v0 = vpop.f32.mrb[62].mxu0 }
 0xe20   : > { %v3390_v53 = vrot.slane %v3376_v45, %v5953_v41  ;;  %v3391_v52 = vcombine.high %v3383_v2, %v3383_v2  ;;  %v3399_v22 = vrot.slane %v3383_v2, %v5953_v41  ;;  %v5458_v23 = vpop.f32.mrb[63].mxu0 }
 0xe22   : > { %v3392_v54 = vcombine.high %v3390_v53, %v3390_v53  ;;  %v3406_v1 = vrot.slane %v3390_v53, %v5953_v41  ;;  %v3413_v15 = vrot.slane %v3391_v52, %v5953_v41  ;;  %v3421_v57 = vcombine.high %v3399_v22, %v3399_v22 }
 0xe23   : > { %v3428_v59 = vrot.slane %v3399_v22, %v5895_v56 }
 0xe24   : > { %v5641_v28 = vpop.eup %5640  ;;  %v3420_v60 = vrot.slane %v3392_v54, %v5953_v41  ;;  %v3422_v58 = vcombine.high %v3406_v1, %v3406_v1  ;;  %v3423_v21 = vcombine.high %v3413_v15, %v3413_v15  ;;  %v3432_v10 = vrot.slane %v3413_v15, %v5895_v56 }
 0xe25   : > { %v3283_v55 = vadd.f32 1.0, %v5641_v28  ;;  %v3436_v17 = vrot.slane %v3421_v57, %v5895_v56  ;;  %v3444_v33 = vrot.slane %v3406_v1, %v5895_v56  ;;  %v3465_v46 = vadd.f32 %v3428_v59, %v3330_v27 }
 0xe26   : > { %v3424_v29 = vcombine.high %v3420_v60, %v3420_v60  ;;  %v3440_v31 = vrot.slane %v3423_v21, %v5895_v56  ;;  %v3448_v5 = vrot.slane %v3420_v60, %v5895_v56  ;;  %v3452_v13 = vrot.slane %v3422_v58, %v5895_v56 }
 0xe27   : > { %5642 = vrcp.f32 %v3283_v55  ;;  %v3466_v24 = vadd.f32 %v3432_v10, %v3330_v27  ;;  %v3467_v44 = vadd.f32 %v3436_v17, %v3330_v27  ;;  %v3469_v39 = vadd.f32 %v3444_v33, %v3330_v27 }
 0xe28   : > { %v3456_v38 = vrot.slane %v3424_v29, %v5895_v56  ;;  %v3468_v30 = vadd.f32 %v3440_v31, %v3330_v27  ;;  %v3470_v36 = vadd.f32 %v3448_v5, %v3330_v27  ;;  %v3471_v40 = vadd.f32 %v3452_v13, %v3330_v27  ;;  %v6968_v29 = vld [vmem:[#allocation4_spill] sm:$0xff] }
 0xe29   : > { %v3473_v45 = vadd.f32 %v3465_v46, %v5903_v63  ;;  %v3474_v2 = vadd.f32 %v3466_v24, %v5909_v6  ;;  %v3475_v51 = vadd.f32 %v5901_v61, %v3467_v44  ;;  %v3477_v0 = vadd.f32 %v3469_v39, %v5913_v8  ;;  %v6969_v39 = vld [vmem:[#allocation5_spill] sm:$0xff] }
 0xe2a   : > { %v3472_v53 = vadd.f32 %v3456_v38, %v3330_v27  ;;  %v3476_v52 = vadd.f32 %v5906_v3, %v3468_v30  ;;  %v3478_v22 = vadd.f32 %v3470_v36, %v5919_v14  ;;  %v3479_v23 = vadd.f32 %v5911_v7, %v3471_v40 }
 0xe2b   : > { %v3481_v54 = vmax.f32 %v3473_v45, 0.0  ;;  %v3482_v1 = vmax.f32 %v3474_v2, 0.0  ;;  %v3483_v15 = vmax.f32 %v3475_v51, 0.0  ;;  %v3485_v57 = vmax.f32 %v3477_v0, 0.0 }
 0xe2c   : > { %v3480_v59 = vadd.f32 %v5916_v11, %v3472_v53  ;;  %v3484_v28 = vmax.f32 %v3476_v52, 0.0  ;;  %v3486_v60 = vmax.f32 %v3478_v22, 0.0  ;;  %v3487_v58 = vmax.f32 %v3479_v23, 0.0 }
 0xe2d   : > { %v3489_v21 = vadd.f32 %v3481_v54, %v5955_v42  ;;  %v3490_v10 = vadd.f32 %v3482_v1, %v5967_v62  ;;  %v3491_v27 = vadd.f32 %v3483_v15, %v5957_v43  ;;  %v3493_v55 = vadd.f32 %v3485_v57, %v5982_v25 }
 0xe2e   : > { %v3488_v17 = vmax.f32 %v3480_v59, 0.0  ;;  %v3492_v33 = vadd.f32 %v3484_v28, %v5971_v9  ;;  %v3494_v46 = vadd.f32 %v3486_v60, %v6964_v48  ;;  %v3495_v31 = vadd.f32 %v3487_v58, %v6968_v29 }
 0xe2f   : > { %v3497_v5 = vsel %vm918_vm7, %v3489_v21, -inf  ;;  %v3504_v13 = vsel %vm918_vm7, %v3490_v10, -inf  ;;  %v3511_v24 = vsel %vm918_vm7, %v3491_v27, -inf  ;;  %v3525_v44 = vsel %vm918_vm7, %v3493_v55, -inf }
 0xe30   : > { %v3496_v38 = vadd.f32 %v3488_v17, %v6969_v39  ;;  %v3498_v30 = vrot.slane %v3497_v5, 4  ;;  %v3505_v36 = vrot.slane %v3504_v13, 4  ;;  %v3512_v40 = vrot.slane %v3511_v24, 4 }
 0xe31   : > { %v5643_v45 = vpop.eup %5642  ;;  %v3518_v2 = vsel %vm918_vm7, %v3492_v33, -inf  ;;  %v3526_v51 = vrot.slane %v3525_v44, 4  ;;  %v3532_v0 = vsel %vm918_vm7, %v3494_v46, -inf  ;;  %v3539_v53 = vsel %vm918_vm7, %v3495_v31, -inf }
 0xe32   : > { %v3499_v52 = vmax.f32 %v3497_v5, %v3498_v30  ;;  %v3506_v22 = vmax.f32 %v3504_v13, %v3505_v36  ;;  %v3513_v23 = vmax.f32 %v3511_v24, %v3512_v40  ;;  %v3519_v54 = vrot.slane %v3518_v2, 4 }
 0xe33   : > { %v3527_v1 = vmax.f32 %v3525_v44, %v3526_v51  ;;  %v3533_v15 = vrot.slane %v3532_v0, 4  ;;  %v3540_v57 = vrot.slane %v3539_v53, 4  ;;  %v3546_v59 = vsel %vm918_vm7, %v3496_v38, -inf }
 0xe34   : > { %v3500_v28 = vrot.slane %v3499_v52, 2  ;;  %v3507_v60 = vrot.slane %v3506_v22, 2  ;;  %v3514_v58 = vrot.slane %v3513_v23, 2  ;;  %v3520_v21 = vmax.f32 %v3518_v2, %v3519_v54 }
 0xe35   : > { %v3528_v10 = vrot.slane %v3527_v1, 2  ;;  %v3534_v27 = vmax.f32 %v3532_v0, %v3533_v15  ;;  %v3541_v55 = vmax.f32 %v3539_v53, %v3540_v57  ;;  %v3547_v17 = vrot.slane %v3546_v59, 4 }
 0xe36   : > { %v3501_v33 = vmax.f32 %v3499_v52, %v3500_v28  ;;  %v3508_v46 = vmax.f32 %v3506_v22, %v3507_v60  ;;  %v3515_v31 = vmax.f32 %v3513_v23, %v3514_v58  ;;  %v3521_v5 = vrot.slane %v3520_v21, 2 }
 0xe37   : > { %v3529_v13 = vmax.f32 %v3527_v1, %v3528_v10  ;;  %v3535_v24 = vrot.slane %v3534_v27, 2  ;;  %v3542_v30 = vrot.slane %v3541_v55, 2  ;;  %v3548_v44 = vmax.f32 %v3546_v59, %v3547_v17 }
 0xe38   : > { %v3502_v36 = vrot.slane %v3501_v33, 1  ;;  %v3509_v40 = vrot.slane %v3508_v46, 1  ;;  %v3516_v51 = vrot.slane %v3515_v31, 1  ;;  %v3522_v38 = vmax.f32 %v3520_v21, %v3521_v5 }
 0xe39   : > { %v3530_v20 = vrot.slane %v3529_v13, 1  ;;  %v3536_v39 = vmax.f32 %v3534_v27, %v3535_v24  ;;  %v3543_v29 = vmax.f32 %v3541_v55, %v3542_v30  ;;  %v3286_v2 = vmul.f32 %v5643_v45, %v6491_v4 }
 0xe3a   : > { %v3503_v0 = vmax.f32 %v3501_v33, %v3502_v36  ;;  %v3510_v53 = vmax.f32 %v3508_v46, %v3509_v40  ;;  %v3517_v54 = vmax.f32 %v3515_v31, %v3516_v51  ;;  %v3523_v52 = vrot.slane %v3522_v38, 1 }
 0xe3b   : > { %v3537_v22 = vrot.slane %v3536_v39, 1  ;;  %5598 = vpush %v3286_v2  ;;  %v3544_v23 = vrot.slane %v3543_v29, 1  ;;  %v3549_v1 = vrot.slane %v3548_v44, 2  ;;  %v3293_v59 = vsub.f32 1.0, %v5643_v45 }
 0xe3c   : > { %v3524_v15 = vmax.f32 %v3522_v38, %v3523_v52  ;;  %v3561_v57 = vsel %vm1246_vm8, %v3510_v53, %v3503_v0  ;;  %v3531_v28 = vmax.f32 %v3529_v13, %v3530_v20 }
 0xe3d   : > { %v3550_v60 = vmax.f32 %v3548_v44, %v3549_v1  ;;  %v3562_v58 = vsel %vm1248_vm9, %v3517_v54, %v3561_v57  ;;  %v3538_v21 = vmax.f32 %v3536_v39, %v3537_v22  ;;  %v6583_v27 = vmul.f32 %v3293_v59, %v6491_v4 }
 0xe3e   : > { %v3563_v10 = vsel %vm1250_vm10, %v3524_v15, %v3562_v58  ;;  %v3545_v55 = vmax.f32 %v3543_v29, %v3544_v23  ;;  %v6625_v15 = vld [vmem:[#allocation2] sm:$0x1] }
 0xe3f   : > { %v3551_v17 = vrot.slane %v3550_v60, 1  ;;  %v3564_v33 = vsel %vm1252_vm11, %v3531_v28, %v3563_v10 }
 0xe40   : > { %v3565_v46 = vsel %vm1254_vm12, %v3538_v21, %v3564_v33 }
 0xe41   : > { %v3552_v31 = vmax.f32 %v3550_v60, %v3551_v17  ;;  %v3566_v5 = vsel %vm1256_vm13, %v3545_v55, %v3565_v46 }
 0xe43   : > { %v3567_v20 = vsel %vm1258_vm14, %v3552_v31, %v3566_v5 }
 0xe44   : > { %v6591_v45 = vsel %vm617_vm15, 0.0, %v3567_v20 }
 0xe45   : > { %6970 = vst [vmem:[#allocation12_spill] sm:$0xff] %v6591_v45  ;;  %v3570_v39 = vpack.c.bf16 %v6591_v45, %v6591_v45 }
 0xe47   : > { %5464 = vmatmul.mubr.msk.bf16.vlgmr.msra.gmra.mrb[60].mxu1 %vm918_vm7, %v3570_v39 }
 0xe48   : > { %5476 = vmatpush3.bf16.msra.mxu1 %v5873_v47  ;;  %5479 = vmatprep.mubr.msk.bf16.mxu1 %vm5675_vm1, %v6953_v19 }
 0xe49   : > { %5477 = vmatprep.subr.bf16.mxu1 %v6953_v19 }
 0xe4c   : > { %5478 = vmatpush3.bf16.msra.mxu1 %v5888_v50 }
 0xe4d   : > { %5491 = vmatprep.subr.bf16.mxu1 %v6953_v19 }
 0xe4f   : > { %5480 = vmatmul.mubr.msk.bf16.vlgmr.msra.gmra.mrb[64].mxu1 %vm918_vm7, %v3570_v39 }
 0xe50   : > { %5492 = vmatpush3.bf16.msra.mxu1 %v5941_v35  ;;  %5495 = vmatprep.mubr.msk.bf16.mxu1 %vm5675_vm1, %v6953_v19 }
 0xe51   : > { %5493 = vmatprep.subr.bf16.mxu1 %v6953_v19 }
 0xe54   : > { %5494 = vmatpush3.bf16.msra.mxu1 %v5947_v37 }
 0xe55   : > { %5507 = vmatprep.subr.bf16.mxu1 %v6953_v19 }
 0xe6c   : > { %s5599_s24 = spop %5598 }
 0xf1a   : > { %v3608_v4 = vpop.f32.mrb[60].mxu1 }
 0xf1b   : > { %v3609_v29 = vadd.f32 %v3608_v4, %v6069_v18  ;;  %v5465_v13 = vpop.f32.mrb[61].mxu1 }
 0xf1c   : > { %v3611_v24 = vpop.f32.mrb[62].mxu1 }
 0xf1d   : > { %v3614_v30 = vsel %vm918_vm7, %v3609_v29, -inf  ;;  %v5466_v44 = vpop.f32.mrb[63].mxu1 }
 0xf1e   : > { %v3615_v36 = vrot.slane %v3614_v30, 4 }
 0xf20   : > { %v3616_v40 = vmax.f32 %v3614_v30, %v3615_v36 }
 0xf22   : > { %v3617_v51 = vrot.slane %v3616_v40, 2  ;;  %v3714_v38 = vpop.f32.mrb[64].mxu1 }
 0xf23   : > { %v5481_v2 = vpop.f32.mrb[65].mxu1  ;;  %v3715_v24 = vadd.f32 %v6542_v34, %v3714_v38 }
 0xf24   : > { %v3618_v0 = vmax.f32 %v3616_v40, %v3617_v51  ;;  %v3717_v53 = vpop.f32.mrb[66].mxu1 }
 0xf25   : > { %v5482_v54 = vpop.f32.mrb[67].mxu1 }
 0xf26   : > { %v3619_v52 = vrot.slane %v3618_v0, 1 }
 0xf28   : > { %v3620_v22 = vmax.f32 %v3618_v0, %v3619_v52 }
 0xf2a   : > { %v3621_v23 = vpack.c.bf16 %v3620_v22, %v3620_v22 }
 0xf2c   : > { %5472 = vmatmul.mubr.msk.bf16.vlgmr.msra.gmra.mrb[64].mxu0 %vm918_vm7, %v3621_v23 }
 0xf2d   : > { %5484 = vmatpush3.bf16.msra.mxu0 %v5833_v26  ;;  %5487 = vmatprep.mubr.msk.bf16.mxu0 %vm5675_vm1, %v6953_v19 }
 0xf2e   : > { %5485 = vmatprep.subr.bf16.mxu0 %v6953_v19 }
 0xf31   : > { %5486 = vmatpush3.bf16.msra.mxu0 %v5846_v32 }
 0xf32   : > { %5499 = vmatprep.subr.bf16.mxu0 %v6953_v19 }
 0xf34   : > { %5488 = vmatmul.mubr.msk.bf16.vlgmr.msra.gmra.mrb[68].mxu0 %vm918_vm7, %v3570_v39 }
 0xf35   : > { %5500 = vmatpush3.bf16.msra.mxu0 %v6051_v12  ;;  %5503 = vmatprep.mubr.msk.bf16.mxu0 %vm5675_vm1, %v6953_v19 }
 0xf36   : > { %5501 = vmatprep.subr.bf16.mxu0 %v6953_v19 }
 0xf39   : > { %5502 = vmatpush3.bf16.msra.mxu0 %v6061_v16 }
 0xf3a   : > { %5515 = vmatprep.subr.bf16.mxu0 %v6953_v19 }
 0xfff   : > { %v3659_v1 = vpop.f32.mrb[64].mxu0 }
0x1000   : > { %v3660_v57 = vadd.f32 %v6625_v15, %v3659_v1  ;;  %v5473_v59 = vpop.f32.mrb[65].mxu0 }
0x1001   : > { %v3662_v28 = vpop.f32.mrb[66].mxu0 }
0x1002   : > { %v5062_v60 = vmul.f32 -1.442695, %v3660_v57  ;;  %v5474_v58 = vpop.f32.mrb[67].mxu0 }
0x1004   : > { %5644 = vpow2.f32 %v5062_v60 }
0x1007   : > { %v3754_v21 = vpop.f32.mrb[68].mxu0 }
0x1008   : > { %v3761_v10 = vcombine.high %v3754_v21, %v3754_v21  ;;  %v3768_v55 = vrot.slane %v3754_v21, %v5953_v41  ;;  %v5489_v17 = vpop.f32.mrb[69].mxu0 }
0x1009   : > { %v3757_v33 = vpop.f32.mrb[70].mxu0 }
0x100a   : > { %v3775_v46 = vrot.slane %v3761_v10, %v5953_v41  ;;  %v3776_v31 = vcombine.high %v3768_v55, %v3768_v55  ;;  %v3784_v5 = vrot.slane %v3768_v55, %v5953_v41  ;;  %v5490_v20 = vpop.f32.mrb[71].mxu0 }
0x100c   : > { %v3777_v39 = vcombine.high %v3775_v46, %v3775_v46  ;;  %v3791_v4 = vrot.slane %v3775_v46, %v5953_v41  ;;  %v3798_v29 = vrot.slane %v3776_v31, %v5953_v41  ;;  %v3806_v13 = vcombine.high %v3784_v5, %v3784_v5 }
0x100d   : > { %v3813_v30 = vrot.slane %v3784_v5, %v5895_v56 }
0x100e   : > { %v5645_v44 = vpop.eup %5644  ;;  %v3805_v36 = vrot.slane %v3777_v39, %v5953_v41  ;;  %v3807_v40 = vcombine.high %v3791_v4, %v3791_v4  ;;  %v3808_v51 = vcombine.high %v3798_v29, %v3798_v29  ;;  %v3817_v2 = vrot.slane %v3798_v29, %v5895_v56 }
0x100f   : > { %v3668_v0 = vadd.f32 1.0, %v5645_v44  ;;  %v3821_v53 = vrot.slane %v3806_v13, %v5895_v56  ;;  %v3829_v54 = vrot.slane %v3791_v4, %v5895_v56  ;;  %v3850_v52 = vadd.f32 %v3813_v30, %v3715_v24 }
0x1010   : > { %v3809_v22 = vcombine.high %v3805_v36, %v3805_v36  ;;  %v3825_v23 = vrot.slane %v3808_v51, %v5895_v56  ;;  %v3833_v38 = vrot.slane %v3805_v36, %v5895_v56  ;;  %v3837_v1 = vrot.slane %v3807_v40, %v5895_v56 }
0x1011   : > { %5646 = vrcp.f32 %v3668_v0  ;;  %v3851_v57 = vadd.f32 %v3817_v2, %v3715_v24  ;;  %v3852_v59 = vadd.f32 %v3821_v53, %v3715_v24  ;;  %v3854_v28 = vadd.f32 %v3829_v54, %v3715_v24 }
0x1012   : > { %v3841_v60 = vrot.slane %v3809_v22, %v5895_v56  ;;  %v3853_v58 = vadd.f32 %v3825_v23, %v3715_v24  ;;  %v3855_v21 = vadd.f32 %v3833_v38, %v3715_v24  ;;  %v3856_v10 = vadd.f32 %v3837_v1, %v3715_v24  ;;  %v6971_v23 = vld [vmem:[#allocation4_spill] sm:$0xff] }
0x1013   : > { %v3858_v55 = vadd.f32 %v3850_v52, %v5903_v63  ;;  %v3859_v17 = vadd.f32 %v3851_v57, %v5909_v6  ;;  %v3860_v33 = vadd.f32 %v5901_v61, %v3852_v59  ;;  %v3862_v46 = vadd.f32 %v3854_v28, %v5913_v8 }
0x1014   : > { %v3857_v31 = vadd.f32 %v3841_v60, %v3715_v24  ;;  %v3861_v5 = vadd.f32 %v5906_v3, %v3853_v58  ;;  %v3863_v20 = vadd.f32 %v3855_v21, %v5919_v14  ;;  %v3864_v39 = vadd.f32 %v5911_v7, %v3856_v10  ;;  %v6972_v60 = vld [vmem:[#allocation5_spill] sm:$0xff] }
0x1015   : > { %v3866_v4 = vmax.f32 %v3858_v55, 0.0  ;;  %v3867_v29 = vmax.f32 %v3859_v17, 0.0  ;;  %v3868_v13 = vmax.f32 %v3860_v33, 0.0  ;;  %v3870_v30 = vmax.f32 %v3862_v46, 0.0 }
0x1016   : > { %v3865_v44 = vadd.f32 %v5916_v11, %v3857_v31  ;;  %v3869_v36 = vmax.f32 %v3861_v5, 0.0  ;;  %v3871_v40 = vmax.f32 %v3863_v20, 0.0  ;;  %v3872_v51 = vmax.f32 %v3864_v39, 0.0 }
0x1017   : > { %v3874_v2 = vadd.f32 %v3866_v4, %v5955_v42  ;;  %v3875_v0 = vadd.f32 %v3867_v29, %v5967_v62  ;;  %v3876_v24 = vadd.f32 %v3868_v13, %v5957_v43  ;;  %v3878_v53 = vadd.f32 %v3870_v30, %v5982_v25 }
0x1018   : > { %v3873_v54 = vmax.f32 %v3865_v44, 0.0  ;;  %v3877_v52 = vadd.f32 %v3869_v36, %v5971_v9  ;;  %v3879_v22 = vadd.f32 %v3871_v40, %v6964_v48  ;;  %v3880_v38 = vadd.f32 %v3872_v51, %v6971_v23 }
0x1019   : > { %v3882_v1 = vsel %vm918_vm7, %v3874_v2, -inf  ;;  %v3889_v57 = vsel %vm918_vm7, %v3875_v0, -inf  ;;  %v3896_v59 = vsel %vm918_vm7, %v3876_v24, -inf  ;;  %v3910_v28 = vsel %vm918_vm7, %v3878_v53, -inf }
0x101a   : > { %v3881_v58 = vadd.f32 %v3873_v54, %v6972_v60  ;;  %v3883_v21 = vrot.slane %v3882_v1, 4  ;;  %v3890_v10 = vrot.slane %v3889_v57, 4  ;;  %v3897_v55 = vrot.slane %v3896_v59, 4 }
0x101b   : > { %v5647_v17 = vpop.eup %5646  ;;  %v3903_v33 = vsel %vm918_vm7, %v3877_v52, -inf  ;;  %v3911_v46 = vrot.slane %v3910_v28, 4  ;;  %v3917_v31 = vsel %vm918_vm7, %v3879_v22, -inf  ;;  %v3924_v5 = vsel %vm918_vm7, %v3880_v38, -inf }
0x101c   : > { %v3884_v20 = vmax.f32 %v3882_v1, %v3883_v21  ;;  %v3891_v39 = vmax.f32 %v3889_v57, %v3890_v10  ;;  %v3898_v4 = vmax.f32 %v3896_v59, %v3897_v55  ;;  %v3904_v29 = vrot.slane %v3903_v33, 4 }
0x101d   : > { %v3912_v13 = vmax.f32 %v3910_v28, %v3911_v46  ;;  %v3918_v30 = vrot.slane %v3917_v31, 4  ;;  %v3925_v44 = vrot.slane %v3924_v5, 4  ;;  %v3931_v36 = vsel %vm918_vm7, %v3881_v58, -inf }
0x101e   : > { %v3885_v40 = vrot.slane %v3884_v20, 2  ;;  %v3892_v51 = vrot.slane %v3891_v39, 2  ;;  %v3899_v2 = vrot.slane %v3898_v4, 2  ;;  %v3905_v0 = vmax.f32 %v3903_v33, %v3904_v29 }
0x101f   : > { %v3913_v24 = vrot.slane %v3912_v13, 2  ;;  %v3919_v53 = vmax.f32 %v3917_v31, %v3918_v30  ;;  %v3926_v54 = vmax.f32 %v3924_v5, %v3925_v44  ;;  %v3932_v52 = vrot.slane %v3931_v36, 4 }
0x1020   : > { %v3886_v22 = vmax.f32 %v3884_v20, %v3885_v40  ;;  %v3893_v45 = vmax.f32 %v3891_v39, %v3892_v51  ;;  %v3900_v38 = vmax.f32 %v3898_v4, %v3899_v2  ;;  %v3906_v1 = vrot.slane %v3905_v0, 2 }
0x1021   : > { %v3914_v57 = vmax.f32 %v3912_v13, %v3913_v24  ;;  %v3920_v59 = vrot.slane %v3919_v53, 2  ;;  %v3927_v21 = vrot.slane %v3926_v54, 2  ;;  %v3933_v28 = vmax.f32 %v3931_v36, %v3932_v52 }
0x1022   : > { %v3887_v10 = vrot.slane %v3886_v22, 1  ;;  %v3894_v55 = vrot.slane %v3893_v45, 1  ;;  %v3901_v46 = vrot.slane %v3900_v38, 1  ;;  %v3907_v58 = vmax.f32 %v3905_v0, %v3906_v1 }
0x1023   : > { %v3915_v60 = vrot.slane %v3914_v57, 1  ;;  %v3921_v23 = vmax.f32 %v3919_v53, %v3920_v59  ;;  %v3928_v48 = vmax.f32 %v3926_v54, %v3927_v21  ;;  %v3671_v33 = vmul.f32 %v5647_v17, %v6583_v27 }
0x1024   : > { %v3888_v31 = vmax.f32 %v3886_v22, %v3887_v10  ;;  %v3895_v5 = vmax.f32 %v3893_v45, %v3894_v55  ;;  %v3902_v29 = vmax.f32 %v3900_v38, %v3901_v46  ;;  %v3908_v20 = vrot.slane %v3907_v58, 1 }
0x1025   : > { %v3922_v39 = vrot.slane %v3921_v23, 1  ;;  %5600 = vpush %v3671_v33  ;;  %v3929_v4 = vrot.slane %v3928_v48, 1  ;;  %v3934_v13 = vrot.slane %v3933_v28, 2  ;;  %v3678_v36 = vsub.f32 1.0, %v5647_v17 }
0x1026   : > { %v3909_v30 = vmax.f32 %v3907_v58, %v3908_v20  ;;  %v3946_v44 = vsel %vm1246_vm8, %v3895_v5, %v3888_v31  ;;  %v3916_v40 = vmax.f32 %v3914_v57, %v3915_v60 }
0x1027   : > { %v3935_v51 = vmax.f32 %v3933_v28, %v3934_v13  ;;  %v3947_v2 = vsel %vm1248_vm9, %v3902_v29, %v3946_v44  ;;  %v3923_v0 = vmax.f32 %v3921_v23, %v3922_v39  ;;  %v6672_v53 = vmul.f32 %v3678_v36, %v6583_v27 }
0x1028   : > { %v3948_v24 = vsel %vm1250_vm10, %v3909_v30, %v3947_v2  ;;  %v3930_v45 = vmax.f32 %v3928_v48, %v3929_v4 }
0x1029   : > { %v3936_v54 = vrot.slane %v3935_v51, 1  ;;  %v3949_v52 = vsel %vm1252_vm11, %v3916_v40, %v3948_v24 }
0x102a   : > { %v3950_v22 = vsel %vm1254_vm12, %v3923_v0, %v3949_v52 }
0x102b   : > { %v3937_v38 = vmax.f32 %v3935_v51, %v3936_v54  ;;  %v3951_v1 = vsel %vm1256_vm13, %v3930_v45, %v3950_v22 }
0x102d   : > { %v3952_v60 = vsel %vm1258_vm14, %v3937_v38, %v3951_v1 }
0x102e   : > { %v6680_v17 = vsel %vm617_vm15, 0.0, %v3952_v60 }
0x102f   : > { %6973 = vst [vmem:[#allocation13_spill] sm:$0xff] %v6680_v17  ;;  %v3955_v23 = vpack.c.bf16 %v6680_v17, %v6680_v17 }
0x1031   : > { %5496 = vmatmul.mubr.msk.bf16.vlgmr.msra.gmra.mrb[68].mxu1 %vm918_vm7, %v3955_v23 }
0x1032   : > { %5508 = vmatpush3.bf16.msra.mxu1 %v5873_v47  ;;  %5511 = vmatprep.mubr.msk.bf16.mxu1 %vm5675_vm1, %v6953_v19 }
0x1033   : > { %5509 = vmatprep.subr.bf16.mxu1 %v6953_v19 }
0x1036   : > { %5510 = vmatpush3.bf16.msra.mxu1 %v5888_v50 }
0x1037   : > { %5523 = vmatprep.subr.bf16.mxu1 %v6953_v19 }
0x1039   : > { %5512 = vmatmul.mubr.msk.bf16.vlgmr.msra.gmra.mrb[72].mxu1 %vm918_vm7, %v3955_v23 }
0x103a   : > { %5524 = vmatpush3.bf16.msra.mxu1 %v5941_v35  ;;  %5527 = vmatprep.mubr.msk.bf16.mxu1 %vm5675_vm1, %v6953_v19 }
0x103b   : > { %5525 = vmatprep.subr.bf16.mxu1 %v6953_v19 }
0x103e   : > { %5526 = vmatpush3.bf16.msra.mxu1 %v5947_v37 }
0x103f   : > { %5539 = vmatprep.subr.bf16.mxu1 %v6953_v19 }
0x1056   : > { %s5601_s25 = spop %5600 }
0x1104   : > { %v3993_v48 = vpop.f32.mrb[68].mxu1 }
0x1105   : > { %v3994_v27 = vadd.f32 %v3993_v48, %v6069_v18  ;;  %v5497_v57 = vpop.f32.mrb[69].mxu1 }
0x1106   : > { %v3996_v59 = vpop.f32.mrb[70].mxu1 }
0x1107   : > { %v3999_v21 = vsel %vm918_vm7, %v3994_v27, -inf  ;;  %v5498_v28 = vpop.f32.mrb[71].mxu1 }
0x1108   : > { %v4000_v10 = vrot.slane %v3999_v21, 4 }
0x110a   : > { %v4001_v55 = vmax.f32 %v3999_v21, %v4000_v10 }
0x110c   : > { %v4002_v46 = vrot.slane %v4001_v55, 2  ;;  %v4099_v58 = vpop.f32.mrb[72].mxu1 }
0x110d   : > { %v5513_v33 = vpop.f32.mrb[73].mxu1  ;;  %v4100_v57 = vadd.f32 %v6542_v34, %v4099_v58 }
0x110e   : > { %v4003_v31 = vmax.f32 %v4001_v55, %v4002_v46  ;;  %v4102_v5 = vpop.f32.mrb[74].mxu1 }
0x110f   : > { %v5514_v29 = vpop.f32.mrb[75].mxu1 }
0x1110   : > { %v4004_v20 = vrot.slane %v4003_v31, 1 }
0x1112   : > { %v4005_v39 = vmax.f32 %v4003_v31, %v4004_v20 }
0x1114   : > { %v4006_v4 = vpack.c.bf16 %v4005_v39, %v4005_v39 }
0x1116   : > { %5504 = vmatmul.mubr.msk.bf16.vlgmr.msra.gmra.mrb[72].mxu0 %vm918_vm7, %v4006_v4 }
0x1117   : > { %5516 = vmatpush3.bf16.msra.mxu0 %v5833_v26  ;;  %5519 = vmatprep.mubr.msk.bf16.mxu0 %vm5675_vm1, %v6953_v19 }
0x1118   : > { %5517 = vmatprep.subr.bf16.mxu0 %v6953_v19 }
0x111b   : > { %5518 = vmatpush3.bf16.msra.mxu0 %v5846_v32 }
0x111c   : > { %5531 = vmatprep.subr.bf16.mxu0 %v6953_v19 }
0x111e   : > { %5520 = vmatmul.mubr.msk.bf16.vlgmr.msra.gmra.mrb[76].mxu0 %vm918_vm7, %v3955_v23 }
0x111f   : > { %5532 = vmatpush3.bf16.msra.mxu0 %v6051_v12  ;;  %5535 = vmatprep.mubr.msk.bf16.mxu0 %vm5675_vm1, %v6953_v19 }
0x1120   : > { %5533 = vmatprep.subr.bf16.mxu0 %v6953_v19 }
0x1123   : > { %5534 = vmatpush3.bf16.msra.mxu0 %v6061_v16 }
0x1124   : > { %5547 = vmatprep.subr.bf16.mxu0 %v6953_v19 }
0x11e9   : > { %v4044_v13 = vpop.f32.mrb[72].mxu0 }
0x11ea   : > { %v4045_v30 = vadd.f32 %v6625_v15, %v4044_v13  ;;  %v5505_v44 = vpop.f32.mrb[73].mxu0 }
0x11eb   : > { %v4047_v36 = vpop.f32.mrb[74].mxu0 }
0x11ec   : > { %v5067_v40 = vmul.f32 -1.442695, %v4045_v30  ;;  %v5506_v51 = vpop.f32.mrb[75].mxu0 }
0x11ee   : > { %5648 = vpow2.f32 %v5067_v40 }
0x11f1   : > { %v4139_v2 = vpop.f32.mrb[76].mxu0 }
0x11f2   : > { %v4146_v0 = vcombine.high %v4139_v2, %v4139_v2  ;;  %v4153_v24 = vrot.slane %v4139_v2, %v5953_v41  ;;  %v5521_v45 = vpop.f32.mrb[77].mxu0 }
0x11f3   : > { %v4142_v54 = vpop.f32.mrb[78].mxu0 }
0x11f4   : > { %v4160_v52 = vrot.slane %v4146_v0, %v5953_v41  ;;  %v4161_v22 = vcombine.high %v4153_v24, %v4153_v24  ;;  %v4169_v38 = vrot.slane %v4153_v24, %v5953_v41  ;;  %v5522_v1 = vpop.f32.mrb[79].mxu0 }
0x11f6   : > { %v4162_v60 = vcombine.high %v4160_v52, %v4160_v52  ;;  %v4176_v23 = vrot.slane %v4160_v52, %v5953_v41  ;;  %v4183_v48 = vrot.slane %v4161_v22, %v5953_v41  ;;  %v4191_v27 = vcombine.high %v4169_v38, %v4169_v38 }
0x11f7   : > { %v4198_v59 = vrot.slane %v4169_v38, %v5895_v56 }
0x11f8   : > { %v5649_v21 = vpop.eup %5648  ;;  %v4190_v28 = vrot.slane %v4162_v60, %v5953_v41  ;;  %v4192_v10 = vcombine.high %v4176_v23, %v4176_v23  ;;  %v4193_v55 = vcombine.high %v4183_v48, %v4183_v48  ;;  %v4202_v46 = vrot.slane %v4183_v48, %v5895_v56 }
0x11f9   : > { %v4053_v33 = vadd.f32 1.0, %v5649_v21  ;;  %v4206_v31 = vrot.slane %v4191_v27, %v5895_v56  ;;  %v4214_v5 = vrot.slane %v4176_v23, %v5895_v56  ;;  %v4235_v29 = vadd.f32 %v4198_v59, %v4100_v57 }
0x11fa   : > { %v4194_v20 = vcombine.high %v4190_v28, %v4190_v28  ;;  %v4210_v39 = vrot.slane %v4193_v55, %v5895_v56  ;;  %v4218_v34 = vrot.slane %v4190_v28, %v5895_v56  ;;  %v4222_v58 = vrot.slane %v4192_v10, %v5895_v56 }
0x11fb   : > { %5650 = vrcp.f32 %v4053_v33  ;;  %v4236_v4 = vadd.f32 %v4202_v46, %v4100_v57  ;;  %v4237_v13 = vadd.f32 %v4206_v31, %v4100_v57  ;;  %v4239_v30 = vadd.f32 %v4214_v5, %v4100_v57  ;;  %v6974_v5 = vld [vmem:[#allocation3_spill] sm:$0xff] }
0x11fc   : > { %v4226_v44 = vrot.slane %v4194_v20, %v5895_v56  ;;  %v4238_v36 = vadd.f32 %v4210_v39, %v4100_v57  ;;  %v4240_v40 = vadd.f32 %v4218_v34, %v4100_v57  ;;  %v4241_v51 = vadd.f32 %v4222_v58, %v4100_v57  ;;  %v6975_v20 = vld [vmem:[#allocation4_spill] sm:$0xff] }
0x11fd   : > { %v4243_v2 = vadd.f32 %v4235_v29, %v5903_v63  ;;  %v4244_v0 = vadd.f32 %v4236_v4, %v5909_v6  ;;  %v4245_v24 = vadd.f32 %v5901_v61, %v4237_v13  ;;  %v4247_v45 = vadd.f32 %v4239_v30, %v5913_v8  ;;  %v6976_v30 = vld [vmem:[#allocation5_spill] sm:$0xff] }
0x11fe   : > { %v4242_v54 = vadd.f32 %v4226_v44, %v4100_v57  ;;  %v4246_v52 = vadd.f32 %v5906_v3, %v4238_v36  ;;  %v4248_v22 = vadd.f32 %v4240_v40, %v5919_v14  ;;  %v4249_v38 = vadd.f32 %v5911_v7, %v4241_v51 }
0x11ff   : > { %v4251_v1 = vmax.f32 %v4243_v2, 0.0  ;;  %v4252_v60 = vmax.f32 %v4244_v0, 0.0  ;;  %v4253_v23 = vmax.f32 %v4245_v24, 0.0  ;;  %v4255_v48 = vmax.f32 %v4247_v45, 0.0 }
0x1200   : > { %v4250_v27 = vadd.f32 %v5916_v11, %v4242_v54  ;;  %v4254_v59 = vmax.f32 %v4246_v52, 0.0  ;;  %v4256_v21 = vmax.f32 %v4248_v22, 0.0  ;;  %v4257_v28 = vmax.f32 %v4249_v38, 0.0 }
0x1201   : > { %v4259_v10 = vadd.f32 %v4251_v1, %v5955_v42  ;;  %v4260_v55 = vadd.f32 %v4252_v60, %v5967_v62  ;;  %v4261_v57 = vadd.f32 %v4253_v23, %v5957_v43  ;;  %v4263_v46 = vadd.f32 %v4255_v48, %v5982_v25 }
0x1202   : > { %v4258_v33 = vmax.f32 %v4250_v27, 0.0  ;;  %v4262_v31 = vadd.f32 %v4254_v59, %v5971_v9  ;;  %v4264_v29 = vadd.f32 %v4256_v21, %v6974_v5  ;;  %v4265_v39 = vadd.f32 %v4257_v28, %v6975_v20 }
0x1203   : > { %v4267_v34 = vsel %vm918_vm7, %v4259_v10, -inf  ;;  %v4274_v58 = vsel %vm918_vm7, %v4260_v55, -inf  ;;  %v4281_v4 = vsel %vm918_vm7, %v4261_v57, -inf  ;;  %v4295_v13 = vsel %vm918_vm7, %v4263_v46, -inf }
0x1204   : > { %v4266_v44 = vadd.f32 %v4258_v33, %v6976_v30  ;;  %v4268_v36 = vrot.slane %v4267_v34, 4  ;;  %v4275_v40 = vrot.slane %v4274_v58, 4  ;;  %v4282_v51 = vrot.slane %v4281_v4, 4 }
0x1205   : > { %v5651_v2 = vpop.eup %5650  ;;  %v4288_v0 = vsel %vm918_vm7, %v4262_v31, -inf  ;;  %v4296_v24 = vrot.slane %v4295_v13, 4  ;;  %v4302_v45 = vsel %vm918_vm7, %v4264_v29, -inf  ;;  %v4309_v54 = vsel %vm918_vm7, %v4265_v39, -inf }
0x1206   : > { %v4269_v52 = vmax.f32 %v4267_v34, %v4268_v36  ;;  %v4276_v22 = vmax.f32 %v4274_v58, %v4275_v40  ;;  %v4283_v38 = vmax.f32 %v4281_v4, %v4282_v51  ;;  %v4289_v1 = vrot.slane %v4288_v0, 4 }
0x1207   : > { %v4297_v60 = vmax.f32 %v4295_v13, %v4296_v24  ;;  %v4303_v23 = vrot.slane %v4302_v45, 4  ;;  %v4310_v48 = vrot.slane %v4309_v54, 4  ;;  %v4316_v27 = vsel %vm918_vm7, %v4266_v44, -inf }
0x1208   : > { %v4270_v59 = vrot.slane %v4269_v52, 2  ;;  %v4277_v21 = vrot.slane %v4276_v22, 2  ;;  %v4284_v28 = vrot.slane %v4283_v38, 2  ;;  %v4290_v10 = vmax.f32 %v4288_v0, %v4289_v1 }
0x1209   : > { %v4298_v55 = vrot.slane %v4297_v60, 2  ;;  %v4304_v57 = vmax.f32 %v4302_v45, %v4303_v23  ;;  %v4311_v46 = vmax.f32 %v4309_v54, %v4310_v48  ;;  %v4317_v33 = vrot.slane %v4316_v27, 4 }
0x120a   : > { %v4271_v31 = vmax.f32 %v4269_v52, %v4270_v59  ;;  %v4278_v29 = vmax.f32 %v4276_v22, %v4277_v21  ;;  %v4285_v39 = vmax.f32 %v4283_v38, %v4284_v28  ;;  %v4291_v34 = vrot.slane %v4290_v10, 2 }
0x120b   : > { %v4299_v58 = vmax.f32 %v4297_v60, %v4298_v55  ;;  %v4305_v4 = vrot.slane %v4304_v57, 2  ;;  %v4312_v36 = vrot.slane %v4311_v46, 2  ;;  %v4318_v13 = vmax.f32 %v4316_v27, %v4317_v33 }
0x120c   : > { %v4272_v40 = vrot.slane %v4271_v31, 1  ;;  %v4279_v51 = vrot.slane %v4278_v29, 1  ;;  %v4286_v24 = vrot.slane %v4285_v39, 1  ;;  %v4292_v44 = vmax.f32 %v4290_v10, %v4291_v34 }
0x120d   : > { %v4300_v17 = vrot.slane %v4299_v58, 1  ;;  %v4306_v30 = vmax.f32 %v4304_v57, %v4305_v4  ;;  %v4313_v20 = vmax.f32 %v4311_v46, %v4312_v36  ;;  %v4056_v0 = vmul.f32 %v5651_v2, %v6672_v53 }
0x120e   : > { %v4273_v45 = vmax.f32 %v4271_v31, %v4272_v40  ;;  %v4280_v54 = vmax.f32 %v4278_v29, %v4279_v51  ;;  %v4287_v1 = vmax.f32 %v4285_v39, %v4286_v24  ;;  %v4293_v52 = vrot.slane %v4292_v44, 1 }
0x120f   : > { %v4307_v22 = vrot.slane %v4306_v30, 1  ;;  %5602 = vpush %v4056_v0  ;;  %v4314_v38 = vrot.slane %v4313_v20, 1  ;;  %v4319_v60 = vrot.slane %v4318_v13, 2  ;;  %v4063_v27 = vsub.f32 1.0, %v5651_v2 }
0x1210   : > { %v4294_v23 = vmax.f32 %v4292_v44, %v4293_v52  ;;  %v4331_v48 = vsel %vm1246_vm8, %v4280_v54, %v4273_v45  ;;  %v4301_v59 = vmax.f32 %v4299_v58, %v4300_v17 }
0x1211   : > { %v4320_v21 = vmax.f32 %v4318_v13, %v4319_v60  ;;  %v4332_v28 = vsel %vm1248_vm9, %v4287_v1, %v4331_v48  ;;  %v4308_v10 = vmax.f32 %v4306_v30, %v4307_v22  ;;  %v6759_v57 = vmul.f32 %v4063_v27, %v6672_v53 }
0x1212   : > { %v4333_v55 = vsel %vm1250_vm10, %v4294_v23, %v4332_v28  ;;  %v4315_v46 = vmax.f32 %v4313_v20, %v4314_v38 }
0x1213   : > { %v4321_v33 = vrot.slane %v4320_v21, 1  ;;  %v4334_v31 = vsel %vm1252_vm11, %v4301_v59, %v4333_v55 }
0x1214   : > { %v4335_v29 = vsel %vm1254_vm12, %v4308_v10, %v4334_v31 }
0x1215   : > { %v4322_v39 = vmax.f32 %v4320_v21, %v4321_v33  ;;  %v4336_v34 = vsel %vm1256_vm13, %v4315_v46, %v4335_v29  ;;  %v5664_v29 = vld [vmem:[%s6916_s10] ss:$0 sm:$0xff] }
0x1217   : > { %v4337_v17 = vsel %vm1258_vm14, %v4322_v39, %v4336_v34 }
0x1218   : > { %v6767_v2 = vsel %vm617_vm15, 0.0, %v4337_v17 }
0x1219   : > { %v4340_v30 = vpack.c.bf16 %v6767_v2, %v6767_v2 }
0x121b   : > { %5528 = vmatmul.mubr.msk.bf16.vlgmr.msra.gmra.mrb[76].mxu1 %vm918_vm7, %v4340_v30 }
0x121c   : > { %5540 = vmatpush3.bf16.msra.mxu1 %v5873_v47  ;;  %5543 = vmatprep.mubr.msk.bf16.mxu1 %vm5675_vm1, %v6953_v19 }
0x121d   : > { %5541 = vmatprep.subr.bf16.mxu1 %v6953_v19 }
0x1220   : > { %5542 = vmatpush3.bf16.msra.mxu1 %v5888_v50 }
0x1221   : > { %5555 = vmatprep.subr.bf16.mxu1 %v6953_v19 }
0x1223   : > { %5544 = vmatmul.mubr.msk.bf16.vlgmr.msra.gmra.mrb[80].mxu1 %vm918_vm7, %v4340_v30 }
0x1224   : > { %5556 = vmatpush3.bf16.msra.mxu1 %v5941_v35  ;;  %5559 = vmatprep.mubr.msk.bf16.mxu1 %vm5675_vm1, %v6953_v19 }
0x1225   : > { %5557 = vmatprep.subr.bf16.mxu1 %v6953_v19 }
0x1228   : > { %5558 = vmatpush3.bf16.msra.mxu1 %v5947_v37 }
0x1229   : > { %5571 = vmatprep.subr.bf16.mxu1 %v6953_v19 }
0x1240   : > { %s5603_s26 = spop %5602 }
0x12ee   : > { %v4378_v47 = vpop.f32.mrb[76].mxu1 }
0x12ef   : > { %v4379_v53 = vadd.f32 %v4378_v47, %v6069_v18  ;;  %v5529_v20 = vpop.f32.mrb[77].mxu1 }
0x12f0   : > { %v4381_v50 = vpop.f32.mrb[78].mxu1 }
0x12f1   : > { %v4384_v58 = vsel %vm918_vm7, %v4379_v53, -inf  ;;  %v5530_v4 = vpop.f32.mrb[79].mxu1 }
0x12f2   : > { %v4385_v36 = vrot.slane %v4384_v58, 4 }
0x12f4   : > { %v4386_v13 = vmax.f32 %v4384_v58, %v4385_v36 }
0x12f6   : > { %v4387_v40 = vrot.slane %v4386_v13, 2  ;;  %v4484_v51 = vpop.f32.mrb[80].mxu1 }
0x12f7   : > { %v5545_v24 = vpop.f32.mrb[81].mxu1  ;;  %v4485_v39 = vadd.f32 %v5664_v29, %v4484_v51 }
0x12f8   : > { %v4388_v44 = vmax.f32 %v4386_v13, %v4387_v40  ;;  %v4487_v0 = vpop.f32.mrb[82].mxu1 }
0x12f9   : > { %v5546_v45 = vpop.f32.mrb[83].mxu1 }
0x12fa   : > { %v4389_v54 = vrot.slane %v4388_v44, 1 }
0x12fc   : > { %v4390_v1 = vmax.f32 %v4388_v44, %v4389_v54 }
0x12fe   : > { %v4391_v52 = vpack.c.bf16 %v4390_v1, %v4390_v1 }
0x1300   : > { %5536 = vmatmul.mubr.msk.bf16.vlgmr.msra.gmra.mrb[80].mxu0 %vm918_vm7, %v4391_v52 }
0x1301   : > { %5548 = vmatpush3.bf16.msra.mxu0 %v5833_v26  ;;  %5551 = vmatprep.mubr.msk.bf16.mxu0 %vm5675_vm1, %v6953_v19 }
0x1302   : > { %5549 = vmatprep.subr.bf16.mxu0 %v6953_v19 }
0x1305   : > { %5550 = vmatpush3.bf16.msra.mxu0 %v5846_v32 }
0x1306   : > { %5563 = vmatprep.subr.bf16.mxu0 %v6953_v19 }
0x1308   : > { %5552 = vmatmul.mubr.msk.bf16.vlgmr.msra.gmra.mrb[84].mxu0 %vm918_vm7, %v4340_v30 }
0x1309   : > { %5564 = vmatpush3.bf16.msra.mxu0 %v6051_v12  ;;  %5567 = vmatprep.mubr.msk.bf16.mxu0 %vm5675_vm1, %v6953_v19 }
0x130a   : > { %5565 = vmatprep.subr.bf16.mxu0 %v6953_v19 }
0x130d   : > { %5566 = vmatpush3.bf16.msra.mxu0 %v6061_v16 }
0x130e   : > { %5579 = vmatprep.subr.bf16.mxu0 %v6953_v19 }
0x13d3   : > { %v4429_v26 = vpop.f32.mrb[80].mxu0 }
0x13d4   : > { %v4430_v22 = vadd.f32 %v6625_v15, %v4429_v26  ;;  %v5537_v38 = vpop.f32.mrb[81].mxu0 }
0x13d5   : > { %v4432_v32 = vpop.f32.mrb[82].mxu0 }
0x13d6   : > { %v5072_v60 = vmul.f32 -1.442695, %v4430_v22  ;;  %v5538_v23 = vpop.f32.mrb[83].mxu0 }
0x13d8   : > { %5652 = vpow2.f32 %v5072_v60 }
0x13db   : > { %v4524_v48 = vpop.f32.mrb[84].mxu0 }
0x13dc   : > { %v4531_v27 = vcombine.high %v4524_v48, %v4524_v48  ;;  %v4538_v12 = vrot.slane %v4524_v48, %v5953_v41  ;;  %v5553_v59 = vpop.f32.mrb[85].mxu0 }
0x13dd   : > { %v4527_v21 = vpop.f32.mrb[86].mxu0 }
0x13de   : > { %v4545_v28 = vrot.slane %v4531_v27, %v5953_v41  ;;  %v4546_v10 = vcombine.high %v4538_v12, %v4538_v12  ;;  %v4554_v16 = vrot.slane %v4538_v12, %v5953_v41  ;;  %v5554_v55 = vpop.f32.mrb[87].mxu0 }
0x13e0   : > { %v4547_v46 = vcombine.high %v4545_v28, %v4545_v28  ;;  %v4561_v15 = vrot.slane %v4545_v28, %v5953_v41  ;;  %v4568_v33 = vrot.slane %v4546_v10, %v5953_v41  ;;  %v4576_v31 = vcombine.high %v4554_v16, %v4554_v16 }
0x13e1   : > { %v4583_v34 = vrot.slane %v4554_v16, %v5895_v56 }
0x13e2   : > { %v5653_v17 = vpop.eup %5652  ;;  %v4575_v30 = vrot.slane %v4547_v46, %v5953_v41  ;;  %v4577_v47 = vcombine.high %v4561_v15, %v4561_v15  ;;  %v4578_v53 = vcombine.high %v4568_v33, %v4568_v33  ;;  %v4587_v20 = vrot.slane %v4568_v33, %v5895_v56  ;;  %v6977_v46 = vld [vmem:[#allocation4_spill] sm:$0xff] }
0x13e3   : > { %v4438_v50 = vadd.f32 1.0, %v5653_v17  ;;  %v4591_v58 = vrot.slane %v4576_v31, %v5895_v56  ;;  %v4599_v4 = vrot.slane %v4561_v15, %v5895_v56  ;;  %v4620_v36 = vadd.f32 %v4583_v34, %v4485_v39 }
0x13e4   : > { %v4579_v13 = vcombine.high %v4575_v30, %v4575_v30  ;;  %v4595_v40 = vrot.slane %v4578_v53, %v5895_v56  ;;  %v4603_v51 = vrot.slane %v4575_v30, %v5895_v56  ;;  %v4607_v24 = vrot.slane %v4577_v47, %v5895_v56 }
0x13e5   : > { %5654 = vrcp.f32 %v4438_v50  ;;  %v4621_v44 = vadd.f32 %v4587_v20, %v4485_v39  ;;  %v4622_v41 = vadd.f32 %v4591_v58, %v4485_v39  ;;  %v4624_v0 = vadd.f32 %v4599_v4, %v4485_v39 }
0x13e6   : > { %v4611_v45 = vrot.slane %v4579_v13, %v5895_v56  ;;  %v4623_v54 = vadd.f32 %v4595_v40, %v4485_v39  ;;  %v4625_v1 = vadd.f32 %v4603_v51, %v4485_v39  ;;  %v4626_v52 = vadd.f32 %v4607_v24, %v4485_v39 }
0x13e7   : > { %v4628_v26 = vadd.f32 %v4620_v36, %v5903_v63  ;;  %v4629_v22 = vadd.f32 %v4621_v44, %v5909_v6  ;;  %v4630_v38 = vadd.f32 %v5901_v61, %v4622_v41  ;;  %v4632_v32 = vadd.f32 %v4624_v0, %v5913_v8 }
0x13e8   : > { %v4627_v60 = vadd.f32 %v4611_v45, %v4485_v39  ;;  %v4631_v23 = vadd.f32 %v5906_v3, %v4623_v54  ;;  %v4633_v48 = vadd.f32 %v4625_v1, %v5919_v14  ;;  %v4634_v27 = vadd.f32 %v5911_v7, %v4626_v52 }
0x13e9   : > { %v4636_v12 = vmax.f32 %v4628_v26, 0.0  ;;  %v4637_v56 = vmax.f32 %v4629_v22, 0.0  ;;  %v4638_v59 = vmax.f32 %v4630_v38, 0.0  ;;  %v4640_v21 = vmax.f32 %v4632_v32, 0.0 }
0x13ea   : > { %v4635_v28 = vadd.f32 %v5916_v11, %v4627_v60  ;;  %v4639_v63 = vmax.f32 %v4631_v23, 0.0  ;;  %v4641_v10 = vmax.f32 %v4633_v48, 0.0  ;;  %v4642_v6 = vmax.f32 %v4634_v27, 0.0 }
0x13eb   : > { %v4644_v61 = vadd.f32 %v4636_v12, %v5955_v42  ;;  %v4645_v8 = vadd.f32 %v4637_v56, %v5967_v62  ;;  %v4646_v16 = vadd.f32 %v4638_v59, %v5957_v43  ;;  %v4648_v3 = vadd.f32 %v4640_v21, %v5982_v25  ;;  %v6978_v62 = vld [vmem:[#allocation5_spill] sm:$0xff] }
0x13ec   : > { %v4643_v14 = vmax.f32 %v4635_v28, 0.0  ;;  %v4647_v7 = vadd.f32 %v4639_v63, %v5971_v9  ;;  %v4649_v55 = vadd.f32 %v4641_v10, %v6974_v5  ;;  %v4650_v15 = vadd.f32 %v4642_v6, %v6977_v46 }
0x13ed   : > { %v4652_v11 = vsel %vm918_vm7, %v4644_v61, -inf  ;;  %v4659_v33 = vsel %vm918_vm7, %v4645_v8, -inf  ;;  %v4666_v31 = vsel %vm918_vm7, %v4646_v16, -inf  ;;  %v4680_v42 = vsel %vm918_vm7, %v4648_v3, -inf }
0x13ee   : > { %v4651_v29 = vadd.f32 %v4643_v14, %v6978_v62  ;;  %v4653_v43 = vrot.slane %v4652_v11, 4  ;;  %v4660_v39 = vrot.slane %v4659_v33, 4  ;;  %v4667_v25 = vrot.slane %v4666_v31, 4 }
0x13ef   : > { %v5655_v34 = vpop.eup %5654  ;;  %v4673_v9 = vsel %vm918_vm7, %v4647_v7, -inf  ;;  %v4681_v17 = vrot.slane %v4680_v42, 4  ;;  %v4687_v5 = vsel %vm918_vm7, %v4649_v55, -inf  ;;  %v4694_v30 = vsel %vm918_vm7, %v4650_v15, -inf }
0x13f0   : > { %v4654_v47 = vmax.f32 %v4652_v11, %v4653_v43  ;;  %v4661_v53 = vmax.f32 %v4659_v33, %v4660_v39  ;;  %v4668_v20 = vmax.f32 %v4666_v31, %v4667_v25  ;;  %v4674_v50 = vrot.slane %v4673_v9, 4 }
0x13f1   : > { %v4682_v58 = vmax.f32 %v4680_v42, %v4681_v17  ;;  %v4688_v4 = vrot.slane %v4687_v5, 4  ;;  %v4695_v36 = vrot.slane %v4694_v30, 4  ;;  %v4701_v13 = vsel %vm918_vm7, %v4651_v29, -inf }
0x13f2   : > { %v4655_v40 = vrot.slane %v4654_v47, 2  ;;  %v4662_v51 = vrot.slane %v4661_v53, 2  ;;  %v4669_v24 = vrot.slane %v4668_v20, 2  ;;  %v4675_v44 = vmax.f32 %v4673_v9, %v4674_v50 }
0x13f3   : > { %v4683_v41 = vrot.slane %v4682_v58, 2  ;;  %v4689_v0 = vmax.f32 %v4687_v5, %v4688_v4  ;;  %v4696_v45 = vmax.f32 %v4694_v30, %v4695_v36  ;;  %v4702_v54 = vrot.slane %v4701_v13, 4 }
0x13f4   : > { %v4656_v1 = vmax.f32 %v4654_v47, %v4655_v40  ;;  %v4663_v52 = vmax.f32 %v4661_v53, %v4662_v51  ;;  %v4670_v26 = vmax.f32 %v4668_v20, %v4669_v24  ;;  %v4676_v22 = vrot.slane %v4675_v44, 2  ;;  %v5665_v24 = vld [vmem:[#allocation2] sm:$0x1] }
0x13f5   : > { %v4684_v38 = vmax.f32 %v4682_v58, %v4683_v41  ;;  %v4690_v32 = vrot.slane %v4689_v0, 2  ;;  %v4697_v60 = vrot.slane %v4696_v45, 2  ;;  %v4703_v23 = vmax.f32 %v4701_v13, %v4702_v54 }
0x13f6   : > { %v4657_v48 = vrot.slane %v4656_v1, 1  ;;  %v4664_v27 = vrot.slane %v4663_v52, 1  ;;  %v4671_v12 = vrot.slane %v4670_v26, 1  ;;  %v4677_v56 = vmax.f32 %v4675_v44, %v4676_v22 }
0x13f7   : > { %v4685_v59 = vrot.slane %v4684_v38, 1  ;;  %v4691_v21 = vmax.f32 %v4689_v0, %v4690_v32  ;;  %v4698_v28 = vmax.f32 %v4696_v45, %v4697_v60  ;;  %v4441_v63 = vmul.f32 %v5655_v34, %v6759_v57 }
0x13f8   : > { %v4658_v10 = vmax.f32 %v4656_v1, %v4657_v48  ;;  %v4665_v6 = vmax.f32 %v4663_v52, %v4664_v27  ;;  %v4672_v61 = vmax.f32 %v4670_v26, %v4671_v12  ;;  %v4678_v8 = vrot.slane %v4677_v56, 1  ;;  %v6980_v12 = vld [vmem:[#allocation6_spill] sm:$0xff] }
0x13f9   : > { %v4692_v16 = vrot.slane %v4691_v21, 1  ;;  %5604 = vpush %v4441_v63  ;;  %v4699_v3 = vrot.slane %v4698_v28, 1  ;;  %v4704_v14 = vrot.slane %v4703_v23, 2  ;;  %v4448_v46 = vsub.f32 1.0, %v5655_v34 }
0x13fa   : > { %v4679_v7 = vmax.f32 %v4677_v56, %v4678_v8  ;;  %v4716_v55 = vsel %vm1246_vm8, %v4665_v6, %v4658_v10  ;;  %v4686_v15 = vmax.f32 %v4684_v38, %v4685_v59  ;;  %v1749_v38 = vstv %s5591_s21  ;;  %v6981_v59 = vld [vmem:[#allocation8_spill] sm:$0xff]  ;;  %v6982_v10 = vld [vmem:[#allocation9_spill] sm:$0xff] }
0x13fb   : > { %v4705_v11 = vmax.f32 %v4703_v23, %v4704_v14  ;;  %v4717_v33 = vsel %vm1248_vm9, %v4672_v61, %v4716_v55  ;;  %v4693_v31 = vmax.f32 %v4691_v21, %v4692_v16  ;;  %v4449_v62 = vmul.f32 %v4448_v46, %v6759_v57  ;;  %v6979_v23 = vld [vmem:[#allocation7_spill] sm:$0xff]  ;;  %v6983_v16 = vld [vmem:[#allocation10_spill] sm:$0xff] }
0x13fc   : > { %v4718_v42 = vsel %vm1250_vm10, %v4679_v7, %v4717_v33  ;;  %v4700_v29 = vmax.f32 %v4698_v28, %v4699_v3  ;;  %v1365_v32 = vstv %s5589_s15  ;;  %v2134_v60 = vstv %s5593_s22  ;;  %v6984_v55 = vld [vmem:[#allocation11_spill] sm:$0xff]  ;;  %v6985_v33 = vld [vmem:[#allocation12_spill] sm:$0xff] }
0x13fd   : > { %v4706_v43 = vrot.slane %v4705_v11, 1  ;;  %v4719_v39 = vsel %vm1252_vm11, %v4686_v15, %v4718_v42  ;;  %v1751_v48 = vmul.f32 %v1749_v38, %v6979_v23  ;;  %v2519_v27 = vstv %s5595_s2 }
0x13fe   : > { %v4720_v25 = vsel %vm1254_vm12, %v4693_v31, %v4719_v39  ;;  %v1367_v56 = vmul.f32 %v1365_v32, %v6980_v12  ;;  %v2136_v21 = vmul.f32 %v2134_v60, %v6981_v59  ;;  %v2904_v28 = vstv %s5597_s23 }
0x13ff   : > { %v4707_v9 = vmax.f32 %v4705_v11, %v4706_v43  ;;  %v4721_v17 = vsel %vm1256_vm13, %v4700_v29, %v4720_v25  ;;  %v2521_v6 = vmul.f32 %v2519_v27, %v6982_v10  ;;  %v3289_v61 = vstv %s5599_s24  ;;  %v6986_v29 = vld [vmem:[#allocation13_spill] sm:$0xff] }
0x1400   : > { %v1752_v63 = vadd.f32 %v1751_v48, %v1367_v56  ;;  %v2906_v3 = vmul.f32 %v2904_v28, %v6983_v16  ;;  %v3674_v14 = vstv %s5601_s25  ;;  %v3291_v46 = vmul.f32 %v3289_v61, %v6984_v55 }
0x1401   : > { %v4722_v34 = vsel %vm1258_vm14, %v4707_v9, %v4721_v17  ;;  %v4059_v15 = vstv %s5603_s26  ;;  %v3676_v31 = vmul.f32 %v3674_v14, %v6985_v33 }
0x1402   : > { %v6854_v5 = vsel %vm617_vm15, 0.0, %v4722_v34  ;;  %v2137_v8 = vadd.f32 %v2136_v21, %v1752_v63  ;;  %v4061_v43 = vmul.f32 %v4059_v15, %v6986_v29 }
0x1403   : > { %v4725_v30 = vpack.c.bf16 %v6854_v5, %v6854_v5 }
0x1404   : > { %v2522_v7 = vadd.f32 %v2521_v6, %v2137_v8 }
0x1405   : > { %5560 = vmatmul.mubr.msk.bf16.vlgmr.msra.gmra.mrb[84].mxu1 %vm918_vm7, %v4725_v30 }
0x1406   : > { %5572 = vmatpush3.bf16.msra.mxu1 %v5941_v35  ;;  %5575 = vmatprep.mubr.msk.bf16.mxu1 %vm5675_vm1, %v6953_v19  ;;  %v2907_v11 = vadd.f32 %v2906_v3, %v2522_v7 }
0x1407   : > { %5573 = vmatprep.subr.bf16.mxu1 %v6953_v19 }
0x140a   : > { %5574 = vmatpush3.bf16.msra.mxu1 %v5947_v37 }
0x142a   : > { %s5605_s27 = spop %5604 }
0x142b   : > { %v4444_v42 = vstv %s5605_s27  ;;  %s607_s27 = scalar_lea.vmem %s6924_s18, %s6988_s30 }
0x142c   : > { %v4446_v25 = vmul.f32 %v4444_v42, %v6767_v2  ;;  %v4887_v2 = vld [vmem:[%s6922_s16 + $0x10] sm:$0xff] }
0x14d8   : > { %v4763_v57 = vpop.f32.mrb[84].mxu1 }
0x14d9   : > { %v4764_v47 = vadd.f32 %v4763_v57, %v6069_v18  ;;  %v5561_v49 = vpop.f32.mrb[85].mxu1 }
0x14da   : > { %v4766_v53 = vpop.f32.mrb[86].mxu1  ;;  %v4885_v49 = vld [vmem:[%s6922_s16] sm:$0xff] }
0x14db   : > { %v4769_v20 = vsel %vm918_vm7, %v4764_v47, -inf  ;;  %v5562_v50 = vpop.f32.mrb[87].mxu1  ;;  %v4886_v53 = vld [vmem:[%s6922_s16 + $0x8] sm:$0xff] }
0x14dc   : > { %v4770_v58 = vrot.slane %v4769_v20, 4 }
0x14de   : > { %v4771_v4 = vmax.f32 %v4769_v20, %v4770_v58  ;;  %v4889_v20 = vpack.c.bf16 %v4886_v53, %v4885_v49 }
0x14e0   : > { %v4772_v36 = vrot.slane %v4771_v4, 2 }
0x14e2   : > { %v4773_v13 = vmax.f32 %v4771_v4, %v4772_v36 }
0x14e4   : > { %v4774_v35 = vrot.slane %v4773_v13, 1 }
0x14e6   : > { %v4775_v40 = vmax.f32 %v4773_v13, %v4774_v35 }
0x14e8   : > { %v4776_v51 = vpack.c.bf16 %v4775_v40, %v4775_v40 }
0x14ea   : > { %5568 = vmatmul.mubr.msk.bf16.vlgmr.msra.gmra.mrb[88].mxu0 %vm918_vm7, %v4776_v51 }
0x14eb   : > { %5583 = vmatprep.mubr.msk.bf16.mxu0 %vm5675_vm1, %v6953_v19  ;;  %5580 = vmatpush3.bf16.msra.mxu0 %v4889_v20 }
0x14ec   : > { %5581 = vmatprep.subr.bf16.mxu0 %v6953_v19  ;;  %v4891_v19 = vld [vmem:[%s6923_s17] sm:$0x1] }
0x15bd   : > { %v4814_v37 = vpop.f32.mrb[88].mxu0 }
0x15be   : > { %v4815_v44 = vadd.f32 %v5665_v24, %v4814_v37  ;;  %v5569_v41 = vpop.f32.mrb[89].mxu0 }
0x15bf   : > { %v4817_v0 = vpop.f32.mrb[90].mxu0 }
0x15c0   : > { %v5077_v45 = vmul.f32 -1.442695, %v4815_v44  ;;  %v5570_v54 = vpop.f32.mrb[91].mxu0 }
0x15c2   : > { %5656 = vpow2.f32 %v5077_v45 }
0x15cc   : > { %v5657_v1 = vpop.eup %5656 }
0x15cd   : > { %v4823_v52 = vadd.f32 1.0, %v5657_v1 }
0x15cf   : > { %5658 = vrcp.f32 %v4823_v52 }
0x15d9   : > { %v5659_v26 = vpop.eup %5658 }
0x15da   : > { %v4826_v22 = vmul.f32 %v5659_v26, %v4449_v62  ;;  %v3292_v62 = vadd.f32 %v3291_v46, %v2907_v11 }
0x15dc   : > { %5606 = vpush %v4826_v22  ;;  %v3677_v39 = vadd.f32 %v3676_v31, %v3292_v62 }
0x15de   : > { %v4062_v9 = vadd.f32 %v4061_v43, %v3677_v39 }
0x15e0   : > { %v4447_v34 = vadd.f32 %v4446_v25, %v4062_v9 }
0x160d   : > { %s5607_s28 = spop %5606 }
0x160e   : > { %v4829_v17 = vstv %s5607_s28 }
0x160f   : > { %v4831_v30 = vmul.f32 %v4829_v17, %v6854_v5  ;;  %v4888_v5 = vld [vmem:[%s6922_s16 + $0x18] sm:$0xff] }
0x1610   : > { %v4890_v50 = vpack.c.bf16 %v4888_v5, %v4887_v2 }
0x1611   : > { %v4832_v57 = vadd.f32 %v4831_v30, %v4447_v34 }
0x1612   : > { %5582 = vmatpush3.bf16.msra.mxu0 %v4890_v50 }
0x1613   : > { %v4833_v47 = vpack.c.bf16 %v4832_v57, %v4832_v57 }
0x1615   : > { %5576 = vmatmul.mubr.msk.bf16.vlgmr.msra.gmra.mrb[88].mxu1 %vm918_vm7, %v4833_v47 }
0x16e8   : > { %v4871_v58 = vpop.f32.mrb[88].mxu1 }
0x16e9   : > { %v4872_v4 = vadd.f32 %v4871_v58, %v6069_v18  ;;  %v5577_v36 = vpop.f32.mrb[89].mxu1 }
0x16ea   : > { %v4874_v13 = vpop.f32.mrb[90].mxu1 }
0x16eb   : > { %v4877_v35 = vsel %vm918_vm7, %v4872_v4, -inf  ;;  %v5578_v40 = vpop.f32.mrb[91].mxu1 }
0x16ec   : > { %v4878_v51 = vrot.slane %v4877_v35, 4 }
0x16ee   : > { %v4879_v37 = vmax.f32 %v4877_v35, %v4878_v51 }
0x16f0   : > { %v4880_v24 = vrot.slane %v4879_v37, 2 }
0x16f2   : > { %v4881_v44 = vmax.f32 %v4879_v37, %v4880_v24 }
0x16f4   : > { %v4882_v41 = vrot.slane %v4881_v44, 1 }
0x16f6   : > { %v4883_v0 = vmax.f32 %v4881_v44, %v4882_v41 }
0x16f8   : > { %v4884_v45 = vpack.c.bf16 %v4883_v0, %v4883_v0 }
0x16fa   : > { %5584 = vmatmul.mubr.msk.bf16.vlgmr.msra.gmra.mrb[92].mxu0 %vm918_vm7, %v4884_v45 }
0x17cd   : > { %v4929_v18 = vpop.f32.mrb[92].mxu0 }
0x17ce   : > { %v4930_v54 = vadd.f32 %v4929_v18, %v4891_v19  ;;  %v5585_v1 = vpop.f32.mrb[93].mxu0 }
0x17cf   : > { %v4932_v52 = vpop.f32.mrb[94].mxu0 }
0x17d0   : > { %4936 = vst.msk [vmem:[%s607_s27] sm:$0x1] %vm4935_vm0, %v4930_v54  ;;  %v5586_v26 = vpop.f32.mrb[95].mxu0 }
0x17d1 PF: > { %s30_s29 = sadd.s32 1, %s5672_s29  }
0x17d2   : > { %p27_p4 = scmp.ge.s32.totalorder %s30_s29, 6  }
0x17d4   :  { %29 = sbr.rel (!%p27_p4) target bundleno = 4 (0x4), region = 128 }

</bundles_post_ra>
